<compile_context>
chip_gen: v7x
topology: tpu7x:2x2x1
jax: 0.10.0
libtpu: 0.0.40
codegen_flags: <defaults>
</compile_context>

<pallas_src>
import functools
import math

import jax
import jax.numpy as jnp
from jax import lax
from jax.experimental import pallas as pl
from jax.experimental.pallas import tpu as pltpu

N_HEADS = 4


# ------------------------------ fused kernel -------------------------------

def _fused_model_kernel(*, n_gcn, n_layers, n_heads, N, S, S_pad, D,
                        alpha_g, eps=1e-5):
    dh = D // n_heads
    scale = 1.0 / math.sqrt(dh)
    f32, bf16 = jnp.float32, jnp.bfloat16

    def kernel(idx_ref, a_ref, x_ref, *rest):
        gcn_refs = rest[:2 * n_gcn]
        (pos_ref, extras_ref, we_ref, be_ref, mask_ref,
         wqkv_ref, bqkv_ref, wo_ref, bo_ref, g1_ref, b1_ref,
         wf1_ref, bf1_ref, wf2_ref, bf2_ref, g2_ref, b2_ref,
         hw0_ref, hb0_ref, hw1_ref, hb1_ref, hw2_ref, hb2_ref,
         o_ref) = rest[2 * n_gcn:]

        # ---- GCN stack + DeepGraphInfomax positive pass (bf16 MXU, f32 acc) ----
        a = a_ref[...]                                          # (N, N) bf16
        h = x_ref[...]                                          # (N, F) bf16
        for i in range(n_gcn):
            w = gcn_refs[2 * i][...]                            # (*, D) bf16, lane-padded
            b = gcn_refs[2 * i + 1][...]                        # (1, D) f32
            xw = jnp.dot(h, w, preferred_element_type=f32).astype(bf16)
            h = jnp.maximum(jnp.dot(a, xw, preferred_element_type=f32) + b,
                            0.0).astype(bf16)
        w = gcn_refs[2 * (n_gcn - 1)][...]
        b = gcn_refs[2 * n_gcn - 1][...]
        xw = jnp.dot(h, w, preferred_element_type=f32).astype(bf16)
        node_emb = jnp.dot(a, xw, preferred_element_type=f32) + b   # (N, D) f32

        # ---- route gather as a one-hot MXU matmul (idx == -1 -> zero row) ----
        idx_col = idx_ref[0]                                    # (S_pad, 1) int32
        node_iota = lax.broadcasted_iota(jnp.int32, (S_pad, N), 1)
        sel = (node_iota == idx_col).astype(f32)                # (S_pad, N)
        g = jnp.dot(sel, node_emb, preferred_element_type=f32)  # (S_pad, D)

        # ---- extras Linear (weights pre-placed at extras lanes, pre-scaled) ----
        e = jnp.dot(extras_ref[0], we_ref[...],
                    preferred_element_type=f32) + be_ref[...]   # (1, D)

        # transformer input: pre-scaled posenc slab + alpha_g*gather + extras row
        x = pos_ref[...] + alpha_g * g + e                      # (S_pad, D) f32

        bias = mask_ref[0]                                      # (1, S_pad) key bias
        lane = lax.broadcasted_iota(jnp.int32, (1, D), 1)
        head_masks = [((lane >= hh * dh) & (lane < (hh + 1) * dh)).astype(f32)
                      for hh in range(n_heads)]

        # ---- transformer encoder layers (post-norm, ReLU FFN) ----
        for li in range(n_layers):
            xb = x.astype(bf16)
            qkv = jnp.dot(xb, wqkv_ref[li],
                          preferred_element_type=f32) + bqkv_ref[li]    # (S_pad, 3D)
            q_all = qkv[:, 0:D]
            k_all = qkv[:, D:2 * D]
            v_all = qkv[:, 2 * D:3 * D]

            attn = jnp.zeros((S_pad, D), f32)
            for hh in range(n_heads):
                m = head_masks[hh]
                # (Q*mask_h) @ K^T == q_h @ k_h^T ; keeps operands 128-lane dense
                s = lax.dot_general(q_all * m, k_all, (((1,), (1,)), ((), ())),
                                    preferred_element_type=f32) * scale
                s = s + bias
                s = s - jnp.max(s, axis=-1, keepdims=True)
                p = jnp.exp(s)
                p = p * pl.reciprocal(jnp.sum(p, axis=-1, keepdims=True),
                                      approx=True)
                # P_h @ (V*mask_h) lands head h's output at its own lanes
                attn = attn + jnp.dot(p, v_all * m, preferred_element_type=f32)
            attn = jnp.dot(attn.astype(bf16), wo_ref[li],
                           preferred_element_type=f32) + bo_ref[li]

            # post-norm residual 1
            y = x + attn
            mu = jnp.mean(y, axis=-1, keepdims=True)
            var = jnp.mean(jnp.square(y - mu), axis=-1, keepdims=True)
            x1 = (y - mu) * lax.rsqrt(var + eps) * g1_ref[li] + b1_ref[li]

            # ReLU FFN + post-norm residual 2
            f = jnp.maximum(jnp.dot(x1.astype(bf16), wf1_ref[li],
                                    preferred_element_type=f32) + bf1_ref[li], 0.0)
            f = jnp.dot(f.astype(bf16), wf2_ref[li],
                        preferred_element_type=f32) + bf2_ref[li]
            y2 = x1 + f
            mu2 = jnp.mean(y2, axis=-1, keepdims=True)
            var2 = jnp.mean(jnp.square(y2 - mu2), axis=-1, keepdims=True)
            x = (y2 - mu2) * lax.rsqrt(var2 + eps) * g2_ref[li] + b2_ref[li]

        # ---- pooled head: mean over the ORIGINAL S rows (incl. padded queries) ----
        row = lax.broadcasted_iota(jnp.int32, (S_pad, 1), 0)
        row_mask = (row < S).astype(f32)
        pooled = jnp.sum(x * row_mask, axis=0, keepdims=True) * (1.0 / S)   # (1, D)
        y = jnp.maximum(jnp.dot(pooled, hw0_ref[...],
                                preferred_element_type=f32) + hb0_ref[...], 0.0)
        y = jnp.maximum(jnp.dot(y, hw1_ref[...],
                                preferred_element_type=f32) + hb1_ref[...], 0.0)
        z = jnp.sum(y * hw2_ref[...], axis=-1, keepdims=True) + hb2_ref[...]
        o_ref[0] = jnp.maximum(z, 0.0)      # reference has ReLU after the last Linear

    return kernel


# ------------------------------- model glue --------------------------------

def make_positional_encoding(max_length, embedding_size):
    time = jnp.pi * jnp.arange(max_length, dtype=jnp.float32)
    freq = jnp.arange(1, embedding_size // 2 + 1, dtype=jnp.float32)
    inputs = time[:, None] / freq[None, :]
    result = jnp.zeros((max_length, embedding_size), jnp.float32)
    result = result.at[:, 0::2].set(jnp.sin(inputs))
    result = result.at[:, 1::2].set(jnp.cos(inputs))
    return result


def _prep_params(params, *, alpha_feat):
    """Pad / stack / cast params into the kernel-ready layout (bf16 matmul weights)."""
    f32, bf16 = jnp.float32, jnp.bfloat16
    hidden = params["gcn"][0]["w"].shape[1]
    lin = params["w_extras"].shape[1]
    D = 2 * hidden + lin
    pp = {}

    # GCN weights zero-padded to D lanes: intermediates are lane dense and gathered
    # rows land directly at lanes [0, hidden) of the d_model slab.
    gcn_wb = []
    for i, gp in enumerate(params["gcn"]):
        w, b = gp["w"], gp["b"]
        if i == 0:
            w_pad = jnp.zeros((w.shape[0], D), f32).at[:, :hidden].set(w)
        else:
            w_pad = jnp.zeros((D, D), f32).at[:hidden, :hidden].set(w)
        b_pad = jnp.zeros((1, D), f32).at[0, :hidden].set(b)
        gcn_wb += [w_pad.astype(bf16), b_pad]
    pp["gcn_wb"] = gcn_wb

    # extras Linear placed at lanes [2*hidden, 2*hidden+lin), pre-scaled by alpha_feat
    we, be = params["w_extras"], params["b_extras"]
    off = 2 * hidden
    pp["we_pad"] = alpha_feat * jnp.zeros((we.shape[0], D), f32).at[:, off:off + lin].set(we)
    pp["be_pad"] = alpha_feat * jnp.zeros((1, D), f32).at[0, off:off + lin].set(be)

    # transformer layer weights stacked on a leading (n_layers, ...) axis
    L = params["layers"]
    pp["wqkv"] = jnp.stack([p["w_in"] for p in L]).astype(bf16)
    pp["bqkv"] = jnp.stack([p["b_in"].reshape(1, -1) for p in L])
    pp["wo"] = jnp.stack([p["w_out"] for p in L]).astype(bf16)
    pp["bo"] = jnp.stack([p["b_out"].reshape(1, -1) for p in L])
    pp["ln1_g"] = jnp.stack([p["ln1_g"].reshape(1, -1) for p in L])
    pp["ln1_b"] = jnp.stack([p["ln1_b"].reshape(1, -1) for p in L])
    pp["wff1"] = jnp.stack([p["w_ff1"] for p in L]).astype(bf16)
    pp["bff1"] = jnp.stack([p["b_ff1"].reshape(1, -1) for p in L])
    pp["wff2"] = jnp.stack([p["w_ff2"] for p in L]).astype(bf16)
    pp["bff2"] = jnp.stack([p["b_ff2"].reshape(1, -1) for p in L])
    pp["ln2_g"] = jnp.stack([p["ln2_g"].reshape(1, -1) for p in L])
    pp["ln2_b"] = jnp.stack([p["ln2_b"].reshape(1, -1) for p in L])

    # output MLP head; hidden width (D//2) zero-padded to D lanes (f32, tiny)
    o0, o1, o2 = params["out"]
    H2 = o1["w"].shape[1]
    pp["hw0"] = o0["w"]
    pp["hb0"] = o0["b"].reshape(1, -1)
    pp["hw1"] = jnp.zeros((D, D), f32).at[:, :H2].set(o1["w"])
    pp["hb1"] = jnp.zeros((1, D), f32).at[0, :H2].set(o1["b"])
    pp["hw2"] = jnp.zeros((1, D), f32).at[0, :H2].set(o2["w"].reshape(-1))
    pp["hb2"] = o2["b"].reshape(1, 1)
    return pp


def graph_recurrent_net_forward(params, data_x, a_hat, geo_seq, graph_embed,
                                imgs_embed, extras, lengths, *, seq_length,
                                alpha_g, alpha_feat, n_heads):
    del geo_seq, imgs_embed           # geo_seq unused; imgs_embed overwritten in forward
    hidden = params["gcn"][0]["w"].shape[1]
    lin = params["w_extras"].shape[1]
    D = 2 * hidden + lin
    B, Lr = graph_embed.shape
    S = seq_length + 1
    S_pad = max(8, ((S + 7) // 8) * 8)            # 8-sublane-aligned sequence
    N = a_hat.shape[0]
    F = data_x.shape[1]
    n_gcn = len(params["gcn"])
    n_layers = len(params["layers"])
    assert D % n_heads == 0

    pp = _prep_params(params, alpha_feat=alpha_feat)

    # positional-encoding slab, pre-scaled and pre-placed:
    #   lanes [0, hidden)        : alpha_g * posenc          (graph part)
    #   lanes [hidden, 2*hidden) : (1 - alpha_g) * posenc    (imgs part = zeros + posenc)
    #   lanes [2*hidden, D)      : 0                         (extras part)
    pos = make_positional_encoding(S_pad, hidden)
    pos_slab = jnp.concatenate(
        [alpha_g * pos, (1.0 - alpha_g) * pos, jnp.zeros((S_pad, lin), jnp.float32)],
        axis=1)

    # per-sequence-position node index: -1 entries removed, survivors packed from
    # position 1 (exactly the reference's filter + pad_sequence + zero-row prepend)
    ge = graph_embed.astype(jnp.int32)
    valid = ge >= 0
    dest = jnp.cumsum(valid.astype(jnp.int32), axis=1)          # 1-based target slot
    dest = jnp.where(valid, dest, S_pad)                        # park invalid out of range
    place = (dest[:, :, None] ==
             jnp.arange(S_pad, dtype=jnp.int32)[None, None, :]).astype(jnp.int32)
    idx_seq = jnp.sum(place * (ge + 1)[:, :, None], axis=1) - 1      # (B, S_pad); -1 = empty
    idx_seq = idx_seq.astype(jnp.int32).reshape(B, S_pad, 1)

    # key-padding mask from get_padding_mask(lengths, seq_length) -> additive bias
    valid_keys = jnp.minimum(jnp.asarray(lengths, jnp.int32) + 1, S)
    posn = jnp.arange(S_pad, dtype=jnp.int32)
    pad = posn[None, :] >= valid_keys[:, None]
    mask_bias = jnp.where(pad, -1e9, 0.0).astype(jnp.float32).reshape(B, 1, S_pad)

    extras3 = extras.astype(jnp.float32).reshape(B, 1, extras.shape[-1])
    a_bf = a_hat.astype(jnp.bfloat16)
    x_bf = data_x.astype(jnp.bfloat16)

    inv2 = lambda b: (0, 0)
    inv3 = lambda b: (0, 0, 0)
    per_b3 = lambda b: (b, 0, 0)

    in_specs = [
        pl.BlockSpec((1, S_pad, 1), per_b3),               # route index column
        pl.BlockSpec((N, N), inv2),                        # normalized adjacency
        pl.BlockSpec((N, F), inv2),                        # node features
    ]
    in_specs += [pl.BlockSpec(t.shape, inv2) for t in pp["gcn_wb"]]
    in_specs += [
        pl.BlockSpec((S_pad, D), inv2),                    # pos slab
        pl.BlockSpec((1, 1, extras.shape[-1]), per_b3),    # extras
        pl.BlockSpec(pp["we_pad"].shape, inv2),
        pl.BlockSpec(pp["be_pad"].shape, inv2),
        pl.BlockSpec((1, 1, S_pad), per_b3),               # key-padding bias
        pl.BlockSpec(pp["wqkv"].shape, inv3),
        pl.BlockSpec(pp["bqkv"].shape, inv3),
        pl.BlockSpec(pp["wo"].shape, inv3),
        pl.BlockSpec(pp["bo"].shape, inv3),
        pl.BlockSpec(pp["ln1_g"].shape, inv3),
        pl.BlockSpec(pp["ln1_b"].shape, inv3),
        pl.BlockSpec(pp["wff1"].shape, inv3),
        pl.BlockSpec(pp["bff1"].shape, inv3),
        pl.BlockSpec(pp["wff2"].shape, inv3),
        pl.BlockSpec(pp["bff2"].shape, inv3),
        pl.BlockSpec(pp["ln2_g"].shape, inv3),
        pl.BlockSpec(pp["ln2_b"].shape, inv3),
        pl.BlockSpec(pp["hw0"].shape, inv2),
        pl.BlockSpec(pp["hb0"].shape, inv2),
        pl.BlockSpec(pp["hw1"].shape, inv2),
        pl.BlockSpec(pp["hb1"].shape, inv2),
        pl.BlockSpec(pp["hw2"].shape, inv2),
        pl.BlockSpec(pp["hb2"].shape, inv2),
    ]

    kernel = _fused_model_kernel(
        n_gcn=n_gcn, n_layers=n_layers, n_heads=n_heads,
        N=N, S=S, S_pad=S_pad, D=D, alpha_g=alpha_g)

    # TODO(synk): for large batch sizes, split the (batch-invariant) GCN stack into
    # its own pallas_call instead of recomputing it per grid step.
    out = pl.pallas_call(
        kernel,
        out_shape=jax.ShapeDtypeStruct((B, 1, 1), jnp.float32),
        grid=(B,),
        in_specs=in_specs,
        out_specs=pl.BlockSpec((1, 1, 1), per_b3),
        compiler_params=pltpu.CompilerParams(dimension_semantics=("parallel",)),
    )(idx_seq, a_bf, x_bf, *pp["gcn_wb"], pos_slab, extras3, pp["we_pad"], pp["be_pad"],
      mask_bias, pp["wqkv"], pp["bqkv"], pp["wo"], pp["bo"], pp["ln1_g"], pp["ln1_b"],
      pp["wff1"], pp["bff1"], pp["wff2"], pp["bff2"], pp["ln2_g"], pp["ln2_b"],
      pp["hw0"], pp["hb0"], pp["hw1"], pp["hb1"], pp["hw2"], pp["hb2"])
    return out.reshape(B, 1)


def init_params(key, graph_feat_size, hidden, linear_size, n_graph_layers,
                n_transf_layers, d_ff):
    d_model = 2 * hidden + linear_size
    keys = iter(jax.random.split(key, 256))

    def w(shape, scale=0.05):
        return scale * jax.random.normal(next(keys), shape, jnp.float32)

    params = {}
    gcn, in_dim = [], graph_feat_size
    for _ in range(n_graph_layers):
        gcn.append({"w": w((in_dim, hidden)), "b": w((hidden,))})
        in_dim = hidden
    params["gcn"] = gcn
    params["w_extras"] = w((10, linear_size))
    params["b_extras"] = w((linear_size,))
    layers = []
    for _ in range(n_transf_layers):
        layers.append({
            "w_in": w((d_model, 3 * d_model)), "b_in": w((3 * d_model,)),
            "w_out": w((d_model, d_model)), "b_out": w((d_model,)),
            "ln1_g": jnp.ones((d_model,), jnp.float32),
            "ln1_b": jnp.zeros((d_model,), jnp.float32),
            "w_ff1": w((d_model, d_ff)), "b_ff1": w((d_ff,)),
            "w_ff2": w((d_ff, d_model)), "b_ff2": w((d_model,)),
            "ln2_g": jnp.ones((d_model,), jnp.float32),
            "ln2_b": jnp.zeros((d_model,), jnp.float32),
        })
    params["layers"] = layers
    params["out"] = [
        {"w": w((d_model, d_model)), "b": w((d_model,))},
        {"w": w((d_model, d_model // 2)), "b": w((d_model // 2,))},
        {"w": w((d_model // 2, 1)), "b": w((1,))},
    ]
    return params


if __name__ == "__main__":
    key = jax.random.PRNGKey(0)

    # small shapes consistent with the module
    GRAPH_FEAT = 16
    HIDDEN = 48                       # model_hidden_size
    LINEAR_SIZE = 32                  # -> d_model = 2*48 + 32 = 128
    SEQ_LENGTH = 8                    # transformer sequence = 9 (padded to 16 in-kernel)
    N_TRANSF_LAYERS = 2               # num_transf_enc_layers (small)
    D_FF = 256                        # TODO(synk): PyTorch default dim_feedforward=2048; kept small
    N_NODES = 64
    B = 2
    ALPHA_G = 1.0
    ALPHA_FEAT = 0.1

    k0, k1, k2, k3, k4, k5 = jax.random.split(key, 6)
    params = init_params(k0, GRAPH_FEAT, HIDDEN, LINEAR_SIZE,
                         n_graph_layers=3, n_transf_layers=N_TRANSF_LAYERS, d_ff=D_FF)

    # graph data: node features + symmetric normalized adjacency (GCNConv gcn_norm)
    data_x = jax.random.normal(k1, (N_NODES, GRAPH_FEAT), jnp.float32)
    n_edges = 128
    src = jax.random.randint(k2, (n_edges,), 0, N_NODES)
    dst = jax.random.randint(k3, (n_edges,), 0, N_NODES)
    A = jnp.zeros((N_NODES, N_NODES), jnp.float32)
    A = A.at[dst, src].set(1.0).at[src, dst].set(1.0)
    A = jnp.minimum(A + jnp.eye(N_NODES, dtype=jnp.float32), 1.0)
    deg = jnp.sum(A, axis=1)
    dinv = 1.0 / jnp.sqrt(deg)
    a_hat = dinv[:, None] * A * dinv[None, :]

    # routes over graph nodes, -1 padded; lengths per route
    graph_embed = jnp.array([[3, 17, 42, 8, 25],
                             [11, 60, 5, -1, -1]], jnp.int32)
    lengths = jnp.array([5, 3], jnp.int32)
    extras = jax.random.normal(k4, (B, 10), jnp.float32)
    geo_seq = jax.random.normal(k5, (B, SEQ_LENGTH + 1, 2), jnp.float32)     # unused by forward
    imgs_embed = jnp.zeros((B, SEQ_LENGTH + 1, HIDDEN), jnp.float32)          # overwritten by forward

    fwd = jax.jit(functools.partial(
        graph_recurrent_net_forward, seq_length=SEQ_LENGTH,
        alpha_g=ALPHA_G, alpha_feat=ALPHA_FEAT, n_heads=N_HEADS))

    out = fwd(params, data_x, a_hat, geo_seq, graph_embed, imgs_embed, extras, lengths)
    out = jax.block_until_ready(out)
    assert out.shape == (B, 1) and out.dtype == jnp.float32
    print("KERNEL_OK")
</pallas_src>

<mosaic_0001>
module attributes {stable_mosaic.version = 11 : i64} {
  func.func @kernel(%arg0: i32, %arg1: memref<1x16x1xi32, #tpu.memory_space<vmem>>, %arg2: memref<64x64xbf16, #tpu.memory_space<vmem>>, %arg3: memref<64x16xbf16, #tpu.memory_space<vmem>>, %arg4: memref<16x128xbf16, #tpu.memory_space<vmem>>, %arg5: memref<1x128xf32, #tpu.memory_space<vmem>>, %arg6: memref<128x128xbf16, #tpu.memory_space<vmem>>, %arg7: memref<1x128xf32, #tpu.memory_space<vmem>>, %arg8: memref<128x128xbf16, #tpu.memory_space<vmem>>, %arg9: memref<1x128xf32, #tpu.memory_space<vmem>>, %arg10: memref<16x128xf32, #tpu.memory_space<vmem>>, %arg11: memref<1x1x10xf32, #tpu.memory_space<vmem>>, %arg12: memref<10x128xf32, #tpu.memory_space<vmem>>, %arg13: memref<1x128xf32, #tpu.memory_space<vmem>>, %arg14: memref<1x1x16xf32, #tpu.memory_space<vmem>>, %arg15: memref<2x128x384xbf16, #tpu.memory_space<vmem>>, %arg16: memref<2x1x384xf32, #tpu.memory_space<vmem>>, %arg17: memref<2x128x128xbf16, #tpu.memory_space<vmem>>, %arg18: memref<2x1x128xf32, #tpu.memory_space<vmem>>, %arg19: memref<2x1x128xf32, #tpu.memory_space<vmem>>, %arg20: memref<2x1x128xf32, #tpu.memory_space<vmem>>, %arg21: memref<2x128x256xbf16, #tpu.memory_space<vmem>>, %arg22: memref<2x1x256xf32, #tpu.memory_space<vmem>>, %arg23: memref<2x256x128xbf16, #tpu.memory_space<vmem>>, %arg24: memref<2x1x128xf32, #tpu.memory_space<vmem>>, %arg25: memref<2x1x128xf32, #tpu.memory_space<vmem>>, %arg26: memref<2x1x128xf32, #tpu.memory_space<vmem>>, %arg27: memref<128x128xf32, #tpu.memory_space<vmem>>, %arg28: memref<1x128xf32, #tpu.memory_space<vmem>>, %arg29: memref<128x128xf32, #tpu.memory_space<vmem>>, %arg30: memref<1x128xf32, #tpu.memory_space<vmem>>, %arg31: memref<1x128xf32, #tpu.memory_space<vmem>>, %arg32: memref<1x1xf32, #tpu.memory_space<vmem>>, %arg33: memref<1x1x1xf32, #tpu.memory_space<vmem>>) attributes {dimension_semantics = [#tpu.dimension_semantics<parallel>], iteration_bounds = array<i64: 2>, scalar_prefetch = 0 : i64, scratch_operands = 0 : i64, tpu.core_type = #tpu.core_type<tc>, window_params = [{transform_indices = @transform_0, window_bounds = array<i64: 1, 16, 1>}, {pipeline_mode = #tpu.pipeline_mode<synchronous>, transform_indices = @transform_1, window_bounds = array<i64: 64, 64>}, {pipeline_mode = #tpu.pipeline_mode<synchronous>, transform_indices = @transform_2, window_bounds = array<i64: 64, 16>}, {pipeline_mode = #tpu.pipeline_mode<synchronous>, transform_indices = @transform_3, window_bounds = array<i64: 16, 128>}, {pipeline_mode = #tpu.pipeline_mode<synchronous>, transform_indices = @transform_4, window_bounds = array<i64: 1, 128>}, {pipeline_mode = #tpu.pipeline_mode<synchronous>, transform_indices = @transform_5, window_bounds = array<i64: 128, 128>}, {pipeline_mode = #tpu.pipeline_mode<synchronous>, transform_indices = @transform_6, window_bounds = array<i64: 1, 128>}, {pipeline_mode = #tpu.pipeline_mode<synchronous>, transform_indices = @transform_7, window_bounds = array<i64: 128, 128>}, {pipeline_mode = #tpu.pipeline_mode<synchronous>, transform_indices = @transform_8, window_bounds = array<i64: 1, 128>}, {pipeline_mode = #tpu.pipeline_mode<synchronous>, transform_indices = @transform_9, window_bounds = array<i64: 16, 128>}, {transform_indices = @transform_10, window_bounds = array<i64: 1, 1, 10>}, {pipeline_mode = #tpu.pipeline_mode<synchronous>, transform_indices = @transform_11, window_bounds = array<i64: 10, 128>}, {pipeline_mode = #tpu.pipeline_mode<synchronous>, transform_indices = @transform_12, window_bounds = array<i64: 1, 128>}, {transform_indices = @transform_13, window_bounds = array<i64: 1, 1, 16>}, {pipeline_mode = #tpu.pipeline_mode<synchronous>, transform_indices = @transform_14, window_bounds = array<i64: 2, 128, 384>}, {pipeline_mode = #tpu.pipeline_mode<synchronous>, transform_indices = @transform_15, window_bounds = array<i64: 2, 1, 384>}, {pipeline_mode = #tpu.pipeline_mode<synchronous>, transform_indices = @transform_16, window_bounds = array<i64: 2, 128, 128>}, {pipeline_mode = #tpu.pipeline_mode<synchronous>, transform_indices = @transform_17, window_bounds = array<i64: 2, 1, 128>}, {pipeline_mode = #tpu.pipeline_mode<synchronous>, transform_indices = @transform_18, window_bounds = array<i64: 2, 1, 128>}, {pipeline_mode = #tpu.pipeline_mode<synchronous>, transform_indices = @transform_19, window_bounds = array<i64: 2, 1, 128>}, {pipeline_mode = #tpu.pipeline_mode<synchronous>, transform_indices = @transform_20, window_bounds = array<i64: 2, 128, 256>}, {pipeline_mode = #tpu.pipeline_mode<synchronous>, transform_indices = @transform_21, window_bounds = array<i64: 2, 1, 256>}, {pipeline_mode = #tpu.pipeline_mode<synchronous>, transform_indices = @transform_22, window_bounds = array<i64: 2, 256, 128>}, {pipeline_mode = #tpu.pipeline_mode<synchronous>, transform_indices = @transform_23, window_bounds = array<i64: 2, 1, 128>}, {pipeline_mode = #tpu.pipeline_mode<synchronous>, transform_indices = @transform_24, window_bounds = array<i64: 2, 1, 128>}, {pipeline_mode = #tpu.pipeline_mode<synchronous>, transform_indices = @transform_25, window_bounds = array<i64: 2, 1, 128>}, {pipeline_mode = #tpu.pipeline_mode<synchronous>, transform_indices = @transform_26, window_bounds = array<i64: 128, 128>}, {pipeline_mode = #tpu.pipeline_mode<synchronous>, transform_indices = @transform_27, window_bounds = array<i64: 1, 128>}, {pipeline_mode = #tpu.pipeline_mode<synchronous>, transform_indices = @transform_28, window_bounds = array<i64: 128, 128>}, {pipeline_mode = #tpu.pipeline_mode<synchronous>, transform_indices = @transform_29, window_bounds = array<i64: 1, 128>}, {pipeline_mode = #tpu.pipeline_mode<synchronous>, transform_indices = @transform_30, window_bounds = array<i64: 1, 128>}, {pipeline_mode = #tpu.pipeline_mode<synchronous>, transform_indices = @transform_31, window_bounds = array<i64: 1, 1>}, {transform_indices = @transform_32, window_bounds = array<i64: 1, 1, 1>}]} {
    %c0 = arith.constant 0 : index
    %c0_0 = arith.constant 0 : index
    %0 = vector.load %arg2[%c0, %c0_0] : memref<64x64xbf16, #tpu.memory_space<vmem>>, vector<64x64xbf16>
    %c0_1 = arith.constant 0 : index
    %c0_2 = arith.constant 0 : index
    %1 = vector.load %arg3[%c0_1, %c0_2] : memref<64x16xbf16, #tpu.memory_space<vmem>>, vector<64x16xbf16>
    %c0_3 = arith.constant 0 : index
    %c0_4 = arith.constant 0 : index
    %2 = vector.load %arg4[%c0_3, %c0_4] : memref<16x128xbf16, #tpu.memory_space<vmem>>, vector<16x128xbf16>
    %c0_5 = arith.constant 0 : index
    %c0_6 = arith.constant 0 : index
    %3 = vector.load %arg5[%c0_5, %c0_6] : memref<1x128xf32, #tpu.memory_space<vmem>>, vector<1x128xf32>
    %cst = arith.constant dense<0.000000e+00> : vector<64x128xf32>
    %4 = tpu.matmul %1, %2, %cst {dimension_numbers = #tpu.dot_dimension_numbers<[1], [0], [0], [1], [0, 0, 1, 1], [], []>} : vector<64x16xbf16>, vector<16x128xbf16>, vector<64x128xf32> -> vector<64x128xf32>
    %5 = arith.truncf %4 : vector<64x128xf32> to vector<64x128xbf16>
    %cst_7 = arith.constant dense<0.000000e+00> : vector<64x128xf32>
    %6 = tpu.matmul %0, %5, %cst_7 {dimension_numbers = #tpu.dot_dimension_numbers<[1], [0], [0], [1], [0, 0, 1, 1], [], []>} : vector<64x64xbf16>, vector<64x128xbf16>, vector<64x128xf32> -> vector<64x128xf32>
    %7 = vector.broadcast %3 : vector<1x128xf32> to vector<64x128xf32>
    %8 = arith.addf %6, %7 : vector<64x128xf32>
    %cst_8 = arith.constant 0.000000e+00 : f32
    %9 = vector.broadcast %cst_8 : f32 to vector<64x128xf32>
    %10 = arith.maximumf %8, %9 : vector<64x128xf32>
    %11 = arith.truncf %10 : vector<64x128xf32> to vector<64x128xbf16>
    %c0_9 = arith.constant 0 : index
    %c0_10 = arith.constant 0 : index
    %12 = vector.load %arg6[%c0_9, %c0_10] : memref<128x128xbf16, #tpu.memory_space<vmem>>, vector<128x128xbf16>
    %c0_11 = arith.constant 0 : index
    %c0_12 = arith.constant 0 : index
    %13 = vector.load %arg7[%c0_11, %c0_12] : memref<1x128xf32, #tpu.memory_space<vmem>>, vector<1x128xf32>
    %cst_13 = arith.constant dense<0.000000e+00> : vector<64x128xf32>
    %14 = tpu.matmul %11, %12, %cst_13 {dimension_numbers = #tpu.dot_dimension_numbers<[1], [0], [0], [1], [0, 0, 1, 1], [], []>} : vector<64x128xbf16>, vector<128x128xbf16>, vector<64x128xf32> -> vector<64x128xf32>
    %15 = arith.truncf %14 : vector<64x128xf32> to vector<64x128xbf16>
    %cst_14 = arith.constant dense<0.000000e+00> : vector<64x128xf32>
    %16 = tpu.matmul %0, %15, %cst_14 {dimension_numbers = #tpu.dot_dimension_numbers<[1], [0], [0], [1], [0, 0, 1, 1], [], []>} : vector<64x64xbf16>, vector<64x128xbf16>, vector<64x128xf32> -> vector<64x128xf32>
    %17 = vector.broadcast %13 : vector<1x128xf32> to vector<64x128xf32>
    %18 = arith.addf %16, %17 : vector<64x128xf32>
    %cst_15 = arith.constant 0.000000e+00 : f32
    %19 = vector.broadcast %cst_15 : f32 to vector<64x128xf32>
    %20 = arith.maximumf %18, %19 : vector<64x128xf32>
    %21 = arith.truncf %20 : vector<64x128xf32> to vector<64x128xbf16>
    %c0_16 = arith.constant 0 : index
    %c0_17 = arith.constant 0 : index
    %22 = vector.load %arg8[%c0_16, %c0_17] : memref<128x128xbf16, #tpu.memory_space<vmem>>, vector<128x128xbf16>
    %c0_18 = arith.constant 0 : index
    %c0_19 = arith.constant 0 : index
    %23 = vector.load %arg9[%c0_18, %c0_19] : memref<1x128xf32, #tpu.memory_space<vmem>>, vector<1x128xf32>
    %cst_20 = arith.constant dense<0.000000e+00> : vector<64x128xf32>
    %24 = tpu.matmul %21, %22, %cst_20 {dimension_numbers = #tpu.dot_dimension_numbers<[1], [0], [0], [1], [0, 0, 1, 1], [], []>} : vector<64x128xbf16>, vector<128x128xbf16>, vector<64x128xf32> -> vector<64x128xf32>
    %25 = arith.truncf %24 : vector<64x128xf32> to vector<64x128xbf16>
    %cst_21 = arith.constant dense<0.000000e+00> : vector<64x128xf32>
    %26 = tpu.matmul %0, %25, %cst_21 {dimension_numbers = #tpu.dot_dimension_numbers<[1], [0], [0], [1], [0, 0, 1, 1], [], []>} : vector<64x64xbf16>, vector<64x128xbf16>, vector<64x128xf32> -> vector<64x128xf32>
    %27 = vector.broadcast %23 : vector<1x128xf32> to vector<64x128xf32>
    %28 = arith.addf %26, %27 : vector<64x128xf32>
    %cst_22 = arith.constant 0.000000e+00 : f32
    %29 = vector.broadcast %cst_22 : f32 to vector<64x128xf32>
    %30 = arith.maximumf %28, %29 : vector<64x128xf32>
    %31 = arith.truncf %30 : vector<64x128xf32> to vector<64x128xbf16>
    %c0_23 = arith.constant 0 : index
    %c0_24 = arith.constant 0 : index
    %32 = vector.load %arg8[%c0_23, %c0_24] : memref<128x128xbf16, #tpu.memory_space<vmem>>, vector<128x128xbf16>
    %c0_25 = arith.constant 0 : index
    %c0_26 = arith.constant 0 : index
    %33 = vector.load %arg9[%c0_25, %c0_26] : memref<1x128xf32, #tpu.memory_space<vmem>>, vector<1x128xf32>
    %cst_27 = arith.constant dense<0.000000e+00> : vector<64x128xf32>
    %34 = tpu.matmul %31, %32, %cst_27 {dimension_numbers = #tpu.dot_dimension_numbers<[1], [0], [0], [1], [0, 0, 1, 1], [], []>} : vector<64x128xbf16>, vector<128x128xbf16>, vector<64x128xf32> -> vector<64x128xf32>
    %35 = arith.truncf %34 : vector<64x128xf32> to vector<64x128xbf16>
    %cst_28 = arith.constant dense<0.000000e+00> : vector<64x128xf32>
    %36 = tpu.matmul %0, %35, %cst_28 {dimension_numbers = #tpu.dot_dimension_numbers<[1], [0], [0], [1], [0, 0, 1, 1], [], []>} : vector<64x64xbf16>, vector<64x128xbf16>, vector<64x128xf32> -> vector<64x128xf32>
    %37 = vector.broadcast %33 : vector<1x128xf32> to vector<64x128xf32>
    %38 = arith.addf %36, %37 : vector<64x128xf32>
    %c0_29 = arith.constant 0 : index
    %c0_30 = arith.constant 0 : index
    %c0_31 = arith.constant 0 : index
    %39 = vector.load %arg1[%c0_29, %c0_30, %c0_31] : memref<1x16x1xi32, #tpu.memory_space<vmem>>, vector<1x16x1xi32>
    %40 = vector.shape_cast %39 : vector<1x16x1xi32> to vector<16x1xi32>
    %41 = tpu.iota {dimensions = array<i32: 1>} : vector<16x64xi32>
    %42 = vector.broadcast %40 : vector<16x1xi32> to vector<16x64xi32>
    %43 = arith.cmpi eq, %41, %42 : vector<16x64xi32>
    %44 = arith.extui %43 : vector<16x64xi1> to vector<16x64xi32>
    %45 = arith.sitofp %44 : vector<16x64xi32> to vector<16x64xf32>
    %cst_32 = arith.constant dense<0.000000e+00> : vector<16x128xf32>
    %46 = tpu.matmul %45, %38, %cst_32 {dimension_numbers = #tpu.dot_dimension_numbers<[1], [0], [0], [1], [0, 0, 1, 1], [], []>} : vector<16x64xf32>, vector<64x128xf32>, vector<16x128xf32> -> vector<16x128xf32>
    %c0_33 = arith.constant 0 : index
    %c0_34 = arith.constant 0 : index
    %c0_35 = arith.constant 0 : index
    %47 = vector.load %arg11[%c0_33, %c0_34, %c0_35] : memref<1x1x10xf32, #tpu.memory_space<vmem>>, vector<1x1x10xf32>
    %48 = vector.shape_cast %47 : vector<1x1x10xf32> to vector<1x10xf32>
    %c0_36 = arith.constant 0 : index
    %c0_37 = arith.constant 0 : index
    %49 = vector.load %arg12[%c0_36, %c0_37] : memref<10x128xf32, #tpu.memory_space<vmem>>, vector<10x128xf32>
    %cst_38 = arith.constant dense<0.000000e+00> : vector<1x128xf32>
    %50 = tpu.matmul %48, %49, %cst_38 {dimension_numbers = #tpu.dot_dimension_numbers<[1], [0], [0], [1], [0, 0, 1, 1], [], []>} : vector<1x10xf32>, vector<10x128xf32>, vector<1x128xf32> -> vector<1x128xf32>
    %c0_39 = arith.constant 0 : index
    %c0_40 = arith.constant 0 : index
    %51 = vector.load %arg13[%c0_39, %c0_40] : memref<1x128xf32, #tpu.memory_space<vmem>>, vector<1x128xf32>
    %52 = arith.addf %50, %51 : vector<1x128xf32>
    %c0_41 = arith.constant 0 : index
    %c0_42 = arith.constant 0 : index
    %53 = vector.load %arg10[%c0_41, %c0_42] : memref<16x128xf32, #tpu.memory_space<vmem>>, vector<16x128xf32>
    %cst_43 = arith.constant 1.000000e+00 : f32
    %54 = vector.broadcast %cst_43 : f32 to vector<16x128xf32>
    %55 = arith.mulf %54, %46 : vector<16x128xf32>
    %56 = arith.addf %53, %55 : vector<16x128xf32>
    %57 = vector.broadcast %52 : vector<1x128xf32> to vector<16x128xf32>
    %58 = arith.addf %56, %57 : vector<16x128xf32>
    %c0_44 = arith.constant 0 : index
    %c0_45 = arith.constant 0 : index
    %c0_46 = arith.constant 0 : index
    %59 = vector.load %arg14[%c0_44, %c0_45, %c0_46] : memref<1x1x16xf32, #tpu.memory_space<vmem>>, vector<1x1x16xf32>
    %60 = vector.shape_cast %59 : vector<1x1x16xf32> to vector<1x16xf32>
    %61 = tpu.iota {dimensions = array<i32: 1>} : vector<1x128xi32>
    %c0_i32 = arith.constant 0 : i32
    %62 = vector.broadcast %c0_i32 : i32 to vector<1x128xi32>
    %63 = arith.cmpi sge, %61, %62 : vector<1x128xi32>
    %c32_i32 = arith.constant 32 : i32
    %64 = vector.broadcast %c32_i32 : i32 to vector<1x128xi32>
    %65 = arith.cmpi slt, %61, %64 : vector<1x128xi32>
    %66 = arith.andi %63, %65 : vector<1x128xi1>
    %67 = arith.extui %66 : vector<1x128xi1> to vector<1x128xi32>
    %68 = arith.sitofp %67 : vector<1x128xi32> to vector<1x128xf32>
    %c32_i32_47 = arith.constant 32 : i32
    %69 = vector.broadcast %c32_i32_47 : i32 to vector<1x128xi32>
    %70 = arith.cmpi sge, %61, %69 : vector<1x128xi32>
    %c64_i32 = arith.constant 64 : i32
    %71 = vector.broadcast %c64_i32 : i32 to vector<1x128xi32>
    %72 = arith.cmpi slt, %61, %71 : vector<1x128xi32>
    %73 = arith.andi %70, %72 : vector<1x128xi1>
    %74 = arith.extui %73 : vector<1x128xi1> to vector<1x128xi32>
    %75 = arith.sitofp %74 : vector<1x128xi32> to vector<1x128xf32>
    %c64_i32_48 = arith.constant 64 : i32
    %76 = vector.broadcast %c64_i32_48 : i32 to vector<1x128xi32>
    %77 = arith.cmpi sge, %61, %76 : vector<1x128xi32>
    %c96_i32 = arith.constant 96 : i32
    %78 = vector.broadcast %c96_i32 : i32 to vector<1x128xi32>
    %79 = arith.cmpi slt, %61, %78 : vector<1x128xi32>
    %80 = arith.andi %77, %79 : vector<1x128xi1>
    %81 = arith.extui %80 : vector<1x128xi1> to vector<1x128xi32>
    %82 = arith.sitofp %81 : vector<1x128xi32> to vector<1x128xf32>
    %c96_i32_49 = arith.constant 96 : i32
    %83 = vector.broadcast %c96_i32_49 : i32 to vector<1x128xi32>
    %84 = arith.cmpi sge, %61, %83 : vector<1x128xi32>
    %c128_i32 = arith.constant 128 : i32
    %85 = vector.broadcast %c128_i32 : i32 to vector<1x128xi32>
    %86 = arith.cmpi slt, %61, %85 : vector<1x128xi32>
    %87 = arith.andi %84, %86 : vector<1x128xi1>
    %88 = arith.extui %87 : vector<1x128xi1> to vector<1x128xi32>
    %89 = arith.sitofp %88 : vector<1x128xi32> to vector<1x128xf32>
    %90 = arith.truncf %58 : vector<16x128xf32> to vector<16x128xbf16>
    %c0_50 = arith.constant 0 : index
    %c0_51 = arith.constant 0 : index
    %c0_52 = arith.constant 0 : index
    %91 = vector.load %arg15[%c0_50, %c0_51, %c0_52] : memref<2x128x384xbf16, #tpu.memory_space<vmem>>, vector<1x128x384xbf16>
    %92 = vector.shape_cast %91 : vector<1x128x384xbf16> to vector<128x384xbf16>
    %cst_53 = arith.constant dense<0.000000e+00> : vector<16x384xf32>
    %93 = tpu.matmul %90, %92, %cst_53 {dimension_numbers = #tpu.dot_dimension_numbers<[1], [0], [0], [1], [0, 0, 1, 1], [], []>} : vector<16x128xbf16>, vector<128x384xbf16>, vector<16x384xf32> -> vector<16x384xf32>
    %c0_54 = arith.constant 0 : index
    %c0_55 = arith.constant 0 : index
    %c0_56 = arith.constant 0 : index
    %94 = vector.load %arg16[%c0_54, %c0_55, %c0_56] : memref<2x1x384xf32, #tpu.memory_space<vmem>>, vector<1x1x384xf32>
    %95 = vector.shape_cast %94 : vector<1x1x384xf32> to vector<1x384xf32>
    %96 = vector.broadcast %95 : vector<1x384xf32> to vector<16x384xf32>
    %97 = arith.addf %93, %96 : vector<16x384xf32>
    %98 = vector.extract_strided_slice %97 {offsets = [0, 0], sizes = [16, 128], strides = [1, 1]} : vector<16x384xf32> to vector<16x128xf32>
    %99 = vector.extract_strided_slice %97 {offsets = [0, 128], sizes = [16, 128], strides = [1, 1]} : vector<16x384xf32> to vector<16x128xf32>
    %100 = vector.extract_strided_slice %97 {offsets = [0, 256], sizes = [16, 128], strides = [1, 1]} : vector<16x384xf32> to vector<16x128xf32>
    %cst_57 = arith.constant 0.000000e+00 : f32
    %101 = vector.broadcast %cst_57 : f32 to vector<16x128xf32>
    %102 = vector.broadcast %68 : vector<1x128xf32> to vector<16x128xf32>
    %103 = arith.mulf %98, %102 : vector<16x128xf32>
    %cst_58 = arith.constant dense<0.000000e+00> : vector<16x16xf32>
    %104 = tpu.matmul %103, %99, %cst_58 {dimension_numbers = #tpu.dot_dimension_numbers<[1], [1], [0], [0], [0, 0, 1, 0], [], []>} : vector<16x128xf32>, vector<16x128xf32>, vector<16x16xf32> -> vector<16x16xf32>
    %cst_59 = arith.constant 0.176776692 : f32
    %105 = vector.broadcast %cst_59 : f32 to vector<16x16xf32>
    %106 = arith.mulf %104, %105 : vector<16x16xf32>
    %107 = vector.broadcast %60 : vector<1x16xf32> to vector<16x16xf32>
    %108 = arith.addf %106, %107 : vector<16x16xf32>
    %cst_60 = arith.constant dense<0xFF800000> : vector<16xf32>
    %109 = vector.multi_reduction <maximumf>, %108, %cst_60 [1] : vector<16x16xf32> to vector<16xf32>
    %110 = vector.shape_cast %109 : vector<16xf32> to vector<16x1xf32>
    %111 = vector.broadcast %110 : vector<16x1xf32> to vector<16x16xf32>
    %112 = arith.subf %108, %111 : vector<16x16xf32>
    %113 = math.exp %112 : vector<16x16xf32>
    %cst_61 = arith.constant dense<0.000000e+00> : vector<16xf32>
    %114 = vector.multi_reduction <add>, %113, %cst_61 [1] : vector<16x16xf32> to vector<16xf32>
    %115 = vector.shape_cast %114 : vector<16xf32> to vector<16x1xf32>
    %116 = tpu.reciprocal %115 {approx = true} : vector<16x1xf32> -> vector<16x1xf32>
    %117 = vector.broadcast %116 : vector<16x1xf32> to vector<16x16xf32>
    %118 = arith.mulf %113, %117 : vector<16x16xf32>
    %119 = vector.broadcast %68 : vector<1x128xf32> to vector<16x128xf32>
    %120 = arith.mulf %100, %119 : vector<16x128xf32>
    %cst_62 = arith.constant dense<0.000000e+00> : vector<16x128xf32>
    %121 = tpu.matmul %118, %120, %cst_62 {dimension_numbers = #tpu.dot_dimension_numbers<[1], [0], [0], [1], [0, 0, 1, 1], [], []>} : vector<16x16xf32>, vector<16x128xf32>, vector<16x128xf32> -> vector<16x128xf32>
    %122 = arith.addf %101, %121 : vector<16x128xf32>
    %123 = vector.broadcast %75 : vector<1x128xf32> to vector<16x128xf32>
    %124 = arith.mulf %98, %123 : vector<16x128xf32>
    %cst_63 = arith.constant dense<0.000000e+00> : vector<16x16xf32>
    %125 = tpu.matmul %124, %99, %cst_63 {dimension_numbers = #tpu.dot_dimension_numbers<[1], [1], [0], [0], [0, 0, 1, 0], [], []>} : vector<16x128xf32>, vector<16x128xf32>, vector<16x16xf32> -> vector<16x16xf32>
    %cst_64 = arith.constant 0.176776692 : f32
    %126 = vector.broadcast %cst_64 : f32 to vector<16x16xf32>
    %127 = arith.mulf %125, %126 : vector<16x16xf32>
    %128 = vector.broadcast %60 : vector<1x16xf32> to vector<16x16xf32>
    %129 = arith.addf %127, %128 : vector<16x16xf32>
    %cst_65 = arith.constant dense<0xFF800000> : vector<16xf32>
    %130 = vector.multi_reduction <maximumf>, %129, %cst_65 [1] : vector<16x16xf32> to vector<16xf32>
    %131 = vector.shape_cast %130 : vector<16xf32> to vector<16x1xf32>
    %132 = vector.broadcast %131 : vector<16x1xf32> to vector<16x16xf32>
    %133 = arith.subf %129, %132 : vector<16x16xf32>
    %134 = math.exp %133 : vector<16x16xf32>
    %cst_66 = arith.constant dense<0.000000e+00> : vector<16xf32>
    %135 = vector.multi_reduction <add>, %134, %cst_66 [1] : vector<16x16xf32> to vector<16xf32>
    %136 = vector.shape_cast %135 : vector<16xf32> to vector<16x1xf32>
    %137 = tpu.reciprocal %136 {approx = true} : vector<16x1xf32> -> vector<16x1xf32>
    %138 = vector.broadcast %137 : vector<16x1xf32> to vector<16x16xf32>
    %139 = arith.mulf %134, %138 : vector<16x16xf32>
    %140 = vector.broadcast %75 : vector<1x128xf32> to vector<16x128xf32>
    %141 = arith.mulf %100, %140 : vector<16x128xf32>
    %cst_67 = arith.constant dense<0.000000e+00> : vector<16x128xf32>
    %142 = tpu.matmul %139, %141, %cst_67 {dimension_numbers = #tpu.dot_dimension_numbers<[1], [0], [0], [1], [0, 0, 1, 1], [], []>} : vector<16x16xf32>, vector<16x128xf32>, vector<16x128xf32> -> vector<16x128xf32>
    %143 = arith.addf %122, %142 : vector<16x128xf32>
    %144 = vector.broadcast %82 : vector<1x128xf32> to vector<16x128xf32>
    %145 = arith.mulf %98, %144 : vector<16x128xf32>
    %cst_68 = arith.constant dense<0.000000e+00> : vector<16x16xf32>
    %146 = tpu.matmul %145, %99, %cst_68 {dimension_numbers = #tpu.dot_dimension_numbers<[1], [1], [0], [0], [0, 0, 1, 0], [], []>} : vector<16x128xf32>, vector<16x128xf32>, vector<16x16xf32> -> vector<16x16xf32>
    %cst_69 = arith.constant 0.176776692 : f32
    %147 = vector.broadcast %cst_69 : f32 to vector<16x16xf32>
    %148 = arith.mulf %146, %147 : vector<16x16xf32>
    %149 = vector.broadcast %60 : vector<1x16xf32> to vector<16x16xf32>
    %150 = arith.addf %148, %149 : vector<16x16xf32>
    %cst_70 = arith.constant dense<0xFF800000> : vector<16xf32>
    %151 = vector.multi_reduction <maximumf>, %150, %cst_70 [1] : vector<16x16xf32> to vector<16xf32>
    %152 = vector.shape_cast %151 : vector<16xf32> to vector<16x1xf32>
    %153 = vector.broadcast %152 : vector<16x1xf32> to vector<16x16xf32>
    %154 = arith.subf %150, %153 : vector<16x16xf32>
    %155 = math.exp %154 : vector<16x16xf32>
    %cst_71 = arith.constant dense<0.000000e+00> : vector<16xf32>
    %156 = vector.multi_reduction <add>, %155, %cst_71 [1] : vector<16x16xf32> to vector<16xf32>
    %157 = vector.shape_cast %156 : vector<16xf32> to vector<16x1xf32>
    %158 = tpu.reciprocal %157 {approx = true} : vector<16x1xf32> -> vector<16x1xf32>
    %159 = vector.broadcast %158 : vector<16x1xf32> to vector<16x16xf32>
    %160 = arith.mulf %155, %159 : vector<16x16xf32>
    %161 = vector.broadcast %82 : vector<1x128xf32> to vector<16x128xf32>
    %162 = arith.mulf %100, %161 : vector<16x128xf32>
    %cst_72 = arith.constant dense<0.000000e+00> : vector<16x128xf32>
    %163 = tpu.matmul %160, %162, %cst_72 {dimension_numbers = #tpu.dot_dimension_numbers<[1], [0], [0], [1], [0, 0, 1, 1], [], []>} : vector<16x16xf32>, vector<16x128xf32>, vector<16x128xf32> -> vector<16x128xf32>
    %164 = arith.addf %143, %163 : vector<16x128xf32>
    %165 = vector.broadcast %89 : vector<1x128xf32> to vector<16x128xf32>
    %166 = arith.mulf %98, %165 : vector<16x128xf32>
    %cst_73 = arith.constant dense<0.000000e+00> : vector<16x16xf32>
    %167 = tpu.matmul %166, %99, %cst_73 {dimension_numbers = #tpu.dot_dimension_numbers<[1], [1], [0], [0], [0, 0, 1, 0], [], []>} : vector<16x128xf32>, vector<16x128xf32>, vector<16x16xf32> -> vector<16x16xf32>
    %cst_74 = arith.constant 0.176776692 : f32
    %168 = vector.broadcast %cst_74 : f32 to vector<16x16xf32>
    %169 = arith.mulf %167, %168 : vector<16x16xf32>
    %170 = vector.broadcast %60 : vector<1x16xf32> to vector<16x16xf32>
    %171 = arith.addf %169, %170 : vector<16x16xf32>
    %cst_75 = arith.constant dense<0xFF800000> : vector<16xf32>
    %172 = vector.multi_reduction <maximumf>, %171, %cst_75 [1] : vector<16x16xf32> to vector<16xf32>
    %173 = vector.shape_cast %172 : vector<16xf32> to vector<16x1xf32>
    %174 = vector.broadcast %173 : vector<16x1xf32> to vector<16x16xf32>
    %175 = arith.subf %171, %174 : vector<16x16xf32>
    %176 = math.exp %175 : vector<16x16xf32>
    %cst_76 = arith.constant dense<0.000000e+00> : vector<16xf32>
    %177 = vector.multi_reduction <add>, %176, %cst_76 [1] : vector<16x16xf32> to vector<16xf32>
    %178 = vector.shape_cast %177 : vector<16xf32> to vector<16x1xf32>
    %179 = tpu.reciprocal %178 {approx = true} : vector<16x1xf32> -> vector<16x1xf32>
    %180 = vector.broadcast %179 : vector<16x1xf32> to vector<16x16xf32>
    %181 = arith.mulf %176, %180 : vector<16x16xf32>
    %182 = vector.broadcast %89 : vector<1x128xf32> to vector<16x128xf32>
    %183 = arith.mulf %100, %182 : vector<16x128xf32>
    %cst_77 = arith.constant dense<0.000000e+00> : vector<16x128xf32>
    %184 = tpu.matmul %181, %183, %cst_77 {dimension_numbers = #tpu.dot_dimension_numbers<[1], [0], [0], [1], [0, 0, 1, 1], [], []>} : vector<16x16xf32>, vector<16x128xf32>, vector<16x128xf32> -> vector<16x128xf32>
    %185 = arith.addf %164, %184 : vector<16x128xf32>
    %186 = arith.truncf %185 : vector<16x128xf32> to vector<16x128xbf16>
    %c0_78 = arith.constant 0 : index
    %c0_79 = arith.constant 0 : index
    %c0_80 = arith.constant 0 : index
    %187 = vector.load %arg17[%c0_78, %c0_79, %c0_80] : memref<2x128x128xbf16, #tpu.memory_space<vmem>>, vector<1x128x128xbf16>
    %188 = vector.shape_cast %187 : vector<1x128x128xbf16> to vector<128x128xbf16>
    %cst_81 = arith.constant dense<0.000000e+00> : vector<16x128xf32>
    %189 = tpu.matmul %186, %188, %cst_81 {dimension_numbers = #tpu.dot_dimension_numbers<[1], [0], [0], [1], [0, 0, 1, 1], [], []>} : vector<16x128xbf16>, vector<128x128xbf16>, vector<16x128xf32> -> vector<16x128xf32>
    %c0_82 = arith.constant 0 : index
    %c0_83 = arith.constant 0 : index
    %c0_84 = arith.constant 0 : index
    %190 = vector.load %arg18[%c0_82, %c0_83, %c0_84] : memref<2x1x128xf32, #tpu.memory_space<vmem>>, vector<1x1x128xf32>
    %191 = vector.shape_cast %190 : vector<1x1x128xf32> to vector<1x128xf32>
    %192 = vector.broadcast %191 : vector<1x128xf32> to vector<16x128xf32>
    %193 = arith.addf %189, %192 : vector<16x128xf32>
    %194 = arith.addf %58, %193 : vector<16x128xf32>
    %cst_85 = arith.constant dense<0.000000e+00> : vector<16xf32>
    %195 = vector.multi_reduction <add>, %194, %cst_85 [1] : vector<16x128xf32> to vector<16xf32>
    %196 = vector.shape_cast %195 : vector<16xf32> to vector<16x1xf32>
    %cst_86 = arith.constant 1.280000e+02 : f32
    %197 = vector.broadcast %cst_86 : f32 to vector<16x1xf32>
    %198 = arith.divf %196, %197 : vector<16x1xf32>
    %199 = vector.broadcast %198 : vector<16x1xf32> to vector<16x128xf32>
    %200 = arith.subf %194, %199 : vector<16x128xf32>
    %201 = arith.mulf %200, %200 : vector<16x128xf32>
    %cst_87 = arith.constant dense<0.000000e+00> : vector<16xf32>
    %202 = vector.multi_reduction <add>, %201, %cst_87 [1] : vector<16x128xf32> to vector<16xf32>
    %203 = vector.shape_cast %202 : vector<16xf32> to vector<16x1xf32>
    %cst_88 = arith.constant 1.280000e+02 : f32
    %204 = vector.broadcast %cst_88 : f32 to vector<16x1xf32>
    %205 = arith.divf %203, %204 : vector<16x1xf32>
    %206 = vector.broadcast %198 : vector<16x1xf32> to vector<16x128xf32>
    %207 = arith.subf %194, %206 : vector<16x128xf32>
    %cst_89 = arith.constant 9.99999974E-6 : f32
    %208 = vector.broadcast %cst_89 : f32 to vector<16x1xf32>
    %209 = arith.addf %205, %208 : vector<16x1xf32>
    %210 = math.rsqrt %209 : vector<16x1xf32>
    %211 = vector.broadcast %210 : vector<16x1xf32> to vector<16x128xf32>
    %212 = arith.mulf %207, %211 : vector<16x128xf32>
    %c0_90 = arith.constant 0 : index
    %c0_91 = arith.constant 0 : index
    %c0_92 = arith.constant 0 : index
    %213 = vector.load %arg19[%c0_90, %c0_91, %c0_92] : memref<2x1x128xf32, #tpu.memory_space<vmem>>, vector<1x1x128xf32>
    %214 = vector.shape_cast %213 : vector<1x1x128xf32> to vector<1x128xf32>
    %215 = vector.broadcast %214 : vector<1x128xf32> to vector<16x128xf32>
    %216 = arith.mulf %212, %215 : vector<16x128xf32>
    %c0_93 = arith.constant 0 : index
    %c0_94 = arith.constant 0 : index
    %c0_95 = arith.constant 0 : index
    %217 = vector.load %arg20[%c0_93, %c0_94, %c0_95] : memref<2x1x128xf32, #tpu.memory_space<vmem>>, vector<1x1x128xf32>
    %218 = vector.shape_cast %217 : vector<1x1x128xf32> to vector<1x128xf32>
    %219 = vector.broadcast %218 : vector<1x128xf32> to vector<16x128xf32>
    %220 = arith.addf %216, %219 : vector<16x128xf32>
    %221 = arith.truncf %220 : vector<16x128xf32> to vector<16x128xbf16>
    %c0_96 = arith.constant 0 : index
    %c0_97 = arith.constant 0 : index
    %c0_98 = arith.constant 0 : index
    %222 = vector.load %arg21[%c0_96, %c0_97, %c0_98] : memref<2x128x256xbf16, #tpu.memory_space<vmem>>, vector<1x128x256xbf16>
    %223 = vector.shape_cast %222 : vector<1x128x256xbf16> to vector<128x256xbf16>
    %cst_99 = arith.constant dense<0.000000e+00> : vector<16x256xf32>
    %224 = tpu.matmul %221, %223, %cst_99 {dimension_numbers = #tpu.dot_dimension_numbers<[1], [0], [0], [1], [0, 0, 1, 1], [], []>} : vector<16x128xbf16>, vector<128x256xbf16>, vector<16x256xf32> -> vector<16x256xf32>
    %c0_100 = arith.constant 0 : index
    %c0_101 = arith.constant 0 : index
    %c0_102 = arith.constant 0 : index
    %225 = vector.load %arg22[%c0_100, %c0_101, %c0_102] : memref<2x1x256xf32, #tpu.memory_space<vmem>>, vector<1x1x256xf32>
    %226 = vector.shape_cast %225 : vector<1x1x256xf32> to vector<1x256xf32>
    %227 = vector.broadcast %226 : vector<1x256xf32> to vector<16x256xf32>
    %228 = arith.addf %224, %227 : vector<16x256xf32>
    %cst_103 = arith.constant 0.000000e+00 : f32
    %229 = vector.broadcast %cst_103 : f32 to vector<16x256xf32>
    %230 = arith.maximumf %228, %229 : vector<16x256xf32>
    %231 = arith.truncf %230 : vector<16x256xf32> to vector<16x256xbf16>
    %c0_104 = arith.constant 0 : index
    %c0_105 = arith.constant 0 : index
    %c0_106 = arith.constant 0 : index
    %232 = vector.load %arg23[%c0_104, %c0_105, %c0_106] : memref<2x256x128xbf16, #tpu.memory_space<vmem>>, vector<1x256x128xbf16>
    %233 = vector.shape_cast %232 : vector<1x256x128xbf16> to vector<256x128xbf16>
    %cst_107 = arith.constant dense<0.000000e+00> : vector<16x128xf32>
    %234 = tpu.matmul %231, %233, %cst_107 {dimension_numbers = #tpu.dot_dimension_numbers<[1], [0], [0], [1], [0, 0, 1, 1], [], []>} : vector<16x256xbf16>, vector<256x128xbf16>, vector<16x128xf32> -> vector<16x128xf32>
    %c0_108 = arith.constant 0 : index
    %c0_109 = arith.constant 0 : index
    %c0_110 = arith.constant 0 : index
    %235 = vector.load %arg24[%c0_108, %c0_109, %c0_110] : memref<2x1x128xf32, #tpu.memory_space<vmem>>, vector<1x1x128xf32>
    %236 = vector.shape_cast %235 : vector<1x1x128xf32> to vector<1x128xf32>
    %237 = vector.broadcast %236 : vector<1x128xf32> to vector<16x128xf32>
    %238 = arith.addf %234, %237 : vector<16x128xf32>
    %239 = arith.addf %220, %238 : vector<16x128xf32>
    %cst_111 = arith.constant dense<0.000000e+00> : vector<16xf32>
    %240 = vector.multi_reduction <add>, %239, %cst_111 [1] : vector<16x128xf32> to vector<16xf32>
    %241 = vector.shape_cast %240 : vector<16xf32> to vector<16x1xf32>
    %cst_112 = arith.constant 1.280000e+02 : f32
    %242 = vector.broadcast %cst_112 : f32 to vector<16x1xf32>
    %243 = arith.divf %241, %242 : vector<16x1xf32>
    %244 = vector.broadcast %243 : vector<16x1xf32> to vector<16x128xf32>
    %245 = arith.subf %239, %244 : vector<16x128xf32>
    %246 = arith.mulf %245, %245 : vector<16x128xf32>
    %cst_113 = arith.constant dense<0.000000e+00> : vector<16xf32>
    %247 = vector.multi_reduction <add>, %246, %cst_113 [1] : vector<16x128xf32> to vector<16xf32>
    %248 = vector.shape_cast %247 : vector<16xf32> to vector<16x1xf32>
    %cst_114 = arith.constant 1.280000e+02 : f32
    %249 = vector.broadcast %cst_114 : f32 to vector<16x1xf32>
    %250 = arith.divf %248, %249 : vector<16x1xf32>
    %251 = vector.broadcast %243 : vector<16x1xf32> to vector<16x128xf32>
    %252 = arith.subf %239, %251 : vector<16x128xf32>
    %cst_115 = arith.constant 9.99999974E-6 : f32
    %253 = vector.broadcast %cst_115 : f32 to vector<16x1xf32>
    %254 = arith.addf %250, %253 : vector<16x1xf32>
    %255 = math.rsqrt %254 : vector<16x1xf32>
    %256 = vector.broadcast %255 : vector<16x1xf32> to vector<16x128xf32>
    %257 = arith.mulf %252, %256 : vector<16x128xf32>
    %c0_116 = arith.constant 0 : index
    %c0_117 = arith.constant 0 : index
    %c0_118 = arith.constant 0 : index
    %258 = vector.load %arg25[%c0_116, %c0_117, %c0_118] : memref<2x1x128xf32, #tpu.memory_space<vmem>>, vector<1x1x128xf32>
    %259 = vector.shape_cast %258 : vector<1x1x128xf32> to vector<1x128xf32>
    %260 = vector.broadcast %259 : vector<1x128xf32> to vector<16x128xf32>
    %261 = arith.mulf %257, %260 : vector<16x128xf32>
    %c0_119 = arith.constant 0 : index
    %c0_120 = arith.constant 0 : index
    %c0_121 = arith.constant 0 : index
    %262 = vector.load %arg26[%c0_119, %c0_120, %c0_121] : memref<2x1x128xf32, #tpu.memory_space<vmem>>, vector<1x1x128xf32>
    %263 = vector.shape_cast %262 : vector<1x1x128xf32> to vector<1x128xf32>
    %264 = vector.broadcast %263 : vector<1x128xf32> to vector<16x128xf32>
    %265 = arith.addf %261, %264 : vector<16x128xf32>
    %266 = arith.truncf %265 : vector<16x128xf32> to vector<16x128xbf16>
    %c1 = arith.constant 1 : index
    %c0_122 = arith.constant 0 : index
    %c0_123 = arith.constant 0 : index
    %267 = vector.load %arg15[%c1, %c0_122, %c0_123] : memref<2x128x384xbf16, #tpu.memory_space<vmem>>, vector<1x128x384xbf16>
    %268 = vector.shape_cast %267 : vector<1x128x384xbf16> to vector<128x384xbf16>
    %cst_124 = arith.constant dense<0.000000e+00> : vector<16x384xf32>
    %269 = tpu.matmul %266, %268, %cst_124 {dimension_numbers = #tpu.dot_dimension_numbers<[1], [0], [0], [1], [0, 0, 1, 1], [], []>} : vector<16x128xbf16>, vector<128x384xbf16>, vector<16x384xf32> -> vector<16x384xf32>
    %c1_125 = arith.constant 1 : index
    %c0_126 = arith.constant 0 : index
    %c0_127 = arith.constant 0 : index
    %270 = vector.load %arg16[%c1_125, %c0_126, %c0_127] : memref<2x1x384xf32, #tpu.memory_space<vmem>>, vector<1x1x384xf32>
    %271 = vector.shape_cast %270 : vector<1x1x384xf32> to vector<1x384xf32>
    %272 = vector.broadcast %271 : vector<1x384xf32> to vector<16x384xf32>
    %273 = arith.addf %269, %272 : vector<16x384xf32>
    %274 = vector.extract_strided_slice %273 {offsets = [0, 0], sizes = [16, 128], strides = [1, 1]} : vector<16x384xf32> to vector<16x128xf32>
    %275 = vector.extract_strided_slice %273 {offsets = [0, 128], sizes = [16, 128], strides = [1, 1]} : vector<16x384xf32> to vector<16x128xf32>
    %276 = vector.extract_strided_slice %273 {offsets = [0, 256], sizes = [16, 128], strides = [1, 1]} : vector<16x384xf32> to vector<16x128xf32>
    %cst_128 = arith.constant 0.000000e+00 : f32
    %277 = vector.broadcast %cst_128 : f32 to vector<16x128xf32>
    %278 = vector.broadcast %68 : vector<1x128xf32> to vector<16x128xf32>
    %279 = arith.mulf %274, %278 : vector<16x128xf32>
    %cst_129 = arith.constant dense<0.000000e+00> : vector<16x16xf32>
    %280 = tpu.matmul %279, %275, %cst_129 {dimension_numbers = #tpu.dot_dimension_numbers<[1], [1], [0], [0], [0, 0, 1, 0], [], []>} : vector<16x128xf32>, vector<16x128xf32>, vector<16x16xf32> -> vector<16x16xf32>
    %cst_130 = arith.constant 0.176776692 : f32
    %281 = vector.broadcast %cst_130 : f32 to vector<16x16xf32>
    %282 = arith.mulf %280, %281 : vector<16x16xf32>
    %283 = vector.broadcast %60 : vector<1x16xf32> to vector<16x16xf32>
    %284 = arith.addf %282, %283 : vector<16x16xf32>
    %cst_131 = arith.constant dense<0xFF800000> : vector<16xf32>
    %285 = vector.multi_reduction <maximumf>, %284, %cst_131 [1] : vector<16x16xf32> to vector<16xf32>
    %286 = vector.shape_cast %285 : vector<16xf32> to vector<16x1xf32>
    %287 = vector.broadcast %286 : vector<16x1xf32> to vector<16x16xf32>
    %288 = arith.subf %284, %287 : vector<16x16xf32>
    %289 = math.exp %288 : vector<16x16xf32>
    %cst_132 = arith.constant dense<0.000000e+00> : vector<16xf32>
    %290 = vector.multi_reduction <add>, %289, %cst_132 [1] : vector<16x16xf32> to vector<16xf32>
    %291 = vector.shape_cast %290 : vector<16xf32> to vector<16x1xf32>
    %292 = tpu.reciprocal %291 {approx = true} : vector<16x1xf32> -> vector<16x1xf32>
    %293 = vector.broadcast %292 : vector<16x1xf32> to vector<16x16xf32>
    %294 = arith.mulf %289, %293 : vector<16x16xf32>
    %295 = vector.broadcast %68 : vector<1x128xf32> to vector<16x128xf32>
    %296 = arith.mulf %276, %295 : vector<16x128xf32>
    %cst_133 = arith.constant dense<0.000000e+00> : vector<16x128xf32>
    %297 = tpu.matmul %294, %296, %cst_133 {dimension_numbers = #tpu.dot_dimension_numbers<[1], [0], [0], [1], [0, 0, 1, 1], [], []>} : vector<16x16xf32>, vector<16x128xf32>, vector<16x128xf32> -> vector<16x128xf32>
    %298 = arith.addf %277, %297 : vector<16x128xf32>
    %299 = vector.broadcast %75 : vector<1x128xf32> to vector<16x128xf32>
    %300 = arith.mulf %274, %299 : vector<16x128xf32>
    %cst_134 = arith.constant dense<0.000000e+00> : vector<16x16xf32>
    %301 = tpu.matmul %300, %275, %cst_134 {dimension_numbers = #tpu.dot_dimension_numbers<[1], [1], [0], [0], [0, 0, 1, 0], [], []>} : vector<16x128xf32>, vector<16x128xf32>, vector<16x16xf32> -> vector<16x16xf32>
    %cst_135 = arith.constant 0.176776692 : f32
    %302 = vector.broadcast %cst_135 : f32 to vector<16x16xf32>
    %303 = arith.mulf %301, %302 : vector<16x16xf32>
    %304 = vector.broadcast %60 : vector<1x16xf32> to vector<16x16xf32>
    %305 = arith.addf %303, %304 : vector<16x16xf32>
    %cst_136 = arith.constant dense<0xFF800000> : vector<16xf32>
    %306 = vector.multi_reduction <maximumf>, %305, %cst_136 [1] : vector<16x16xf32> to vector<16xf32>
    %307 = vector.shape_cast %306 : vector<16xf32> to vector<16x1xf32>
    %308 = vector.broadcast %307 : vector<16x1xf32> to vector<16x16xf32>
    %309 = arith.subf %305, %308 : vector<16x16xf32>
    %310 = math.exp %309 : vector<16x16xf32>
    %cst_137 = arith.constant dense<0.000000e+00> : vector<16xf32>
    %311 = vector.multi_reduction <add>, %310, %cst_137 [1] : vector<16x16xf32> to vector<16xf32>
    %312 = vector.shape_cast %311 : vector<16xf32> to vector<16x1xf32>
    %313 = tpu.reciprocal %312 {approx = true} : vector<16x1xf32> -> vector<16x1xf32>
    %314 = vector.broadcast %313 : vector<16x1xf32> to vector<16x16xf32>
    %315 = arith.mulf %310, %314 : vector<16x16xf32>
    %316 = vector.broadcast %75 : vector<1x128xf32> to vector<16x128xf32>
    %317 = arith.mulf %276, %316 : vector<16x128xf32>
    %cst_138 = arith.constant dense<0.000000e+00> : vector<16x128xf32>
    %318 = tpu.matmul %315, %317, %cst_138 {dimension_numbers = #tpu.dot_dimension_numbers<[1], [0], [0], [1], [0, 0, 1, 1], [], []>} : vector<16x16xf32>, vector<16x128xf32>, vector<16x128xf32> -> vector<16x128xf32>
    %319 = arith.addf %298, %318 : vector<16x128xf32>
    %320 = vector.broadcast %82 : vector<1x128xf32> to vector<16x128xf32>
    %321 = arith.mulf %274, %320 : vector<16x128xf32>
    %cst_139 = arith.constant dense<0.000000e+00> : vector<16x16xf32>
    %322 = tpu.matmul %321, %275, %cst_139 {dimension_numbers = #tpu.dot_dimension_numbers<[1], [1], [0], [0], [0, 0, 1, 0], [], []>} : vector<16x128xf32>, vector<16x128xf32>, vector<16x16xf32> -> vector<16x16xf32>
    %cst_140 = arith.constant 0.176776692 : f32
    %323 = vector.broadcast %cst_140 : f32 to vector<16x16xf32>
    %324 = arith.mulf %322, %323 : vector<16x16xf32>
    %325 = vector.broadcast %60 : vector<1x16xf32> to vector<16x16xf32>
    %326 = arith.addf %324, %325 : vector<16x16xf32>
    %cst_141 = arith.constant dense<0xFF800000> : vector<16xf32>
    %327 = vector.multi_reduction <maximumf>, %326, %cst_141 [1] : vector<16x16xf32> to vector<16xf32>
    %328 = vector.shape_cast %327 : vector<16xf32> to vector<16x1xf32>
    %329 = vector.broadcast %328 : vector<16x1xf32> to vector<16x16xf32>
    %330 = arith.subf %326, %329 : vector<16x16xf32>
    %331 = math.exp %330 : vector<16x16xf32>
    %cst_142 = arith.constant dense<0.000000e+00> : vector<16xf32>
    %332 = vector.multi_reduction <add>, %331, %cst_142 [1] : vector<16x16xf32> to vector<16xf32>
    %333 = vector.shape_cast %332 : vector<16xf32> to vector<16x1xf32>
    %334 = tpu.reciprocal %333 {approx = true} : vector<16x1xf32> -> vector<16x1xf32>
    %335 = vector.broadcast %334 : vector<16x1xf32> to vector<16x16xf32>
    %336 = arith.mulf %331, %335 : vector<16x16xf32>
    %337 = vector.broadcast %82 : vector<1x128xf32> to vector<16x128xf32>
    %338 = arith.mulf %276, %337 : vector<16x128xf32>
    %cst_143 = arith.constant dense<0.000000e+00> : vector<16x128xf32>
    %339 = tpu.matmul %336, %338, %cst_143 {dimension_numbers = #tpu.dot_dimension_numbers<[1], [0], [0], [1], [0, 0, 1, 1], [], []>} : vector<16x16xf32>, vector<16x128xf32>, vector<16x128xf32> -> vector<16x128xf32>
    %340 = arith.addf %319, %339 : vector<16x128xf32>
    %341 = vector.broadcast %89 : vector<1x128xf32> to vector<16x128xf32>
    %342 = arith.mulf %274, %341 : vector<16x128xf32>
    %cst_144 = arith.constant dense<0.000000e+00> : vector<16x16xf32>
    %343 = tpu.matmul %342, %275, %cst_144 {dimension_numbers = #tpu.dot_dimension_numbers<[1], [1], [0], [0], [0, 0, 1, 0], [], []>} : vector<16x128xf32>, vector<16x128xf32>, vector<16x16xf32> -> vector<16x16xf32>
    %cst_145 = arith.constant 0.176776692 : f32
    %344 = vector.broadcast %cst_145 : f32 to vector<16x16xf32>
    %345 = arith.mulf %343, %344 : vector<16x16xf32>
    %346 = vector.broadcast %60 : vector<1x16xf32> to vector<16x16xf32>
    %347 = arith.addf %345, %346 : vector<16x16xf32>
    %cst_146 = arith.constant dense<0xFF800000> : vector<16xf32>
    %348 = vector.multi_reduction <maximumf>, %347, %cst_146 [1] : vector<16x16xf32> to vector<16xf32>
    %349 = vector.shape_cast %348 : vector<16xf32> to vector<16x1xf32>
    %350 = vector.broadcast %349 : vector<16x1xf32> to vector<16x16xf32>
    %351 = arith.subf %347, %350 : vector<16x16xf32>
    %352 = math.exp %351 : vector<16x16xf32>
    %cst_147 = arith.constant dense<0.000000e+00> : vector<16xf32>
    %353 = vector.multi_reduction <add>, %352, %cst_147 [1] : vector<16x16xf32> to vector<16xf32>
    %354 = vector.shape_cast %353 : vector<16xf32> to vector<16x1xf32>
    %355 = tpu.reciprocal %354 {approx = true} : vector<16x1xf32> -> vector<16x1xf32>
    %356 = vector.broadcast %355 : vector<16x1xf32> to vector<16x16xf32>
    %357 = arith.mulf %352, %356 : vector<16x16xf32>
    %358 = vector.broadcast %89 : vector<1x128xf32> to vector<16x128xf32>
    %359 = arith.mulf %276, %358 : vector<16x128xf32>
    %cst_148 = arith.constant dense<0.000000e+00> : vector<16x128xf32>
    %360 = tpu.matmul %357, %359, %cst_148 {dimension_numbers = #tpu.dot_dimension_numbers<[1], [0], [0], [1], [0, 0, 1, 1], [], []>} : vector<16x16xf32>, vector<16x128xf32>, vector<16x128xf32> -> vector<16x128xf32>
    %361 = arith.addf %340, %360 : vector<16x128xf32>
    %362 = arith.truncf %361 : vector<16x128xf32> to vector<16x128xbf16>
    %c1_149 = arith.constant 1 : index
    %c0_150 = arith.constant 0 : index
    %c0_151 = arith.constant 0 : index
    %363 = vector.load %arg17[%c1_149, %c0_150, %c0_151] : memref<2x128x128xbf16, #tpu.memory_space<vmem>>, vector<1x128x128xbf16>
    %364 = vector.shape_cast %363 : vector<1x128x128xbf16> to vector<128x128xbf16>
    %cst_152 = arith.constant dense<0.000000e+00> : vector<16x128xf32>
    %365 = tpu.matmul %362, %364, %cst_152 {dimension_numbers = #tpu.dot_dimension_numbers<[1], [0], [0], [1], [0, 0, 1, 1], [], []>} : vector<16x128xbf16>, vector<128x128xbf16>, vector<16x128xf32> -> vector<16x128xf32>
    %c1_153 = arith.constant 1 : index
    %c0_154 = arith.constant 0 : index
    %c0_155 = arith.constant 0 : index
    %366 = vector.load %arg18[%c1_153, %c0_154, %c0_155] : memref<2x1x128xf32, #tpu.memory_space<vmem>>, vector<1x1x128xf32>
    %367 = vector.shape_cast %366 : vector<1x1x128xf32> to vector<1x128xf32>
    %368 = vector.broadcast %367 : vector<1x128xf32> to vector<16x128xf32>
    %369 = arith.addf %365, %368 : vector<16x128xf32>
    %370 = arith.addf %265, %369 : vector<16x128xf32>
    %cst_156 = arith.constant dense<0.000000e+00> : vector<16xf32>
    %371 = vector.multi_reduction <add>, %370, %cst_156 [1] : vector<16x128xf32> to vector<16xf32>
    %372 = vector.shape_cast %371 : vector<16xf32> to vector<16x1xf32>
    %cst_157 = arith.constant 1.280000e+02 : f32
    %373 = vector.broadcast %cst_157 : f32 to vector<16x1xf32>
    %374 = arith.divf %372, %373 : vector<16x1xf32>
    %375 = vector.broadcast %374 : vector<16x1xf32> to vector<16x128xf32>
    %376 = arith.subf %370, %375 : vector<16x128xf32>
    %377 = arith.mulf %376, %376 : vector<16x128xf32>
    %cst_158 = arith.constant dense<0.000000e+00> : vector<16xf32>
    %378 = vector.multi_reduction <add>, %377, %cst_158 [1] : vector<16x128xf32> to vector<16xf32>
    %379 = vector.shape_cast %378 : vector<16xf32> to vector<16x1xf32>
    %cst_159 = arith.constant 1.280000e+02 : f32
    %380 = vector.broadcast %cst_159 : f32 to vector<16x1xf32>
    %381 = arith.divf %379, %380 : vector<16x1xf32>
    %382 = vector.broadcast %374 : vector<16x1xf32> to vector<16x128xf32>
    %383 = arith.subf %370, %382 : vector<16x128xf32>
    %cst_160 = arith.constant 9.99999974E-6 : f32
    %384 = vector.broadcast %cst_160 : f32 to vector<16x1xf32>
    %385 = arith.addf %381, %384 : vector<16x1xf32>
    %386 = math.rsqrt %385 : vector<16x1xf32>
    %387 = vector.broadcast %386 : vector<16x1xf32> to vector<16x128xf32>
    %388 = arith.mulf %383, %387 : vector<16x128xf32>
    %c1_161 = arith.constant 1 : index
    %c0_162 = arith.constant 0 : index
    %c0_163 = arith.constant 0 : index
    %389 = vector.load %arg19[%c1_161, %c0_162, %c0_163] : memref<2x1x128xf32, #tpu.memory_space<vmem>>, vector<1x1x128xf32>
    %390 = vector.shape_cast %389 : vector<1x1x128xf32> to vector<1x128xf32>
    %391 = vector.broadcast %390 : vector<1x128xf32> to vector<16x128xf32>
    %392 = arith.mulf %388, %391 : vector<16x128xf32>
    %c1_164 = arith.constant 1 : index
    %c0_165 = arith.constant 0 : index
    %c0_166 = arith.constant 0 : index
    %393 = vector.load %arg20[%c1_164, %c0_165, %c0_166] : memref<2x1x128xf32, #tpu.memory_space<vmem>>, vector<1x1x128xf32>
    %394 = vector.shape_cast %393 : vector<1x1x128xf32> to vector<1x128xf32>
    %395 = vector.broadcast %394 : vector<1x128xf32> to vector<16x128xf32>
    %396 = arith.addf %392, %395 : vector<16x128xf32>
    %397 = arith.truncf %396 : vector<16x128xf32> to vector<16x128xbf16>
    %c1_167 = arith.constant 1 : index
    %c0_168 = arith.constant 0 : index
    %c0_169 = arith.constant 0 : index
    %398 = vector.load %arg21[%c1_167, %c0_168, %c0_169] : memref<2x128x256xbf16, #tpu.memory_space<vmem>>, vector<1x128x256xbf16>
    %399 = vector.shape_cast %398 : vector<1x128x256xbf16> to vector<128x256xbf16>
    %cst_170 = arith.constant dense<0.000000e+00> : vector<16x256xf32>
    %400 = tpu.matmul %397, %399, %cst_170 {dimension_numbers = #tpu.dot_dimension_numbers<[1], [0], [0], [1], [0, 0, 1, 1], [], []>} : vector<16x128xbf16>, vector<128x256xbf16>, vector<16x256xf32> -> vector<16x256xf32>
    %c1_171 = arith.constant 1 : index
    %c0_172 = arith.constant 0 : index
    %c0_173 = arith.constant 0 : index
    %401 = vector.load %arg22[%c1_171, %c0_172, %c0_173] : memref<2x1x256xf32, #tpu.memory_space<vmem>>, vector<1x1x256xf32>
    %402 = vector.shape_cast %401 : vector<1x1x256xf32> to vector<1x256xf32>
    %403 = vector.broadcast %402 : vector<1x256xf32> to vector<16x256xf32>
    %404 = arith.addf %400, %403 : vector<16x256xf32>
    %cst_174 = arith.constant 0.000000e+00 : f32
    %405 = vector.broadcast %cst_174 : f32 to vector<16x256xf32>
    %406 = arith.maximumf %404, %405 : vector<16x256xf32>
    %407 = arith.truncf %406 : vector<16x256xf32> to vector<16x256xbf16>
    %c1_175 = arith.constant 1 : index
    %c0_176 = arith.constant 0 : index
    %c0_177 = arith.constant 0 : index
    %408 = vector.load %arg23[%c1_175, %c0_176, %c0_177] : memref<2x256x128xbf16, #tpu.memory_space<vmem>>, vector<1x256x128xbf16>
    %409 = vector.shape_cast %408 : vector<1x256x128xbf16> to vector<256x128xbf16>
    %cst_178 = arith.constant dense<0.000000e+00> : vector<16x128xf32>
    %410 = tpu.matmul %407, %409, %cst_178 {dimension_numbers = #tpu.dot_dimension_numbers<[1], [0], [0], [1], [0, 0, 1, 1], [], []>} : vector<16x256xbf16>, vector<256x128xbf16>, vector<16x128xf32> -> vector<16x128xf32>
    %c1_179 = arith.constant 1 : index
    %c0_180 = arith.constant 0 : index
    %c0_181 = arith.constant 0 : index
    %411 = vector.load %arg24[%c1_179, %c0_180, %c0_181] : memref<2x1x128xf32, #tpu.memory_space<vmem>>, vector<1x1x128xf32>
    %412 = vector.shape_cast %411 : vector<1x1x128xf32> to vector<1x128xf32>
    %413 = vector.broadcast %412 : vector<1x128xf32> to vector<16x128xf32>
    %414 = arith.addf %410, %413 : vector<16x128xf32>
    %415 = arith.addf %396, %414 : vector<16x128xf32>
    %cst_182 = arith.constant dense<0.000000e+00> : vector<16xf32>
    %416 = vector.multi_reduction <add>, %415, %cst_182 [1] : vector<16x128xf32> to vector<16xf32>
    %417 = vector.shape_cast %416 : vector<16xf32> to vector<16x1xf32>
    %cst_183 = arith.constant 1.280000e+02 : f32
    %418 = vector.broadcast %cst_183 : f32 to vector<16x1xf32>
    %419 = arith.divf %417, %418 : vector<16x1xf32>
    %420 = vector.broadcast %419 : vector<16x1xf32> to vector<16x128xf32>
    %421 = arith.subf %415, %420 : vector<16x128xf32>
    %422 = arith.mulf %421, %421 : vector<16x128xf32>
    %cst_184 = arith.constant dense<0.000000e+00> : vector<16xf32>
    %423 = vector.multi_reduction <add>, %422, %cst_184 [1] : vector<16x128xf32> to vector<16xf32>
    %424 = vector.shape_cast %423 : vector<16xf32> to vector<16x1xf32>
    %cst_185 = arith.constant 1.280000e+02 : f32
    %425 = vector.broadcast %cst_185 : f32 to vector<16x1xf32>
    %426 = arith.divf %424, %425 : vector<16x1xf32>
    %427 = vector.broadcast %419 : vector<16x1xf32> to vector<16x128xf32>
    %428 = arith.subf %415, %427 : vector<16x128xf32>
    %cst_186 = arith.constant 9.99999974E-6 : f32
    %429 = vector.broadcast %cst_186 : f32 to vector<16x1xf32>
    %430 = arith.addf %426, %429 : vector<16x1xf32>
    %431 = math.rsqrt %430 : vector<16x1xf32>
    %432 = vector.broadcast %431 : vector<16x1xf32> to vector<16x128xf32>
    %433 = arith.mulf %428, %432 : vector<16x128xf32>
    %c1_187 = arith.constant 1 : index
    %c0_188 = arith.constant 0 : index
    %c0_189 = arith.constant 0 : index
    %434 = vector.load %arg25[%c1_187, %c0_188, %c0_189] : memref<2x1x128xf32, #tpu.memory_space<vmem>>, vector<1x1x128xf32>
    %435 = vector.shape_cast %434 : vector<1x1x128xf32> to vector<1x128xf32>
    %436 = vector.broadcast %435 : vector<1x128xf32> to vector<16x128xf32>
    %437 = arith.mulf %433, %436 : vector<16x128xf32>
    %c1_190 = arith.constant 1 : index
    %c0_191 = arith.constant 0 : index
    %c0_192 = arith.constant 0 : index
    %438 = vector.load %arg26[%c1_190, %c0_191, %c0_192] : memref<2x1x128xf32, #tpu.memory_space<vmem>>, vector<1x1x128xf32>
    %439 = vector.shape_cast %438 : vector<1x1x128xf32> to vector<1x128xf32>
    %440 = vector.broadcast %439 : vector<1x128xf32> to vector<16x128xf32>
    %441 = arith.addf %437, %440 : vector<16x128xf32>
    %442 = tpu.iota {dimensions = array<i32: 0>} : vector<16x1xi32>
    %c9_i32 = arith.constant 9 : i32
    %443 = vector.broadcast %c9_i32 : i32 to vector<16x1xi32>
    %444 = arith.cmpi slt, %442, %443 : vector<16x1xi32>
    %445 = arith.extui %444 : vector<16x1xi1> to vector<16x1xi32>
    %446 = arith.sitofp %445 : vector<16x1xi32> to vector<16x1xf32>
    %447 = vector.broadcast %446 : vector<16x1xf32> to vector<16x128xf32>
    %448 = arith.mulf %441, %447 : vector<16x128xf32>
    %cst_193 = arith.constant dense<0.000000e+00> : vector<128xf32>
    %449 = vector.multi_reduction <add>, %448, %cst_193 [0] : vector<16x128xf32> to vector<128xf32>
    %450 = vector.shape_cast %449 : vector<128xf32> to vector<1x128xf32>
    %cst_194 = arith.constant 0.111111112 : f32
    %451 = vector.broadcast %cst_194 : f32 to vector<1x128xf32>
    %452 = arith.mulf %450, %451 : vector<1x128xf32>
    %c0_195 = arith.constant 0 : index
    %c0_196 = arith.constant 0 : index
    %453 = vector.load %arg27[%c0_195, %c0_196] : memref<128x128xf32, #tpu.memory_space<vmem>>, vector<128x128xf32>
    %cst_197 = arith.constant dense<0.000000e+00> : vector<1x128xf32>
    %454 = tpu.matmul %452, %453, %cst_197 {dimension_numbers = #tpu.dot_dimension_numbers<[1], [0], [0], [1], [0, 0, 1, 1], [], []>} : vector<1x128xf32>, vector<128x128xf32>, vector<1x128xf32> -> vector<1x128xf32>
    %c0_198 = arith.constant 0 : index
    %c0_199 = arith.constant 0 : index
    %455 = vector.load %arg28[%c0_198, %c0_199] : memref<1x128xf32, #tpu.memory_space<vmem>>, vector<1x128xf32>
    %456 = arith.addf %454, %455 : vector<1x128xf32>
    %cst_200 = arith.constant 0.000000e+00 : f32
    %457 = vector.broadcast %cst_200 : f32 to vector<1x128xf32>
    %458 = arith.maximumf %456, %457 : vector<1x128xf32>
    %c0_201 = arith.constant 0 : index
    %c0_202 = arith.constant 0 : index
    %459 = vector.load %arg29[%c0_201, %c0_202] : memref<128x128xf32, #tpu.memory_space<vmem>>, vector<128x128xf32>
    %cst_203 = arith.constant dense<0.000000e+00> : vector<1x128xf32>
    %460 = tpu.matmul %458, %459, %cst_203 {dimension_numbers = #tpu.dot_dimension_numbers<[1], [0], [0], [1], [0, 0, 1, 1], [], []>} : vector<1x128xf32>, vector<128x128xf32>, vector<1x128xf32> -> vector<1x128xf32>
    %c0_204 = arith.constant 0 : index
    %c0_205 = arith.constant 0 : index
    %461 = vector.load %arg30[%c0_204, %c0_205] : memref<1x128xf32, #tpu.memory_space<vmem>>, vector<1x128xf32>
    %462 = arith.addf %460, %461 : vector<1x128xf32>
    %cst_206 = arith.constant 0.000000e+00 : f32
    %463 = vector.broadcast %cst_206 : f32 to vector<1x128xf32>
    %464 = arith.maximumf %462, %463 : vector<1x128xf32>
    %c0_207 = arith.constant 0 : index
    %c0_208 = arith.constant 0 : index
    %465 = vector.load %arg31[%c0_207, %c0_208] : memref<1x128xf32, #tpu.memory_space<vmem>>, vector<1x128xf32>
    %466 = arith.mulf %464, %465 : vector<1x128xf32>
    %cst_209 = arith.constant dense<0.000000e+00> : vector<1xf32>
    %467 = vector.multi_reduction <add>, %466, %cst_209 [1] : vector<1x128xf32> to vector<1xf32>
    %468 = vector.shape_cast %467 : vector<1xf32> to vector<1x1xf32>
    %c0_210 = arith.constant 0 : index
    %c0_211 = arith.constant 0 : index
    %469 = vector.load %arg32[%c0_210, %c0_211] : memref<1x1xf32, #tpu.memory_space<vmem>>, vector<1x1xf32>
    %470 = arith.addf %468, %469 : vector<1x1xf32>
    %cst_212 = arith.constant 0.000000e+00 : f32
    %471 = vector.broadcast %cst_212 : f32 to vector<1x1xf32>
    %472 = arith.maximumf %470, %471 : vector<1x1xf32>
    %c0_213 = arith.constant 0 : index
    %c0_214 = arith.constant 0 : index
    %c0_215 = arith.constant 0 : index
    %473 = vector.load %arg33[%c0_213, %c0_214, %c0_215] : memref<1x1x1xf32, #tpu.memory_space<vmem>>, vector<1x1x1xf32>
    %474 = vector.shape_cast %473 : vector<1x1x1xf32> to vector<1x1xf32>
    %475 = vector.shape_cast %472 : vector<1x1xf32> to vector<1x1x1xf32>
    tpu.vector_store %arg33[%c0_213, %c0_214, %c0_215], %475 {strides = array<i32>} : memref<1x1x1xf32, #tpu.memory_space<vmem>>, vector<1x1x1xf32>,
    return
  }
  func.func @transform_0(%arg0: i32) -> (i32, i32, i32) {
    %c0_i32 = arith.constant 0 : i32
    %c0_i32_0 = arith.constant 0 : i32
    %c0_i32_1 = arith.constant 0 : i32
    return %arg0, %c0_i32, %c0_i32_0 : i32, i32, i32
  }
  func.func @transform_1(%arg0: i32) -> (i32, i32) {
    %c0_i32 = arith.constant 0 : i32
    %c0_i32_0 = arith.constant 0 : i32
    %c0_i32_1 = arith.constant 0 : i32
    return %c0_i32, %c0_i32_0 : i32, i32
  }
  func.func @transform_2(%arg0: i32) -> (i32, i32) {
    %c0_i32 = arith.constant 0 : i32
    %c0_i32_0 = arith.constant 0 : i32
    %c0_i32_1 = arith.constant 0 : i32
    return %c0_i32, %c0_i32_0 : i32, i32
  }
  func.func @transform_3(%arg0: i32) -> (i32, i32) {
    %c0_i32 = arith.constant 0 : i32
    %c0_i32_0 = arith.constant 0 : i32
    %c0_i32_1 = arith.constant 0 : i32
    return %c0_i32, %c0_i32_0 : i32, i32
  }
  func.func @transform_4(%arg0: i32) -> (i32, i32) {
    %c0_i32 = arith.constant 0 : i32
    %c0_i32_0 = arith.constant 0 : i32
    %c0_i32_1 = arith.constant 0 : i32
    return %c0_i32, %c0_i32_0 : i32, i32
  }
  func.func @transform_5(%arg0: i32) -> (i32, i32) {
    %c0_i32 = arith.constant 0 : i32
    %c0_i32_0 = arith.constant 0 : i32
    %c0_i32_1 = arith.constant 0 : i32
    return %c0_i32, %c0_i32_0 : i32, i32
  }
  func.func @transform_6(%arg0: i32) -> (i32, i32) {
    %c0_i32 = arith.constant 0 : i32
    %c0_i32_0 = arith.constant 0 : i32
    %c0_i32_1 = arith.constant 0 : i32
    return %c0_i32, %c0_i32_0 : i32, i32
  }
  func.func @transform_7(%arg0: i32) -> (i32, i32) {
    %c0_i32 = arith.constant 0 : i32
    %c0_i32_0 = arith.constant 0 : i32
    %c0_i32_1 = arith.constant 0 : i32
    return %c0_i32, %c0_i32_0 : i32, i32
  }
  func.func @transform_8(%arg0: i32) -> (i32, i32) {
    %c0_i32 = arith.constant 0 : i32
    %c0_i32_0 = arith.constant 0 : i32
    %c0_i32_1 = arith.constant 0 : i32
    return %c0_i32, %c0_i32_0 : i32, i32
  }
  func.func @transform_9(%arg0: i32) -> (i32, i32) {
    %c0_i32 = arith.constant 0 : i32
    %c0_i32_0 = arith.constant 0 : i32
    %c0_i32_1 = arith.constant 0 : i32
    return %c0_i32, %c0_i32_0 : i32, i32
  }
  func.func @transform_10(%arg0: i32) -> (i32, i32, i32) {
    %c0_i32 = arith.constant 0 : i32
    %c0_i32_0 = arith.constant 0 : i32
    %c0_i32_1 = arith.constant 0 : i32
    return %arg0, %c0_i32, %c0_i32_0 : i32, i32, i32
  }
  func.func @transform_11(%arg0: i32) -> (i32, i32) {
    %c0_i32 = arith.constant 0 : i32
    %c0_i32_0 = arith.constant 0 : i32
    %c0_i32_1 = arith.constant 0 : i32
    return %c0_i32, %c0_i32_0 : i32, i32
  }
  func.func @transform_12(%arg0: i32) -> (i32, i32) {
    %c0_i32 = arith.constant 0 : i32
    %c0_i32_0 = arith.constant 0 : i32
    %c0_i32_1 = arith.constant 0 : i32
    return %c0_i32, %c0_i32_0 : i32, i32
  }
  func.func @transform_13(%arg0: i32) -> (i32, i32, i32) {
    %c0_i32 = arith.constant 0 : i32
    %c0_i32_0 = arith.constant 0 : i32
    %c0_i32_1 = arith.constant 0 : i32
    return %arg0, %c0_i32, %c0_i32_0 : i32, i32, i32
  }
  func.func @transform_14(%arg0: i32) -> (i32, i32, i32) {
    %c0_i32 = arith.constant 0 : i32
    %c0_i32_0 = arith.constant 0 : i32
    %c0_i32_1 = arith.constant 0 : i32
    %c0_i32_2 = arith.constant 0 : i32
    return %c0_i32, %c0_i32_0, %c0_i32_1 : i32, i32, i32
  }
  func.func @transform_15(%arg0: i32) -> (i32, i32, i32) {
    %c0_i32 = arith.constant 0 : i32
    %c0_i32_0 = arith.constant 0 : i32
    %c0_i32_1 = arith.constant 0 : i32
    %c0_i32_2 = arith.constant 0 : i32
    return %c0_i32, %c0_i32_0, %c0_i32_1 : i32, i32, i32
  }
  func.func @transform_16(%arg0: i32) -> (i32, i32, i32) {
    %c0_i32 = arith.constant 0 : i32
    %c0_i32_0 = arith.constant 0 : i32
    %c0_i32_1 = arith.constant 0 : i32
    %c0_i32_2 = arith.constant 0 : i32
    return %c0_i32, %c0_i32_0, %c0_i32_1 : i32, i32, i32
  }
  func.func @transform_17(%arg0: i32) -> (i32, i32, i32) {
    %c0_i32 = arith.constant 0 : i32
    %c0_i32_0 = arith.constant 0 : i32
    %c0_i32_1 = arith.constant 0 : i32
    %c0_i32_2 = arith.constant 0 : i32
    return %c0_i32, %c0_i32_0, %c0_i32_1 : i32, i32, i32
  }
  func.func @transform_18(%arg0: i32) -> (i32, i32, i32) {
    %c0_i32 = arith.constant 0 : i32
    %c0_i32_0 = arith.constant 0 : i32
    %c0_i32_1 = arith.constant 0 : i32
    %c0_i32_2 = arith.constant 0 : i32
    return %c0_i32, %c0_i32_0, %c0_i32_1 : i32, i32, i32
  }
  func.func @transform_19(%arg0: i32) -> (i32, i32, i32) {
    %c0_i32 = arith.constant 0 : i32
    %c0_i32_0 = arith.constant 0 : i32
    %c0_i32_1 = arith.constant 0 : i32
    %c0_i32_2 = arith.constant 0 : i32
    return %c0_i32, %c0_i32_0, %c0_i32_1 : i32, i32, i32
  }
  func.func @transform_20(%arg0: i32) -> (i32, i32, i32) {
    %c0_i32 = arith.constant 0 : i32
    %c0_i32_0 = arith.constant 0 : i32
    %c0_i32_1 = arith.constant 0 : i32
    %c0_i32_2 = arith.constant 0 : i32
    return %c0_i32, %c0_i32_0, %c0_i32_1 : i32, i32, i32
  }
  func.func @transform_21(%arg0: i32) -> (i32, i32, i32) {
    %c0_i32 = arith.constant 0 : i32
    %c0_i32_0 = arith.constant 0 : i32
    %c0_i32_1 = arith.constant 0 : i32
    %c0_i32_2 = arith.constant 0 : i32
    return %c0_i32, %c0_i32_0, %c0_i32_1 : i32, i32, i32
  }
  func.func @transform_22(%arg0: i32) -> (i32, i32, i32) {
    %c0_i32 = arith.constant 0 : i32
    %c0_i32_0 = arith.constant 0 : i32
    %c0_i32_1 = arith.constant 0 : i32
    %c0_i32_2 = arith.constant 0 : i32
    return %c0_i32, %c0_i32_0, %c0_i32_1 : i32, i32, i32
  }
  func.func @transform_23(%arg0: i32) -> (i32, i32, i32) {
    %c0_i32 = arith.constant 0 : i32
    %c0_i32_0 = arith.constant 0 : i32
    %c0_i32_1 = arith.constant 0 : i32
    %c0_i32_2 = arith.constant 0 : i32
    return %c0_i32, %c0_i32_0, %c0_i32_1 : i32, i32, i32
  }
  func.func @transform_24(%arg0: i32) -> (i32, i32, i32) {
    %c0_i32 = arith.constant 0 : i32
    %c0_i32_0 = arith.constant 0 : i32
    %c0_i32_1 = arith.constant 0 : i32
    %c0_i32_2 = arith.constant 0 : i32
    return %c0_i32, %c0_i32_0, %c0_i32_1 : i32, i32, i32
  }
  func.func @transform_25(%arg0: i32) -> (i32, i32, i32) {
    %c0_i32 = arith.constant 0 : i32
    %c0_i32_0 = arith.constant 0 : i32
    %c0_i32_1 = arith.constant 0 : i32
    %c0_i32_2 = arith.constant 0 : i32
    return %c0_i32, %c0_i32_0, %c0_i32_1 : i32, i32, i32
  }
  func.func @transform_26(%arg0: i32) -> (i32, i32) {
    %c0_i32 = arith.constant 0 : i32
    %c0_i32_0 = arith.constant 0 : i32
    %c0_i32_1 = arith.constant 0 : i32
    return %c0_i32, %c0_i32_0 : i32, i32
  }
  func.func @transform_27(%arg0: i32) -> (i32, i32) {
    %c0_i32 = arith.constant 0 : i32
    %c0_i32_0 = arith.constant 0 : i32
    %c0_i32_1 = arith.constant 0 : i32
    return %c0_i32, %c0_i32_0 : i32, i32
  }
  func.func @transform_28(%arg0: i32) -> (i32, i32) {
    %c0_i32 = arith.constant 0 : i32
    %c0_i32_0 = arith.constant 0 : i32
    %c0_i32_1 = arith.constant 0 : i32
    return %c0_i32, %c0_i32_0 : i32, i32
  }
  func.func @transform_29(%arg0: i32) -> (i32, i32) {
    %c0_i32 = arith.constant 0 : i32
    %c0_i32_0 = arith.constant 0 : i32
    %c0_i32_1 = arith.constant 0 : i32
    return %c0_i32, %c0_i32_0 : i32, i32
  }
  func.func @transform_30(%arg0: i32) -> (i32, i32) {
    %c0_i32 = arith.constant 0 : i32
    %c0_i32_0 = arith.constant 0 : i32
    %c0_i32_1 = arith.constant 0 : i32
    return %c0_i32, %c0_i32_0 : i32, i32
  }
  func.func @transform_31(%arg0: i32) -> (i32, i32) {
    %c0_i32 = arith.constant 0 : i32
    %c0_i32_0 = arith.constant 0 : i32
    %c0_i32_1 = arith.constant 0 : i32
    return %c0_i32, %c0_i32_0 : i32, i32
  }
  func.func @transform_32(%arg0: i32) -> (i32, i32, i32) {
    %c0_i32 = arith.constant 0 : i32
    %c0_i32_0 = arith.constant 0 : i32
    %c0_i32_1 = arith.constant 0 : i32
    return %arg0, %c0_i32, %c0_i32_0 : i32, i32, i32
  }
}

</mosaic_0001>

<bundles_post_ra>
// kernel: graph_recurrent_net_forward.1
= control target key start
LH: loop header
LB: loop body
LE: loop exit
PB: predicated region body
PF: predicated region fallthrough
CT: control target
= control target key end

     0   :  { %s6931_s6 = smov 1   ;;  %s6932_s10 = smov 2   ;;  %s7827_s0 = inlined_call_operand.smem [shape: u32[33], index: -1, kind: input, shape index: {}] }
   0x1   :  { %s6976_s5 = sld [smem:[%s7827_s0]]   ;;  %s6933_s14 = smov 3  }
   0x2   :  { %s6981_s9 = sld [smem:[%s7827_s0 + %s6931_s6]]   ;;  %s6934_s18 = smov 4  }
   0x3   :  { %s6986_s13 = sld [smem:[%s7827_s0 + %s6932_s10]]   ;;  %s6935_s22 = smov 5  }
   0x4   :  { %s6991_s17 = sld [smem:[%s7827_s0 + %s6933_s14]]   ;;  %s6936_s26 = smov 6  }
   0x5   :  { %s6996_s21 = sld [smem:[%s7827_s0 + %s6934_s18]]   ;;  %s6937_s30 = smov 7  }
   0x6   :  { %s7001_s25 = sld [smem:[%s7827_s0 + %s6935_s22]]   ;;  %s6938_s4 = smov 8  }
   0x7   :  { %s7006_s29 = sld [smem:[%s7827_s0 + %s6936_s26]]   ;;  %s6939_s10 = smov 9  }
   0x8   :  { %s7011_s3 = sld [smem:[%s7827_s0 + %s6937_s30]]   ;;  %s6940_s15 = smov 10  }
   0x9   :  { %s7016_s8 = sld [smem:[%s7827_s0 + %s6938_s4]]   ;;  %s6941_s20 = smov 11  }
   0xa   :  { %s7021_s14 = sld [smem:[%s7827_s0 + %s6939_s10]]   ;;  %s6942_s26 = smov 12  }
   0xb   :  { %s7026_s19 = sld [smem:[%s7827_s0 + %s6940_s15]]   ;;  %s6943_s1 = smov 13  }
   0xc   :  { %s7031_s24 = sld [smem:[%s7827_s0 + %s6941_s20]]   ;;  %s6944_s7 = smov 14  }
   0xd   :  { %s7036_s30 = sld [smem:[%s7827_s0 + %s6942_s26]]   ;;  %s6945_s15 = smov 15  }
   0xe   :  { %7843 = sst [smem:[#allocation3_spill]] %s7011_s3  ;;  %s6946_s22 = smov 16  }
   0xf   :  { %s7041_s6 = sld [smem:[%s7827_s0 + %s6943_s1]]   ;;  %s6947_s28 = smov 17  }
  0x10   :  { %s7046_s12 = sld [smem:[%s7827_s0 + %s6944_s7]]   ;;  %s6948_s7 = smov 18  }
  0x11   :  { %s7051_s20 = sld [smem:[%s7827_s0 + %s6945_s15]]   ;;  %s6949_s15 = smov 19  }
  0x12   :  { %s7056_s27 = sld [smem:[%s7827_s0 + %s6946_s22]]   ;;  %s6950_s22 = smov 20  }
  0x13   :  { %s7061_s4 = sld [smem:[%s7827_s0 + %s6947_s28]]   ;;  %s6951_s28 = smov 21  }
  0x14   :  { %s6962_s23 = smov 32  }
  0x15   :  { %7844 = sst [smem:[#allocation4_spill]] %s7041_s6 }
  0x16   :  { %s7066_s6 = sld [smem:[%s7827_s0 + %s6948_s7]]   ;;  %s6952_s7 = smov 22  }
  0x17   :  { %7845 = sst [smem:[#allocation5_spill]] %s7051_s20 }
  0x18   :  { %7846 = sst [smem:[#allocation6_spill]] %s7056_s27 }
  0x19   :  { %7847 = sst [smem:[#allocation7_spill]] %s7061_s4 }
  0x1a   :  { %s7071_s20 = sld [smem:[%s7827_s0 + %s6949_s15]]   ;;  %s6953_s15 = smov 23  }
  0x1b   :  { %s7076_s27 = sld [smem:[%s7827_s0 + %s6950_s22]]   ;;  %s6954_s22 = smov 24  }
  0x1c   :  { %7848 = sst [smem:[#allocation8_spill]] %s7066_s6 }
  0x1d   :  { %s7081_s4 = sld [smem:[%s7827_s0 + %s6951_s28]]   ;;  %s6955_s28 = smov 25  }
  0x1e   :  { %s7086_s6 = sld [smem:[%s7827_s0 + %s6952_s7]]   ;;  %s6956_s7 = smov 26  }
  0x20   :  { %7849 = sst [smem:[#allocation9_spill]] %s7071_s20 }
  0x21   :  { %7850 = sst [smem:[#allocation10_spill]] %s7076_s27 }
  0x22   :  { %s7091_s20 = sld [smem:[%s7827_s0 + %s6953_s15]]   ;;  %s6957_s15 = smov 27  }
  0x23   :  { %7851 = sst [smem:[#allocation11_spill]] %s7081_s4 }
  0x24   :  { %7852 = sst [smem:[#allocation12_spill]] %s7086_s6 }
  0x25   :  { %s7096_s27 = sld [smem:[%s7827_s0 + %s6954_s22]]   ;;  %s6958_s22 = smov 28  }
  0x26   :  { %s7101_s4 = sld [smem:[%s7827_s0 + %s6955_s28]]   ;;  %s6959_s28 = smov 29  }
  0x27   :  { %s7106_s6 = sld [smem:[%s7827_s0 + %s6956_s7]]   ;;  %s6960_s7 = smov 30  }
  0x28   :  { %7853 = sst [smem:[#allocation13_spill]] %s7091_s20 }
  0x29   :  { %s7111_s20 = sld [smem:[%s7827_s0 + %s6957_s15]]   ;;  %s6961_s15 = smov 31  }
  0x2b   :  { %7854 = sst [smem:[#allocation14_spill]] %s7096_s27 }
  0x2c   :  { %7855 = sst [smem:[#allocation15_spill]] %s7101_s4 }
  0x2d   :  { %7856 = sst [smem:[#allocation16_spill]] %s7106_s6 }
  0x2e   :  { %s7116_s27 = sld [smem:[%s7827_s0 + %s6958_s22]]  }
  0x2f   :  { %7857 = sst [smem:[#allocation17_spill]] %s7111_s20 }
  0x30   :  { %s7121_s4 = sld [smem:[%s7827_s0 + %s6959_s28]]   ;;  %s7136_s28 = smov 0  }
  0x31   :  { %s7126_s6 = sld [smem:[%s7827_s0 + %s6960_s7]]  }
  0x32   :  { %s5437_s20 = sld [smem:[%s7827_s0 + %s6961_s15]]  }
  0x34   :  { %7858 = sst [smem:[#allocation18_spill]] %s7116_s27 }
  0x35   :  { %s7134_s27 = sld [smem:[%s7827_s0 + %s6962_s23]]  }
  0x38   :  { %v70_v0 = vstv %s5437_s20 }
  0x39   :  { %71 = vst [vmem:[#allocation2] sm:$0x1] %v70_v0 }
  0x3a LB: > { %s7859_s3 = sld [smem:[#allocation3_spill]]  ;;  %s5439_s1 = sadd.s32 4294967295, %s6929_s28   ;;  %s6929_s28 = sphi %s7136_s28, %s77_s28  }
  0x3b   : > { %p5443_p0 = scmp.ge.s32.totalorder %s6929_s28, 1  ;;  %p913_p1 = scmp.lt.s32.totalorder %s6929_s28, 3 }
  0x3d   : > { %p914_p2 = pnand %p5443_p0, %p913_p1 }
  0x3e   : > { %v6657_v1 = vld [vmem:[%s6991_s17] sm:$0xff] (!%p914_p2)   ;;  %vm1059_vm0 = vcmask (!%p914_p2), 130048   ;;  %v6659_v3 = vld [vmem:[%s6986_s13 + $0x8] sm:$0xff] (!%p914_p2)   ;;  %v6660_v4 = vld [vmem:[%s6986_s13 + $0x10] sm:$0xff] (!%p914_p2)   ;;  %vm1167_vm1 = vcmask (!%p914_p2), 523264   ;;  %p999_p3 = scmp.lt.s32.totalorder (!%p914_p2), %s5439_s1, 1 }
  0x3f   : > { %917 = sbr.rel (%p914_p2) target bundleno = 8365 (0x20ad), region = 148  ;;  %v6658_v2 = vld [vmem:[%s6986_s13] sm:$0xff] (!%p914_p2)   ;;  %6033 = vmatprep.subr.bf16.mxu0 (!%p914_p2), %v6657_v1  ;;  %v6661_v5 = vld [vmem:[%s6986_s13 + $0x18] sm:$0xff] (!%p914_p2)   ;;  %v6667_v8 = vld [vmem:[%s7001_s25 + $0x8] sm:$0xff] (!%p914_p2)   ;;  %vm1930_vm3 = vcmask (!%p914_p2), 1041408   ;;  %vm6966_vm5 = vmmov (!%p914_p2), 1  }
  0x40   : > { %6034 = vmatpush3.bf16.msra.mxu0 (!%p914_p2), %v6657_v1  ;;  %6035 = vmatprep.mubr.msk.bf16.mxu0 (!%p914_p2), %vm1059_vm0, %v6658_v2  ;;  %v7154_v6 = vld [vmem:[%s6981_s9] sm:$0xff] (!%p914_p2)   ;;  %v6668_v9 = vld [vmem:[%s7001_s25 + $0x10] sm:$0xff] (!%p914_p2)   ;;  %v6669_v10 = vld [vmem:[%s7001_s25 + $0x18] sm:$0xff] (!%p914_p2)   ;;  %vm6967_vm7 = vmmov (!%p914_p2), 0   ;;  %vm1926_vm8 = vcmask (!%p914_p2), 80896   ;;  %s7860_s7 = sld [smem:[#allocation5_spill]] (!%p914_p2) }
  0x41   : > { %6051 = vmatprep.mubr.msk.bf16.mxu1 (!%p914_p2), %vm1167_vm1, %v7154_v6  ;;  %v6666_v7 = vld [vmem:[%s7001_s25] sm:$0xff] (!%p914_p2)   ;;  %v6671_v12 = vld [vmem:[%s7001_s25 + $0x28] sm:$0xff] (!%p914_p2)   ;;  %v7168_v26 = vld [vmem:[%s6981_s9 + $0x10] sm:$0xff] (!%p914_p2)   ;;  %s7861_s10 = sld [smem:[#allocation4_spill]] (!%p914_p2)  ;;  %s7862_s15 = sld [smem:[#allocation6_spill]] (!%p914_p2) }
  0x42   : > { %6059 = vmatprep.subr.bf16.mxu0 (!%p914_p2), %v6666_v7  ;;  %v6670_v11 = vld [vmem:[%s7001_s25 + $0x20] sm:$0xff] (!%p914_p2)   ;;  %v7165_v25 = vld [vmem:[%s6981_s9 + $0x8] sm:$0xff] (!%p914_p2)   ;;  %v7175_v27 = vld [vmem:[%s6981_s9 + $0x18] sm:$0xff] (!%p914_p2)   ;;  %s7863_s16 = sld [smem:[#allocation7_spill]] (!%p914_p2)  ;;  %s7864_s18 = sld [smem:[#allocation10_spill]] (!%p914_p2) }
  0x43   : > { %6036 = vmatmul.mubr.msk.bf16.vlgmr.msra.gmra.mrb[0].mxu0 (!%p914_p2), %vm1059_vm0, %v6659_v3  ;;  %v6672_v28 = vld [vmem:[%s7001_s25 + $0x30] sm:$0xff] (!%p914_p2)   ;;  %v6673_v29 = vld [vmem:[%s7001_s25 + $0x38] sm:$0xff] (!%p914_p2)   ;;  %v5455_v30 = vld [vmem:[%s6996_s21] ss:$0 sm:$0xff] (!%p914_p2)  ;;  %s7865_s23 = sld [smem:[#allocation12_spill]] (!%p914_p2)  ;;  %s7866_s22 = sld [smem:[#allocation8_spill]] (!%p914_p2) }
  0x44   : > { %6039 = vmatprep.mubr.msk.bf16.mxu0 (!%p914_p2), %vm1059_vm0, %v6660_v4  ;;  %6060 = vmatpush3.bf16.msra.mxu0 (!%p914_p2), %v6666_v7  ;;  %vm6485_vm6 = vmpackc.low (!%p914_p2), %vm1930_vm3, %vm6966_vm5  ;;  %s7867_s26 = sld [smem:[#allocation9_spill]] (!%p914_p2)  ;;  %vm5340_vm3 = vcmask (!%p914_p2), 0  }
  0x45   : > { %6061 = vmatprep.subr.bf16.mxu0 (!%p914_p2), %v6667_v8 }
  0x46   : > { %s7876_s1 = smov (!%p999_p3, %s5439_s1), 1 }
  0x47   : > { %s5768_s0 = sshll.u32 %s7876_s1, 4  ;;  %s1006_s2 = scalar_lea.vmem %s7026_s19, %s7876_s1 }
  0x48   : > { %6062 = vmatpush3.bf16.msra.mxu0 %v6667_v8  ;;  %v7187_v8 = vld [vmem:[%s7859_s3] sm:$0xff]   ;;  %s1003_s20 = scalar_lea.vmem %s6976_s5, %s5768_s0  ;;  %s7419_s11 = scalar_lea.vmem %s7861_s10, %s7876_s1 }
  0x49   : > { %6063 = vmatprep.subr.bf16.mxu0 %v6668_v9  ;;  %s7868_s0 = sld [smem:[#allocation11_spill]]  ;;  %s7871_s10 = sld [smem:[#allocation15_spill]] }
  0x4b   : > { %6040 = vmatmul.mubr.msk.bf16.gmra.mrb[4].mxu0 %vm1059_vm0, %v6661_v5 }
  0x4c   : > { %6064 = vmatpush3.bf16.msra.mxu0 %v6668_v9  ;;  %v7191_v9 = vld [vmem:[%s7859_s3 + $0x8] sm:$0xff]  }
  0x4d   : > { %6065 = vmatprep.subr.bf16.mxu0 %v6669_v10 }
  0x50   : > { %6066 = vmatpush3.bf16.msra.mxu0 %v6669_v10  ;;  %v7200_v10 = vld [vmem:[%s7859_s3 + $0x10] sm:$0xff]  }
  0x51   : > { %6067 = vmatprep.subr.bf16.mxu0 %v6670_v11 }
  0x54   : > { %6068 = vmatpush3.bf16.msra.mxu0 %v6670_v11  ;;  %v7205_v11 = vld [vmem:[%s7859_s3 + $0x18] sm:$0xff]  }
  0x55   : > { %6069 = vmatprep.subr.bf16.mxu0 %v6671_v12 }
  0x58   : > { %6070 = vmatpush3.bf16.msra.mxu0 %v6671_v12  ;;  %v7212_v12 = vld [vmem:[%s7859_s3 + $0x20] sm:$0xff]  }
  0x59   : > { %6071 = vmatprep.subr.bf16.mxu0 %v6672_v28 }
  0x5c   : > { %6072 = vmatpush3.bf16.msra.mxu0 %v6672_v28 }
  0x5d   : > { %6073 = vmatprep.subr.bf16.mxu0 %v6673_v29 }
  0x60   : > { %6074 = vmatpush3.bf16.msra.mxu0 %v6673_v29 }
 0x116   : > { %v6037_v13 = vpop.f32.mrb[0].mxu0 }
 0x117   : > { %v1106_v14 = vpop.f32.mrb[1].mxu0 }
 0x118   : > { %v6038_v15 = vpop.f32.mrb[2].mxu0 }
 0x119   : > { %v1138_v16 = vpack.c.bf16 %v6038_v15, %v6037_v13  ;;  %v1109_v17 = vpop.f32.mrb[3].mxu0  ;;  %v7217_v13 = vld [vmem:[%s7859_s3 + $0x28] sm:$0xff]   ;;  %v7228_v15 = vld [vmem:[%s7859_s3 + $0x38] sm:$0xff]  }
 0x11a   : > { %v1137_v18 = vpack.c.bf16 %v1109_v17, %v1106_v14  ;;  %v7223_v14 = vld [vmem:[%s7859_s3 + $0x30] sm:$0xff]   ;;  %s7874_s3 = sld [smem:[#allocation17_spill]] }
 0x11c   : > { %6043 = vmatprep.subr.bf16.mxu1 %v1137_v18 }
 0x11d   : > { %6044 = vmatpush3.bf16.msra.mxu1 %v1137_v18 }
 0x11e   : > { %v6041_v19 = vpop.f32.mrb[4].mxu0  ;;  %6045 = vmatprep.subr.bf16.mxu1 %v1138_v16 }
 0x11f   : > { %v1122_v20 = vpop.f32.mrb[5].mxu0 }
 0x120   : > { %v6042_v21 = vpop.f32.mrb[6].mxu0 }
 0x121   : > { %v1140_v22 = vpack.c.bf16 %v6042_v21, %v6041_v19  ;;  %v1125_v23 = vpop.f32.mrb[7].mxu0  ;;  %6046 = vmatpush3.bf16.msra.mxu1 %v1138_v16  ;;  %v5472_v16 = vld [vmem:[%s7006_s29] ss:$0 sm:$0xff] }
 0x122   : > { %v1139_v24 = vpack.c.bf16 %v1125_v23, %v1122_v20 }
 0x124   : > { %6047 = vmatprep.subr.bf16.mxu1 %v1139_v24 }
 0x125   : > { %6048 = vmatpush3.bf16.msra.mxu1 %v1139_v24 }
 0x126   : > { %6049 = vmatprep.subr.bf16.mxu1 %v1140_v22 }
 0x129   : > { %6050 = vmatpush3.bf16.msra.mxu1 %v1140_v22 }
 0x12c   : > { %6052 = vmatmul.mubr.msk.bf16.vlgmr.msra.gmra.mrb[0].mxu1 %vm1167_vm1, %v7165_v25 }
 0x12d   : > { %6055 = vmatprep.mubr.msk.bf16.mxu1 %vm1167_vm1, %v7168_v26 }
 0x134   : > { %6056 = vmatmul.mubr.msk.bf16.gmra.mrb[4].mxu1 %vm1167_vm1, %v7175_v27 }
 0x135   : > { %6091 = vmatprep.mubr.msk.bf16.mxu1 %vm1167_vm1, %v7154_v6 }
 0x1ff   : > { %v6053_v31 = vpop.f32.mrb[0].mxu1 }
 0x200   : > { %v1223_v32 = vadd.f32 %v6053_v31, %v5455_v30  ;;  %v1214_v33 = vpop.f32.mrb[1].mxu1 }
 0x201   : > { %v1215_v34 = vadd.f32 %v5455_v30, %v1214_v33  ;;  %v6054_v35 = vpop.f32.mrb[2].mxu1 }
 0x202   : > { %v1226_v36 = vadd.f32 %v6054_v35, %v5455_v30  ;;  %v1217_v37 = vpop.f32.mrb[3].mxu1  ;;  %v1247_v39 = vmax.f32 %v1223_v32, 0.0 }
 0x203   : > { %v1218_v38 = vadd.f32 %v5455_v30, %v1217_v37  ;;  %v1245_v41 = vmax.f32 %v1215_v34, 0.0 }
 0x204   : > { %v1248_v40 = vmax.f32 %v1226_v36, 0.0 }
 0x205   : > { %v1246_v42 = vmax.f32 %v1218_v38, 0.0 }
 0x206   : > { %v1254_v43 = vpack.c.bf16 %v1248_v40, %v1247_v39 }
 0x207   : > { %v1253_v44 = vpack.c.bf16 %v1246_v42, %v1245_v41  ;;  %v6057_v45 = vpop.f32.mrb[4].mxu1 }
 0x208   : > { %v1239_v46 = vadd.f32 %v6057_v45, %v5455_v30  ;;  %v1230_v47 = vpop.f32.mrb[5].mxu1 }
 0x209   : > { %v1231_v48 = vadd.f32 %v5455_v30, %v1230_v47  ;;  %v6058_v49 = vpop.f32.mrb[6].mxu1  ;;  %6075 = vmatprep.mubr.bf16.mxu0 %v1253_v44 }
 0x20a   : > { %v1242_v50 = vadd.f32 %v6058_v49, %v5455_v30  ;;  %v1233_v51 = vpop.f32.mrb[7].mxu1  ;;  %6076 = vmatmul.mubr.bf16.vlgmr.msra.gmra.mrb[8].mxu0 %v1254_v43  ;;  %v1251_v53 = vmax.f32 %v1239_v46, 0.0 }
 0x20b   : > { %v1234_v52 = vadd.f32 %v5455_v30, %v1233_v51  ;;  %v1249_v55 = vmax.f32 %v1231_v48, 0.0 }
 0x20c   : > { %v1252_v54 = vmax.f32 %v1242_v50, 0.0 }
 0x20d   : > { %v1250_v56 = vmax.f32 %v1234_v52, 0.0 }
 0x20e   : > { %v1256_v57 = vpack.c.bf16 %v1252_v54, %v1251_v53 }
 0x20f   : > { %v1255_v58 = vpack.c.bf16 %v1250_v56, %v1249_v55 }
 0x211   : > { %6079 = vmatprep.mubr.bf16.mxu0 %v1255_v58 }
 0x212   : > { %6080 = vmatmul.mubr.bf16.gmra.mrb[12].mxu0 %v1256_v57 }
 0x213   : > { %6131 = vmatprep.mubr.msk.bf16.mxu0 %vm1167_vm1, %v7154_v6 }
 0x2dd   : > { %v6077_v59 = vpop.f32.mrb[8].mxu0 }
 0x2de   : > { %v1356_v60 = vpop.f32.mrb[9].mxu0 }
 0x2df   : > { %v6078_v61 = vpop.f32.mrb[10].mxu0 }
 0x2e0   : > { %v1388_v62 = vpack.c.bf16 %v6078_v61, %v6077_v59  ;;  %v1359_v63 = vpop.f32.mrb[11].mxu0 }
 0x2e1   : > { %v1387_v0 = vpack.c.bf16 %v1359_v63, %v1356_v60 }
 0x2e3   : > { %6083 = vmatprep.subr.bf16.mxu1 %v1387_v0 }
 0x2e4   : > { %6084 = vmatpush3.bf16.msra.mxu1 %v1387_v0 }
 0x2e5   : > { %v6081_v1 = vpop.f32.mrb[12].mxu0  ;;  %6085 = vmatprep.subr.bf16.mxu1 %v1388_v62 }
 0x2e6   : > { %v1372_v2 = vpop.f32.mrb[13].mxu0 }
 0x2e7   : > { %v6082_v3 = vpop.f32.mrb[14].mxu0 }
 0x2e8   : > { %v1390_v4 = vpack.c.bf16 %v6082_v3, %v6081_v1  ;;  %v1375_v5 = vpop.f32.mrb[15].mxu0  ;;  %6086 = vmatpush3.bf16.msra.mxu1 %v1388_v62 }
 0x2e9   : > { %v1389_v7 = vpack.c.bf16 %v1375_v5, %v1372_v2 }
 0x2eb   : > { %6087 = vmatprep.subr.bf16.mxu1 %v1389_v7 }
 0x2ec   : > { %6088 = vmatpush3.bf16.msra.mxu1 %v1389_v7 }
 0x2ed   : > { %6089 = vmatprep.subr.bf16.mxu1 %v1390_v4 }
 0x2f0   : > { %6090 = vmatpush3.bf16.msra.mxu1 %v1390_v4 }
 0x2f1   : > { %6099 = vmatprep.subr.bf16.mxu1 %v7187_v8 }
 0x2f3   : > { %6092 = vmatmul.mubr.msk.bf16.vlgmr.msra.gmra.mrb[8].mxu1 %vm1167_vm1, %v7165_v25 }
 0x2f4   : > { %6095 = vmatprep.mubr.msk.bf16.mxu1 %vm1167_vm1, %v7168_v26  ;;  %6100 = vmatpush3.bf16.msra.mxu1 %v7187_v8 }
 0x2f5   : > { %6101 = vmatprep.subr.bf16.mxu1 %v7191_v9 }
 0x2f8   : > { %6102 = vmatpush3.bf16.msra.mxu1 %v7191_v9 }
 0x2f9   : > { %6103 = vmatprep.subr.bf16.mxu1 %v7200_v10 }
 0x2fb   : > { %6096 = vmatmul.mubr.msk.bf16.gmra.mrb[12].mxu1 %vm1167_vm1, %v7175_v27 }
 0x2fc   : > { %6104 = vmatpush3.bf16.msra.mxu1 %v7200_v10 }
 0x2fd   : > { %6105 = vmatprep.subr.bf16.mxu1 %v7205_v11 }
 0x300   : > { %6106 = vmatpush3.bf16.msra.mxu1 %v7205_v11 }
 0x301   : > { %6107 = vmatprep.subr.bf16.mxu1 %v7212_v12 }
 0x304   : > { %6108 = vmatpush3.bf16.msra.mxu1 %v7212_v12 }
 0x305   : > { %6109 = vmatprep.subr.bf16.mxu1 %v7217_v13 }
 0x308   : > { %6110 = vmatpush3.bf16.msra.mxu1 %v7217_v13 }
 0x309   : > { %6111 = vmatprep.subr.bf16.mxu1 %v7223_v14 }
 0x30c   : > { %6112 = vmatpush3.bf16.msra.mxu1 %v7223_v14 }
 0x30d   : > { %6113 = vmatprep.subr.bf16.mxu1 %v7228_v15 }
 0x310   : > { %6114 = vmatpush3.bf16.msra.mxu1 %v7228_v15 }
 0x3c6   : > { %v6093_v17 = vpop.f32.mrb[8].mxu1 }
 0x3c7   : > { %v1440_v18 = vadd.f32 %v6093_v17, %v5472_v16  ;;  %v1431_v19 = vpop.f32.mrb[9].mxu1 }
 0x3c8   : > { %v1432_v20 = vadd.f32 %v5472_v16, %v1431_v19  ;;  %v6094_v21 = vpop.f32.mrb[10].mxu1 }
 0x3c9   : > { %v1443_v22 = vadd.f32 %v6094_v21, %v5472_v16  ;;  %v1434_v23 = vpop.f32.mrb[11].mxu1  ;;  %v1464_v28 = vmax.f32 %v1440_v18, 0.0 }
 0x3ca   : > { %v1435_v24 = vadd.f32 %v5472_v16, %v1434_v23  ;;  %v1462_v30 = vmax.f32 %v1432_v20, 0.0 }
 0x3cb   : > { %v1465_v29 = vmax.f32 %v1443_v22, 0.0 }
 0x3cc   : > { %v1463_v31 = vmax.f32 %v1435_v24, 0.0 }
 0x3cd   : > { %v1471_v32 = vpack.c.bf16 %v1465_v29, %v1464_v28  ;;  %v6963_v28 = vmov 0   ;;  %v1825_v29 = vld [vmem:[%s1003_s20] sm:$0xff] }
 0x3ce   : > { %v1470_v33 = vpack.c.bf16 %v1463_v31, %v1462_v30  ;;  %v6097_v34 = vpop.f32.mrb[12].mxu1  ;;  %6656 = vset.pattern.permute.xlu0 %v6963_v28  ;;  %v1826_v30 = vld [vmem:[%s1003_s20 + $0x8] sm:$0xff]  ;;  %s7869_s20 = sld [smem:[#allocation13_spill]] }
 0x3cf   : > { %v1456_v35 = vadd.f32 %v6097_v34, %v5472_v16  ;;  %v1447_v36 = vpop.f32.mrb[13].mxu1  ;;  %1830 = vperm.xlu0 %6656, %v1825_v29   ;;  %v6705_v29 = vld [vmem:[%s7046_s12 + $0x80] ss:$12 sps:$4 sm:$0xff]  }
 0x3d0   : > { %v1448_v37 = vadd.f32 %v5472_v16, %v1447_v36  ;;  %v6098_v38 = vpop.f32.mrb[14].mxu1  ;;  %6115 = vmatprep.mubr.bf16.mxu1 %v1470_v33 }
 0x3d1   : > { %v1459_v39 = vadd.f32 %v6098_v38, %v5472_v16  ;;  %v1450_v40 = vpop.f32.mrb[15].mxu1  ;;  %6116 = vmatmul.mubr.bf16.vlgmr.msra.gmra.mrb[16].mxu1 %v1471_v32  ;;  %v1468_v42 = vmax.f32 %v1456_v35, 0.0 }
 0x3d2   : > { %v1451_v41 = vadd.f32 %v5472_v16, %v1450_v40  ;;  %v1466_v44 = vmax.f32 %v1448_v37, 0.0 }
 0x3d3   : > { %v1469_v43 = vmax.f32 %v1459_v39, 0.0  ;;  %1833 = vperm.xlu0 %6656, %v1826_v30   ;;  %v6708_v30 = vld [vmem:[%s7046_s12 + $0x94] ss:$12 sps:$4 sm:$0xff]  }
 0x3d4   : > { %v1467_v45 = vmax.f32 %v1451_v41, 0.0 }
 0x3d5   : > { %v1473_v46 = vpack.c.bf16 %v1469_v43, %v1468_v42  ;;  %v1827_v43 = vlaneseq }
 0x3d6   : > { %v1472_v47 = vpack.c.bf16 %v1467_v45, %v1466_v44 }
 0x3d7   : > { %v7285_v44 = vand.u32 127, %v1827_v43 }
 0x3d8   : > { %6119 = vmatprep.mubr.bf16.mxu1 %v1472_v47  ;;  %v6688_v47 = vld [vmem:[%s7046_s12 + $0x1c] ss:$12 sps:$4 sm:$0xff]  }
 0x3d9   : > { %6120 = vmatmul.mubr.bf16.gmra.mrb[20].mxu1 %v1473_v46  ;;  %vm2020_vm9 = vcmp.ge.s32.totalorder %v7285_v44, 32  ;;  %vm2021_vm10 = vcmp.lt.s32.totalorder %v7285_v44, 64  ;;  %vm2025_vm11 = vcmp.ge.s32.totalorder %v7285_v44, 64  ;;  %vm2026_vm12 = vcmp.lt.s32.totalorder %v7285_v44, 96 }
 0x3da   : > { %6171 = vmatprep.mubr.msk.bf16.mxu1 %vm1167_vm1, %v7154_v6  ;;  %v7258_v6 = vld [vmem:[%s7016_s8] ss:$0 sm:$0xff]  ;;  %vm2016_vm13 = vcmp.lt.s32.totalorder %v7285_v44, 32  ;;  %vm2022_vm14 = vmand %vm2020_vm9, %vm2021_vm10 }
 0x3db   : > { %vm2027_vm15 = vmand %vm2025_vm11, %vm2026_vm12 }
 0x44e   : > { %v1831_v45 = vpop.permute.xlu0 %1830 }
 0x44f   : > { %vm1835_vm2 = vcmp.eq.s32.totalorder %v7285_v44, %v1831_v45 }
 0x4a4   : > { %v6117_v48 = vpop.f32.mrb[16].mxu1 }
 0x4a5   : > { %v1573_v49 = vpop.f32.mrb[17].mxu1 }
 0x4a6   : > { %v6118_v50 = vpop.f32.mrb[18].mxu1 }
 0x4a7   : > { %v1605_v51 = vpack.c.bf16 %v6118_v50, %v6117_v48  ;;  %v1576_v52 = vpop.f32.mrb[19].mxu1  ;;  %v6686_v48 = vld [vmem:[%s7046_s12 + $0x18] ss:$12 sps:$4 sm:$0xff]   ;;  %v6690_v50 = vld [vmem:[%s7046_s12 + $0x30] ss:$12 sps:$4 sm:$0xff]  }
 0x4a8   : > { %v1604_v53 = vpack.c.bf16 %v1576_v52, %v1573_v49  ;;  %v6692_v49 = vld [vmem:[%s7046_s12 + $0x34] ss:$12 sps:$4 sm:$0xff]  }
 0x4a9   : > { %v6694_v52 = vld [vmem:[%s7046_s12 + $0x48] ss:$12 sps:$4 sm:$0xff]  }
 0x4aa   : > { %6123 = vmatprep.subr.bf16.mxu0 %v1604_v53 }
 0x4ab   : > { %6124 = vmatpush3.bf16.msra.mxu0 %v1604_v53  ;;  %v6700_v53 = vld [vmem:[%s7046_s12 + $0x64] ss:$12 sps:$4 sm:$0xff]  }
 0x4ac   : > { %v6121_v54 = vpop.f32.mrb[20].mxu1  ;;  %6125 = vmatprep.subr.bf16.mxu0 %v1605_v51 }
 0x4ad   : > { %v1589_v55 = vpop.f32.mrb[21].mxu1 }
 0x4ae   : > { %v6122_v56 = vpop.f32.mrb[22].mxu1 }
 0x4af   : > { %v1607_v57 = vpack.c.bf16 %v6122_v56, %v6121_v54  ;;  %v1592_v58 = vpop.f32.mrb[23].mxu1  ;;  %6126 = vmatpush3.bf16.msra.mxu0 %v1605_v51  ;;  %v6696_v51 = vld [vmem:[%s7046_s12 + $0x4c] ss:$12 sps:$4 sm:$0xff]  }
 0x4b0   : > { %v1606_v59 = vpack.c.bf16 %v1592_v58, %v1589_v55  ;;  %v6698_v54 = vld [vmem:[%s7046_s12 + $0x60] ss:$12 sps:$4 sm:$0xff]  }
 0x4b2   : > { %6127 = vmatprep.subr.bf16.mxu0 %v1606_v59 }
 0x4b3   : > { %6128 = vmatpush3.bf16.msra.mxu0 %v1606_v59 }
 0x4b4   : > { %6129 = vmatprep.subr.bf16.mxu0 %v1607_v57 }
 0x4b7   : > { %6130 = vmatpush3.bf16.msra.mxu0 %v1607_v57 }
 0x4b8   : > { %6139 = vmatprep.subr.bf16.mxu0 %v7187_v8 }
 0x4ba   : > { %6132 = vmatmul.mubr.msk.bf16.vlgmr.msra.gmra.mrb[16].mxu0 %vm1167_vm1, %v7165_v25 }
 0x4bb   : > { %6135 = vmatprep.mubr.msk.bf16.mxu0 %vm1167_vm1, %v7168_v26  ;;  %6140 = vmatpush3.bf16.msra.mxu0 %v7187_v8 }
 0x4bc   : > { %6141 = vmatprep.subr.bf16.mxu0 %v7191_v9 }
 0x4bf   : > { %6142 = vmatpush3.bf16.msra.mxu0 %v7191_v9 }
 0x4c0   : > { %6143 = vmatprep.subr.bf16.mxu0 %v7200_v10 }
 0x4c2   : > { %6136 = vmatmul.mubr.msk.bf16.gmra.mrb[20].mxu0 %vm1167_vm1, %v7175_v27 }
 0x4c3   : > { %6144 = vmatpush3.bf16.msra.mxu0 %v7200_v10 }
 0x4c4   : > { %6145 = vmatprep.subr.bf16.mxu0 %v7205_v11 }
 0x4c7   : > { %6146 = vmatpush3.bf16.msra.mxu0 %v7205_v11 }
 0x4c8   : > { %6147 = vmatprep.subr.bf16.mxu0 %v7212_v12 }
 0x4cb   : > { %6148 = vmatpush3.bf16.msra.mxu0 %v7212_v12 }
 0x4cc   : > { %6149 = vmatprep.subr.bf16.mxu0 %v7217_v13 }
 0x4cf   : > { %6150 = vmatpush3.bf16.msra.mxu0 %v7217_v13 }
 0x4d0   : > { %6151 = vmatprep.subr.bf16.mxu0 %v7223_v14 }
 0x4d3   : > { %6152 = vmatpush3.bf16.msra.mxu0 %v7223_v14 }
 0x4d4   : > { %6153 = vmatprep.subr.bf16.mxu0 %v7228_v15 }
 0x4d7   : > { %6154 = vmatpush3.bf16.msra.mxu0 %v7228_v15 }
 0x58d   : > { %v6133_v60 = vpop.f32.mrb[16].mxu0 }
 0x58e   : > { %v1657_v61 = vadd.f32 %v6133_v60, %v7258_v6  ;;  %v1648_v62 = vpop.f32.mrb[17].mxu0 }
 0x58f   : > { %v1649_v63 = vadd.f32 %v7258_v6, %v1648_v62  ;;  %v6134_v0 = vpop.f32.mrb[18].mxu0 }
 0x590   : > { %v1660_v1 = vadd.f32 %v6134_v0, %v7258_v6  ;;  %v1651_v2 = vpop.f32.mrb[19].mxu0  ;;  %v1681_v4 = vmax.f32 %v1657_v61, 0.0 }
 0x591   : > { %v1652_v3 = vadd.f32 %v7258_v6, %v1651_v2  ;;  %v1679_v7 = vmax.f32 %v1649_v63, 0.0 }
 0x592   : > { %v1682_v5 = vmax.f32 %v1660_v1, 0.0 }
 0x593   : > { %v1680_v8 = vmax.f32 %v1652_v3, 0.0 }
 0x594   : > { %v1688_v9 = vpack.c.bf16 %v1682_v5, %v1681_v4 }
 0x595   : > { %v1687_v10 = vpack.c.bf16 %v1680_v8, %v1679_v7  ;;  %v6137_v11 = vpop.f32.mrb[20].mxu0 }
 0x596   : > { %v1673_v12 = vadd.f32 %v6137_v11, %v7258_v6  ;;  %v1664_v13 = vpop.f32.mrb[21].mxu0 }
 0x597   : > { %v1665_v14 = vadd.f32 %v7258_v6, %v1664_v13  ;;  %v6138_v15 = vpop.f32.mrb[22].mxu0  ;;  %6155 = vmatprep.mubr.bf16.mxu0 %v1687_v10  ;;  %v1923_v13 = vld [vmem:[%s7031_s24] sm:$0xff] }
 0x598   : > { %v1676_v16 = vadd.f32 %v6138_v15, %v7258_v6  ;;  %v1667_v17 = vpop.f32.mrb[23].mxu0  ;;  %6156 = vmatmul.mubr.bf16.vlgmr.msra.gmra.mrb[24].mxu0 %v1688_v9  ;;  %v1685_v19 = vmax.f32 %v1673_v12, 0.0  ;;  %v1834_v12 = vpop.permute.xlu0 %1833 }
 0x599   : > { %v1668_v18 = vadd.f32 %v7258_v6, %v1667_v17  ;;  %v1683_v21 = vmax.f32 %v1665_v14, 0.0  ;;  %v1924_v14 = vld [vmem:[%s7031_s24 + $0x8] sm:$0x3]  ;;  %vm1836_vm4 = vcmp.eq.s32.totalorder %v7285_v44, %v1834_v12  ;;  %v1922_v17 = vld [vmem:[%s1006_s2] sm:$0x1]  ;;  %s7870_s2 = sld [smem:[#allocation14_spill]] }
 0x59a   : > { %v1686_v20 = vmax.f32 %v1676_v16, 0.0  ;;  %v6484_v15 = vpack.c.bf16 %v1924_v14, %v1923_v13  ;;  %v6965_v16 = vmov 0.0|0.0  }
 0x59b   : > { %v1684_v22 = vmax.f32 %v1668_v18, 0.0  ;;  %v6685_v18 = vld [vmem:[%s7046_s12 + $0x8] ss:$12 sps:$4 sm:$0xff]  }
 0x59c   : > { %v1690_v23 = vpack.c.bf16 %v1686_v20, %v1685_v19  ;;  %v6689_v19 = vld [vmem:[%s7046_s12 + $0x20] ss:$12 sps:$4 sm:$0xff]   ;;  %v6693_v20 = vld [vmem:[%s7046_s12 + $0x38] ss:$12 sps:$4 sm:$0xff]  }
 0x59d   : > { %v1689_v24 = vpack.c.bf16 %v1684_v22, %v1683_v21  ;;  %v6697_v21 = vld [vmem:[%s7046_s12 + $0x50] ss:$12 sps:$4 sm:$0xff]   ;;  %v6701_v22 = vld [vmem:[%s7046_s12 + $0x68] ss:$12 sps:$4 sm:$0xff]  }
 0x59f   : > { %6159 = vmatprep.mubr.bf16.mxu0 %v1689_v24  ;;  %v6702_v24 = vld [vmem:[%s7046_s12 + $0x78] ss:$12 sps:$4 sm:$0xff]  }
 0x5a0   : > { %6160 = vmatmul.mubr.bf16.gmra.mrb[28].mxu0 %v1690_v23  ;;  %v6704_v23 = vld [vmem:[%s7046_s12 + $0x7c] ss:$12 sps:$4 sm:$0xff]  }
 0x66b   : > { %v6157_v31 = vpop.f32.mrb[24].mxu0 }
 0x66c   : > { %v1725_v32 = vpop.f32.mrb[25].mxu0 }
 0x66d   : > { %v6158_v33 = vpop.f32.mrb[26].mxu0 }
 0x66e   : > { %v1757_v34 = vpack.c.bf16 %v6158_v33, %v6157_v31  ;;  %v1728_v35 = vpop.f32.mrb[27].mxu0  ;;  %v6706_v31 = vld [vmem:[%s7046_s12 + $0x90] ss:$12 sps:$4 sm:$0xff]   ;;  %v6712_v33 = vld [vmem:[%s7046_s12 + $0xac] ss:$12 sps:$4 sm:$0xff]  }
 0x66f   : > { %v1756_v36 = vpack.c.bf16 %v1728_v35, %v1725_v32  ;;  %v6709_v32 = vld [vmem:[%s7046_s12 + $0x98] ss:$12 sps:$4 sm:$0xff]   ;;  %v6713_v35 = vld [vmem:[%s7046_s12 + $0xb0] ss:$12 sps:$4 sm:$0xff]  }
 0x671   : > { %6163 = vmatprep.subr.bf16.mxu1 %v1756_v36 }
 0x672   : > { %6164 = vmatpush3.bf16.msra.mxu1 %v1756_v36  ;;  %v7343_v36 = vshrl.u32 %v1827_v43, 7 }
 0x673   : > { %v6161_v37 = vpop.f32.mrb[28].mxu0  ;;  %6165 = vmatprep.subr.bf16.mxu1 %v1757_v34 }
 0x674   : > { %v1741_v38 = vpop.f32.mrb[29].mxu0 }
 0x675   : > { %v6162_v39 = vpop.f32.mrb[30].mxu0 }
 0x676   : > { %v1759_v40 = vpack.c.bf16 %v6162_v39, %v6161_v37  ;;  %v1744_v41 = vpop.f32.mrb[31].mxu0  ;;  %6166 = vmatpush3.bf16.msra.mxu1 %v1757_v34  ;;  %v6710_v34 = vld [vmem:[%s7046_s12 + $0xa8] ss:$12 sps:$4 sm:$0xff]   ;;  %v1925_v39 = vld [vmem:[%s7036_s30] sm:$0x1] }
 0x677   : > { %v1758_v42 = vpack.c.bf16 %v1744_v41, %v1741_v38  ;;  %v2005_v41 = vld [vmem:[%s7021_s14 + $0x8] sm:$0xff] }
 0x679   : > { %6167 = vmatprep.subr.bf16.mxu1 %v1758_v42 }
 0x67a   : > { %6168 = vmatpush3.bf16.msra.mxu1 %v1758_v42  ;;  %v2004_v42 = vld [vmem:[%s7021_s14] sm:$0xff] }
 0x67b   : > { %6169 = vmatprep.subr.bf16.mxu1 %v1759_v40 }
 0x67e   : > { %6170 = vmatpush3.bf16.msra.mxu1 %v1759_v40  ;;  %v7347_v40 = vsub.s32 0, %v7343_v36 }
 0x681   : > { %6172 = vmatmul.mubr.msk.bf16.vlgmr.msra.gmra.mrb[24].mxu1 %vm1167_vm1, %v7165_v25  ;;  %v6964_v25 = vmov 0.0  }
 0x682   : > { %6175 = vmatprep.mubr.msk.bf16.mxu1 %vm1167_vm1, %v7168_v26  ;;  %v5494_v46 = vsel %vm1835_vm2, 1.0, %v6964_v25  ;;  %v6682_v26 = vld [vmem:[%s7046_s12] ss:$12 sps:$4 sm:$0xff]   ;;  %vm5333_vm2 = vcmask 1040384  }
 0x683   : > { %6195 = vmatprep.mubr.msk.f32.mxu0 %vm1167_vm1, %v5494_v46 }
 0x689   : > { %6176 = vmatmul.mubr.msk.bf16.gmra.mrb[28].mxu1 %vm1167_vm1, %v7175_v27  ;;  %v6684_v27 = vld [vmem:[%s7046_s12 + $0x4] ss:$12 sps:$4 sm:$0xff]  }
 0x68a   : > { %2245 = vmatprep.mubr.bf16.mxu1 %v6963_v28  ;;  %2213 = vmatprep.subr.bf16.mxu1 %v6684_v27 }
 0x68b   : > { %2214 = vmatpush1.bf16.msra.mxu1 %v6682_v26 }
 0x68c   : > { %2215 = vmatprep.subr.bf16.mxu1 %v6688_v47 }
 0x68f   : > { %2216 = vmatpush1.bf16.msra.mxu1 %v6686_v48 }
 0x690   : > { %2217 = vmatprep.subr.bf16.mxu1 %v6692_v49 }
 0x693   : > { %2218 = vmatpush1.bf16.msra.mxu1 %v6690_v50 }
 0x694   : > { %2219 = vmatprep.subr.bf16.mxu1 %v6696_v51  ;;  %v2080_v51 = vsub.s32 2, %v7343_v36 }
 0x697   : > { %2220 = vmatpush1.bf16.msra.mxu1 %v6694_v52  ;;  %v2068_v52 = vld [vmem:[%s7860_s7] sm:$0x7] }
 0x698   : > { %2221 = vmatprep.subr.bf16.mxu1 %v6700_v53  ;;  %v7363_v53 = vsub.s32 1, %v7343_v36 }
 0x69b   : > { %2222 = vmatpush1.bf16.msra.mxu1 %v6698_v54  ;;  %v2073_v54 = vrot.slane %v2068_v52, %v7347_v40 }
 0x69c   : > { %2223 = vmatprep.subr.bf16.mxu1 %v6704_v23 }
 0x69f   : > { %2224 = vmatpush1.bf16.msra.mxu1 %v6702_v24 }
 0x6a0   : > { %2225 = vmatprep.subr.bf16.mxu1 %v6708_v30 }
 0x6a3   : > { %2226 = vmatpush1.bf16.msra.mxu1 %v6706_v31 }
 0x6a4   : > { %2227 = vmatprep.subr.bf16.mxu1 %v6712_v33 }
 0x6a7   : > { %2228 = vmatpush1.bf16.msra.mxu1 %v6710_v34  ;;  %v7422_v34 = vld [vmem:[%s7419_s11] ss:$0 sm:$0xff] }
 0x754   : > { %v6173_v55 = vpop.f32.mrb[24].mxu1 }
 0x755   : > { %v1794_v56 = vpop.f32.mrb[25].mxu1  ;;  %v1803_v58 = vadd.f32 %v6173_v55, %v7258_v6  ;;  %v2081_v55 = vrot.slane %v2068_v52, %v2080_v51 }
 0x756   : > { %v6174_v57 = vpop.f32.mrb[26].mxu1  ;;  %v1795_v61 = vadd.f32 %v7258_v6, %v1794_v56 }
 0x757   : > { %v1806_v59 = vadd.f32 %v6174_v57, %v7258_v6  ;;  %v1797_v60 = vpop.f32.mrb[27].mxu1 }
 0x758   : > { %v1798_v62 = vadd.f32 %v7258_v6, %v1797_v60  ;;  %v7376_v60 = vsel %vm2022_vm14, 1.0, %v6964_v25 }
 0x759   : > { %v6471_v63 = vpack.c.bf16 %v1806_v59, %v1803_v58  ;;  %v2077_v58 = vrot.slane %v2068_v52, %v7363_v53  ;;  %v7373_v59 = vsel %vm2016_vm13, 1.0, %v6964_v25 }
 0x75a   : > { %v6467_v0 = vpack.c.bf16 %v1798_v62, %v1795_v61 }
 0x75c   : > { %v6177_v1 = vpop.f32.mrb[28].mxu1  ;;  %6468 = vmatprep.subr.bf16.mxu0 %v6467_v0 }
 0x75d   : > { %v1810_v2 = vpop.f32.mrb[29].mxu1  ;;  %6470 = vmatpush3.bf16.msra.mxu0 %v6467_v0  ;;  %v1819_v4 = vadd.f32 %v6177_v1, %v7258_v6 }
 0x75e   : > { %v6178_v3 = vpop.f32.mrb[30].mxu1  ;;  %6472 = vmatprep.subr.bf16.mxu0 %v6471_v63  ;;  %v1811_v8 = vadd.f32 %v7258_v6, %v1810_v2 }
 0x75f   : > { %v1822_v5 = vadd.f32 %v6178_v3, %v7258_v6  ;;  %v1813_v7 = vpop.f32.mrb[31].mxu1  ;;  %v7381_v3 = vsel %vm2027_vm15, 1.0, %v6964_v25 }
 0x760   : > { %v1814_v9 = vadd.f32 %v7258_v6, %v1813_v7  ;;  %v5495_v6 = vsel %vm1836_vm4, 1.0, %v6964_v25 }
 0x761   : > { %v6479_v10 = vpack.c.bf16 %v1822_v5, %v1819_v4  ;;  %6474 = vmatpush3.bf16.msra.mxu0 %v6471_v63 }
 0x762   : > { %v6475_v11 = vpack.c.bf16 %v1814_v9, %v1811_v8 }
 0x764   : > { %6476 = vmatprep.subr.bf16.mxu0 %v6475_v11 }
 0x765   : > { %6478 = vmatpush3.bf16.msra.mxu0 %v6475_v11 }
 0x766   : > { %6480 = vmatprep.subr.bf16.mxu0 %v6479_v10 }
 0x769   : > { %6482 = vmatpush3.bf16.msra.mxu0 %v6479_v10 }
 0x76a   : > { %6483 = vmatprep.subr.bf16.mxu0 %v6965_v16 }
 0x76c   : > { %6196 = vmatmul.mubr.msk.f32.vlgmr.msra.gmra.mrb[32].mxu0 %vm1167_vm1, %v5495_v6  ;;  %vm2030_vm1 = vcmp.ge.s32.totalorder %v7285_v44, 96 }
 0x76d   : > { %6486 = vmatpush3.bf16.msk.msra.mxu0 %vm6485_vm6, %v6484_v15  ;;  %6202 = vmatprep.mubr.msk.f32.mxu0 %vm6967_vm7, %v6964_v25  ;;  %v7397_v44 = vsel %vm2030_vm1, 1.0, %v6964_v25 }
 0x76e   : > { %6205 = vmatprep.subr.bf16.mxu0 %v6964_v25 }
 0x770   : > { %6203 = vmatmul.mubr.msk.f32.vlgmr.msra.gmra.mrb[34].mxu0 %vm1926_vm8, %v1922_v17 }
 0x771   : > { %6206 = vmatpush3.bf16.msra.mxu0 %v6685_v18  ;;  %6221 = vmatprep.mubr.msk.bf16.mxu0 %vm6967_vm7, %v6964_v25 }
 0x772   : > { %6207 = vmatprep.subr.bf16.mxu0 %v6964_v25 }
 0x775   : > { %6208 = vmatpush3.bf16.msra.mxu0 %v6689_v19 }
 0x776   : > { %6209 = vmatprep.subr.bf16.mxu0 %v6964_v25 }
 0x779   : > { %6210 = vmatpush3.bf16.msra.mxu0 %v6693_v20 }
 0x77a   : > { %6211 = vmatprep.subr.bf16.mxu0 %v6964_v25 }
 0x77d   : > { %6212 = vmatpush3.bf16.msra.mxu0 %v6697_v21 }
 0x77e   : > { %6213 = vmatprep.subr.bf16.mxu0 %v6964_v25 }
 0x781   : > { %6214 = vmatpush3.bf16.msra.mxu0 %v6701_v22 }
 0x782   : > { %6215 = vmatprep.subr.bf16.mxu0 %v6964_v25 }
 0x785   : > { %6216 = vmatpush3.bf16.msra.mxu0 %v6705_v29 }
 0x786   : > { %6217 = vmatprep.subr.bf16.mxu0 %v6964_v25 }
 0x789   : > { %6218 = vmatpush3.bf16.msra.mxu0 %v6709_v32 }
 0x78a   : > { %6219 = vmatprep.subr.bf16.mxu0 %v6964_v25 }
 0x78d   : > { %6220 = vmatpush3.bf16.msra.mxu0 %v6713_v35 }
 0x83f   : > { %v6197_v37 = vpop.f32.mrb[32].mxu0 }
 0x840   : > { %v1913_v38 = vpop.f32.mrb[33].mxu0  ;;  %v2007_v27 = vadd.f32 %v6197_v37, %v2005_v41 }
 0x841   : > { %v2006_v47 = vadd.f32 %v2004_v42, %v1913_v38 }
 0x843   : > { %v2000_v45 = vpop.f32.mrb[34].mxu0 }
 0x844   : > { %v2001_v46 = vadd.f32 %v2000_v45, %v1925_v39  ;;  %v6204_v26 = vpop.f32.mrb[35].mxu0 }
 0x846   : > { %v2011_v48 = vrot.slane %v2001_v46, %v7347_v40 }
 0x848   : > { %v7352_v49 = vadd.f32 %v2011_v48, %v2006_v47  ;;  %v7354_v43 = vadd.f32 %v2011_v48, %v2007_v27 }
 0x84a   : > { %v2035_v50 = vpack.c.bf16 %v7354_v43, %v7352_v49 }
 0x84c   : > { %2246 = vmatmul.mubr.bf16.vlgmr.msra.gmra.mrb[32].mxu1 %v2035_v50  ;;  %6222 = vmatmul.mubr.bf16.vlgmr.msra.gmra.mrb[36].mxu0 %v2035_v50 }
 0x91f   : > { %v2247_v56 = vpop.f32.mrb[32].mxu1  ;;  %v2290_v57 = vpop.f32.mrb[36].mxu0 }
 0x920   : > { %v7378_v61 = vadd.f32 %v2247_v56, %v2073_v54  ;;  %v2291_v62 = vadd.f32 %v2290_v57, %v2081_v55  ;;  %v2249_v63 = vpop.f32.mrb[33].mxu1  ;;  %v6223_v0 = vpop.f32.mrb[37].mxu0 }
 0x921   : > { %v2251_v1 = vpop.f32.mrb[34].mxu1  ;;  %v2293_v2 = vpop.f32.mrb[38].mxu0  ;;  %v2250_v10 = vadd.f32 %v2249_v63, %v2077_v58 }
 0x922   : > { %v2294_v4 = vadd.f32 %v2293_v2, %v2081_v55  ;;  %v2253_v5 = vpop.f32.mrb[35].mxu1  ;;  %v6224_v7 = vpop.f32.mrb[39].mxu0  ;;  %v2297_v8 = vmul.f32 %v7373_v59, %v7378_v61  ;;  %v2408_v9 = vmul.f32 %v7376_v60, %v7378_v61  ;;  %v2511_v12 = vmul.f32 %v7376_v60, %v2291_v62 }
 0x923   : > { %v2254_v11 = vadd.f32 %v2253_v5, %v2077_v58  ;;  %v2406_v14 = vmul.f32 %v7373_v59, %v2291_v62  ;;  %v2778_v17 = vmul.f32 %v7381_v3, %v2291_v62  ;;  %v2966_v22 = vmul.f32 %v7397_v44, %v2291_v62 }
 0x924   : > { %6229 = vmatprep.mubr.f32.mxu1 %v2297_v8  ;;  %6236 = vmatprep.mubr.f32.mxu0 %v2408_v9  ;;  %v2512_v13 = vmul.f32 %v7376_v60, %v2294_v4  ;;  %v2407_v15 = vmul.f32 %v7373_v59, %v2294_v4  ;;  %v2779_v18 = vmul.f32 %v7381_v3, %v2294_v4 }
 0x925   : > { %v7392_v6 = vpack.c.bf16 %v2254_v11, %v2250_v10  ;;  %v2967_v23 = vmul.f32 %v7397_v44, %v2294_v4  ;;  %v7407_v24 = vadd.f32 %v2251_v1, %v2073_v54 }
 0x926   : > { %v6495_v19 = vpack.c.bf16 %v2512_v13, %v2511_v12  ;;  %v6499_v20 = vpack.c.bf16 %v2407_v15, %v2406_v14  ;;  %v7401_v21 = vpack.c.bf16 %v2779_v18, %v2778_v17  ;;  %v2675_v15 = vmul.f32 %v7381_v3, %v7378_v61 }
 0x927   : > { %6488 = vmatprep.subr.bf16.mxu1 %v7392_v6  ;;  %6492 = vmatprep.subr.bf16.mxu0 %v7392_v6  ;;  %v7409_v29 = vpack.c.bf16 %v2967_v23, %v2966_v22  ;;  %v2298_v30 = vmul.f32 %v7373_v59, %v7407_v24  ;;  %v2409_v31 = vmul.f32 %v7376_v60, %v7407_v24 }
 0x928   : > { %6490 = vmatpush3.bf16.xpose.msra.mxu1 %v7392_v6  ;;  %6494 = vmatpush3.bf16.xpose.msra.mxu0 %v7392_v6  ;;  %v2676_v17 = vmul.f32 %v7381_v3, %v7407_v24  ;;  %v2863_v18 = vmul.f32 %v7397_v44, %v7378_v61  ;;  %v2864_v22 = vmul.f32 %v7397_v44, %v7407_v24 }
 0x929   : > { %6496 = vmatprep.subr.bf16.mxu0 %v6495_v19  ;;  %6500 = vmatprep.subr.bf16.mxu1 %v6499_v20 }
 0x92f   : > { %6230 = vmatmul.mubr.f32.vlgmr.msra.gmra.mrb[36].mxu1 %v2298_v30  ;;  %6237 = vmatmul.mubr.f32.vlgmr.msra.gmra.mrb[40].mxu0 %v2409_v31 }
 0x930   : > { %6498 = vmatpush3.bf16.msra.mxu0 %v6495_v19  ;;  %6502 = vmatpush3.bf16.msra.mxu1 %v6499_v20 }
 0x931   : > { %6504 = vmatprep.subr.bf16.mxu0 %v7392_v6  ;;  %6508 = vmatprep.subr.bf16.mxu1 %v7401_v21 }
 0xa02   : > { %v6231_v32 = vpop.f32.mrb[36].mxu1  ;;  %v6238_v33 = vpop.f32.mrb[40].mxu0 }
 0xa03   : > { %v2365_v35 = vpop.f32.mrb[37].mxu1  ;;  %v2476_v37 = vpop.f32.mrb[41].mxu0  ;;  %v2486_v38 = vmul.f32 0.17677669, %v6238_v33  ;;  %v2375_v58 = vmul.f32 0.17677669, %v6231_v32 }
 0xa04   : > { %v2485_v39 = vmul.f32 0.17677669, %v2476_v37  ;;  %v2374_v55 = vmul.f32 0.17677669, %v2365_v35 }
 0xa05   : > { %v2488_v45 = vadd.f32 %v7422_v34, %v2486_v38  ;;  %v2383_v1 = vadd.f32 %v7422_v34, %v2375_v58 }
 0xa06   : > { %v2487_v41 = vadd.f32 %v7422_v34, %v2485_v39  ;;  %v2382_v63 = vadd.f32 %v7422_v34, %v2374_v55 }
 0xa07   : > { %v2492_v46 = vsel %vm1059_vm0, %v2488_v45, -inf  ;;  %v2387_v2 = vsel %vm1059_vm0, %v2383_v1, -inf }
 0xa08   : > { %v2489_v42 = vsel %vm1059_vm0, %v2487_v41, -inf  ;;  %v2384_v0 = vsel %vm1059_vm0, %v2382_v63, -inf }
 0xa09   : > { %2490 = vmax.xlane.f32.xlu1 %v2489_v42 }
 0xa0d   : > { %2493 = vmax.xlane.f32.xlu1 %v2492_v46 }
 0xa96   : > { %v2491_v26 = vpop.xlane.xlu1 %2490 }
 0xa97   : > { %v2495_v27 = vsub.f32 %v2487_v41, %v2491_v26 }
 0xa99   : > { %v2497_v47 = vmul.f32 1.442695, %v2495_v27 }
 0xa9a   : > { %v2494_v48 = vpop.xlane.xlu1 %2493 }
 0xa9b   : > { %6842 = vpow2.f32 %v2497_v47  ;;  %v2496_v50 = vsub.f32 %v2488_v45, %v2494_v48 }
 0xa9d   : > { %v2499_v52 = vmul.f32 1.442695, %v2496_v50 }
 0xa9f   : > { %6844 = vpow2.f32 %v2499_v52 }
 0xaa5   : > { %v6843_v54 = vpop.eup %6842 }
 0xaa6   : > { %v2501_v56 = vsel %vm1059_vm0, %v6843_v54, 0.0 }
 0xaa7   : > { %2502 = vadd.xlane.f32.xlu0 %v2501_v56 }
 0xaa9   : > { %v6845_v57 = vpop.eup %6844 }
 0xaaa   : > { %v2504_v62 = vsel %vm1059_vm0, %v6845_v57, 0.0 }
 0xaab   : > { %2505 = vadd.xlane.f32.xlu1 %v2504_v62 }
 0xaaf   : > { %2385 = vmax.xlane.f32.xlu1 %v2384_v0 }
 0xab3   : > { %2388 = vmax.xlane.f32.xlu1 %v2387_v2 }
 0xb34   : > { %v2503_v4 = vpop.xlane.xlu0 %2502 }
 0xb35   : > { %6846 = vrcp.f32 %v2503_v4 }
 0xb38   : > { %v2506_v5 = vpop.xlane.xlu1 %2505 }
 0xb39   : > { %6848 = vrcp.f32 %v2506_v5 }
 0xb3c   : > { %v2386_v7 = vpop.xlane.xlu1 %2385 }
 0xb3d   : > { %v2390_v31 = vsub.f32 %v2382_v63, %v2386_v7 }
 0xb3f   : > { %v6847_v8 = vpop.eup %6846  ;;  %v2392_v37 = vmul.f32 1.442695, %v2390_v31 }
 0xb40   : > { %v2389_v9 = vpop.xlane.xlu1 %2388  ;;  %v2509_v10 = vmul.f32 %v6847_v8, %v6843_v54 }
 0xb41   : > { %v2391_v11 = vsub.f32 %v2383_v1, %v2389_v9 }
 0xb42   : > { %6243 = vmatprep.mubr.msk.f32.mxu0 %vm1059_vm0, %v2509_v10 }
 0xb43   : > { %v6849_v12 = vpop.eup %6848  ;;  %v2394_v13 = vmul.f32 1.442695, %v2391_v11 }
 0xb44   : > { %v2510_v14 = vmul.f32 %v6849_v12, %v6845_v57 }
 0xb45   : > { %6850 = vpow2.f32 %v2394_v13 }
 0xb46   : > { %6244 = vmatmul.mubr.msk.f32.vlgmr.msra.gmra.mrb[42].mxu0 %vm1059_vm0, %v2510_v14  ;;  %6852 = vpow2.f32 %v2392_v37 }
 0xb47   : > { %6506 = vmatpush3.bf16.xpose.msra.mxu0 %v7392_v6  ;;  %6257 = vmatprep.mubr.f32.mxu0 %v2675_v15 }
 0xb48   : > { %6512 = vmatprep.subr.bf16.mxu0 %v7392_v6 }
 0xb4e   : > { %6258 = vmatmul.mubr.f32.vlgmr.msra.gmra.mrb[44].mxu0 %v2676_v17 }
 0xb4f   : > { %v7444_v19 = vpop.eup %6850  ;;  %6514 = vmatpush3.bf16.xpose.msra.mxu0 %v7392_v6  ;;  %6271 = vmatprep.mubr.f32.mxu0 %v2863_v18 }
 0xb50   : > { %v2399_v20 = vsel %vm1059_vm0, %v7444_v19, 0.0  ;;  %v6853_v50 = vpop.eup %6852 }
 0xb51   : > { %2400 = vadd.xlane.f32.xlu0 %v2399_v20  ;;  %v2396_v52 = vsel %vm1059_vm0, %v6853_v50, 0.0 }
 0xb56   : > { %6272 = vmatmul.mubr.f32.vlgmr.msra.gmra.mrb[46].mxu0 %v2864_v22 }
 0xb57   : > { %3348 = vmatprep.mubr.bf16.mxu0 %v6963_v28 }
 0xbde   : > { %v2401_v4 = vpop.xlane.xlu0 %2400 }
 0xc19   : > { %v7452_v23 = vpop.f32.mrb[42].mxu0 }
 0xc1a   : > { %v7454_v30 = vpop.f32.mrb[43].mxu0 }
 0xc21   : > { %v6259_v61 = vpop.f32.mrb[44].mxu0 }
 0xc22   : > { %v2743_v32 = vpop.f32.mrb[45].mxu0  ;;  %v2753_v33 = vmul.f32 0.17677669, %v6259_v61 }
 0xc23   : > { %v2752_v6 = vmul.f32 0.17677669, %v2743_v32 }
 0xc24   : > { %v2755_v39 = vadd.f32 %v7422_v34, %v2753_v33 }
 0xc25   : > { %v2754_v35 = vadd.f32 %v7422_v34, %v2752_v6 }
 0xc26   : > { %v2759_v46 = vsel %vm1059_vm0, %v2755_v39, -inf }
 0xc27   : > { %v2756_v38 = vsel %vm1059_vm0, %v2754_v35, -inf }
 0xc28   : > { %2757 = vmax.xlane.f32.xlu1 %v2756_v38 }
 0xc29   : > { %v6273_v24 = vpop.f32.mrb[46].mxu0 }
 0xc2a   : > { %v2931_v41 = vpop.f32.mrb[47].mxu0  ;;  %v2941_v42 = vmul.f32 0.17677669, %v6273_v24 }
 0xc2b   : > { %v2940_v45 = vmul.f32 0.17677669, %v2931_v41  ;;  %v6714_v41 = vld [vmem:[%s7862_s15] sm:$0xff]  }
 0xc2c   : > { %2760 = vmax.xlane.f32.xlu1 %v2759_v46  ;;  %v2943_v47 = vadd.f32 %v7422_v34, %v2941_v42  ;;  %v6717_v46 = vld [vmem:[%s7862_s15 + $0x18] sm:$0xff]  }
 0xc2d   : > { %v2942_v26 = vadd.f32 %v7422_v34, %v2940_v45  ;;  %v6715_v45 = vld [vmem:[%s7862_s15 + $0x8] sm:$0xff]  }
 0xc2e   : > { %v2947_v48 = vsel %vm1059_vm0, %v2943_v47, -inf }
 0xc2f   : > { %v2944_v27 = vsel %vm1059_vm0, %v2942_v26, -inf }
 0xc30   : > { %2945 = vmax.xlane.f32.xlu1 %v2944_v27  ;;  %v6719_v27 = vld [vmem:[%s7862_s15 + $0x28] sm:$0xff]  }
 0xc34   : > { %2948 = vmax.xlane.f32.xlu1 %v2947_v48  ;;  %v6721_v48 = vld [vmem:[%s7862_s15 + $0x38] sm:$0xff]  }
 0xc38   : > { %2397 = vadd.xlane.f32.xlu1 %v2396_v52 }
 0xcb5   : > { %v2758_v54 = vpop.xlane.xlu1 %2757 }
 0xcb6   : > { %v2762_v55 = vsub.f32 %v2754_v35, %v2758_v54 }
 0xcb8   : > { %v2764_v56 = vmul.f32 1.442695, %v2762_v55 }
 0xcb9   : > { %v2761_v57 = vpop.xlane.xlu1 %2760 }
 0xcba   : > { %6854 = vpow2.f32 %v2764_v56  ;;  %v2763_v58 = vsub.f32 %v2755_v39, %v2761_v57  ;;  %v5537_v57 = vld [vmem:[%s7863_s16] ss:$0 sm:$0xff] }
 0xcbc   : > { %v2766_v62 = vmul.f32 1.442695, %v2763_v58 }
 0xcbd   : > { %v2946_v63 = vpop.xlane.xlu1 %2945 }
 0xcbe   : > { %6856 = vpow2.f32 %v2766_v62  ;;  %v2950_v0 = vsub.f32 %v2942_v26, %v2946_v63  ;;  %v6718_v26 = vld [vmem:[%s7862_s15 + $0x20] sm:$0xff]  }
 0xcc0   : > { %v2952_v1 = vmul.f32 1.442695, %v2950_v0 }
 0xcc1   : > { %v2949_v2 = vpop.xlane.xlu1 %2948 }
 0xcc2   : > { %6858 = vpow2.f32 %v2952_v1  ;;  %v2951_v5 = vsub.f32 %v2943_v47, %v2949_v2  ;;  %v6720_v47 = vld [vmem:[%s7862_s15 + $0x30] sm:$0xff]  }
 0xcc3   : > { %6860 = vrcp.f32 %v2401_v4 }
 0xcc4   : > { %v6855_v7 = vpop.eup %6854  ;;  %v2954_v8 = vmul.f32 1.442695, %v2951_v5  ;;  %v6722_v5 = vld [vmem:[%s7864_s18] ss:$8 sps:$4 sm:$0xff]  }
 0xcc5   : > { %v2398_v9 = vpop.xlane.xlu1 %2397  ;;  %v2768_v10 = vsel %vm1059_vm0, %v6855_v7, 0.0 }
 0xcc6   : > { %6862 = vpow2.f32 %v2954_v8  ;;  %2769 = vadd.xlane.f32.xlu1 %v2768_v10  ;;  %v6725_v8 = vld [vmem:[%s7864_s18 + $0x10] ss:$8 sps:$4 sm:$0xff]  }
 0xcc7   : > { %6864 = vrcp.f32 %v2398_v9 }
 0xcc8   : > { %v6857_v11 = vpop.eup %6856 }
 0xcc9   : > { %v2771_v12 = vsel %vm1059_vm0, %v6857_v11, 0.0 }
 0xcca   : > { %2772 = vadd.xlane.f32.xlu0 %v2771_v12 }
 0xccc   : > { %v6859_v13 = vpop.eup %6858 }
 0xccd   : > { %v2956_v14 = vsel %vm1059_vm0, %v6859_v13, 0.0  ;;  %v6861_v15 = vpop.eup %6860 }
 0xcce   : > { %2957 = vadd.xlane.f32.xlu1 %v2956_v14  ;;  %v2405_v61 = vmul.f32 %v6861_v15, %v7444_v19  ;;  %v6730_v15 = vld [vmem:[%s7864_s18 + $0x24] ss:$8 sps:$4 sm:$0xff]  }
 0xcd0   : > { %v6863_v17 = vpop.eup %6862 }
 0xcd1   : > { %v6865_v18 = vpop.eup %6864  ;;  %v2959_v20 = vsel %vm1059_vm0, %v6863_v17, 0.0 }
 0xcd2   : > { %2960 = vadd.xlane.f32.xlu0 %v2959_v20  ;;  %v2404_v22 = vmul.f32 %v6865_v18, %v6853_v50  ;;  %v6733_v18 = vld [vmem:[%s7864_s18 + $0x34] ss:$8 sps:$4 sm:$0xff]   ;;  %v6731_v20 = vld [vmem:[%s7864_s18 + $0x30] ss:$8 sps:$4 sm:$0xff]  }
 0xcd4   : > { %6250 = vmatprep.mubr.msk.f32.mxu1 %vm1059_vm0, %v2404_v22  ;;  %v6736_v22 = vld [vmem:[%s7864_s18 + $0x44] ss:$8 sps:$4 sm:$0xff]  }
 0xcd5   : > { %6251 = vmatmul.mubr.msk.f32.vlgmr.msra.gmra.mrb[38].mxu1 %vm1059_vm0, %v2405_v61  ;;  %v6734_v61 = vld [vmem:[%s7864_s18 + $0x40] ss:$8 sps:$4 sm:$0xff]  }
 0xcd6   : > { %6510 = vmatpush3.bf16.msra.mxu1 %v7401_v21 }
 0xcd7   : > { %6516 = vmatprep.subr.bf16.mxu1 %v7409_v29 }
 0xd53   : > { %v2770_v31 = vpop.xlane.xlu1 %2769 }
 0xd54   : > { %6866 = vrcp.f32 %v2770_v31  ;;  %v6739_v31 = vld [vmem:[%s7864_s18 + $0x54] ss:$8 sps:$4 sm:$0xff]  }
 0xd57   : > { %v2773_v32 = vpop.xlane.xlu0 %2772 }
 0xd58   : > { %6868 = vrcp.f32 %v2773_v32  ;;  %v6737_v32 = vld [vmem:[%s7864_s18 + $0x50] ss:$8 sps:$4 sm:$0xff]  }
 0xd5b   : > { %v2958_v33 = vpop.xlane.xlu1 %2957 }
 0xd5c   : > { %6870 = vrcp.f32 %v2958_v33  ;;  %v6742_v33 = vld [vmem:[%s7864_s18 + $0x64] ss:$8 sps:$4 sm:$0xff]  }
 0xd5e   : > { %v6867_v6 = vpop.eup %6866 }
 0xd5f   : > { %v2961_v35 = vpop.xlane.xlu0 %2960  ;;  %v2776_v37 = vmul.f32 %v6867_v6, %v6855_v7  ;;  %v6724_v7 = vld [vmem:[%s7864_s18 + $0x4] ss:$8 sps:$4 sm:$0xff]   ;;  %v6740_v6 = vld [vmem:[%s7864_s18 + $0x60] ss:$8 sps:$4 sm:$0xff]  }
 0xd60   : > { %6872 = vrcp.f32 %v2961_v35  ;;  %3316 = vmatprep.subr.bf16.mxu0 %v6724_v7  ;;  %v6745_v35 = vld [vmem:[%s7864_s18 + $0x74] ss:$8 sps:$4 sm:$0xff]  }
 0xd61   : > { %6264 = vmatprep.mubr.msk.f32.mxu1 %vm1059_vm0, %v2776_v37  ;;  %3317 = vmatpush1.bf16.msra.mxu0 %v6722_v5  ;;  %v6743_v37 = vld [vmem:[%s7864_s18 + $0x70] ss:$8 sps:$4 sm:$0xff]   ;;  %v6757_v5 = vld [vmem:[%s7865_s23 + $0x28] sm:$0xff]  }
 0xd62   : > { %v6869_v19 = vpop.eup %6868  ;;  %v6758_v7 = vld [vmem:[%s7865_s23 + $0x70] sm:$0xff]  }
 0xd63   : > { %v2777_v38 = vmul.f32 %v6869_v19, %v6857_v11  ;;  %v6746_v19 = vld [vmem:[%s7865_s23 + $0x40] sm:$0xff]  }
 0xd65   : > { %6265 = vmatmul.mubr.msk.f32.vlgmr.msra.gmra.mrb[38].mxu1 %vm1059_vm0, %v2777_v38  ;;  %v6747_v38 = vld [vmem:[%s7865_s23] sm:$0xff]  }
 0xd66   : > { %v6871_v21 = vpop.eup %6870  ;;  %6518 = vmatpush3.bf16.msra.mxu1 %v7409_v29  ;;  %v6716_v29 = vld [vmem:[%s7862_s15 + $0x10] sm:$0xff]  }
 0xd67   : > { %v2964_v39 = vmul.f32 %v6871_v21, %v6859_v13  ;;  %6281 = vmatprep.subr.bf16.mxu1 %v6964_v25  ;;  %v6748_v21 = vld [vmem:[%s7865_s23 + $0x48] sm:$0xff]  }
 0xd69   : > { %6278 = vmatprep.mubr.msk.f32.mxu1 %vm1059_vm0, %v2964_v39  ;;  %v6749_v39 = vld [vmem:[%s7865_s23 + $0x8] sm:$0xff]  }
 0xd6a   : > { %v6873_v24 = vpop.eup %6872 }
 0xd6b   : > { %v2965_v42 = vmul.f32 %v6873_v24, %v6863_v17  ;;  %v6728_v17 = vld [vmem:[%s7864_s18 + $0x20] ss:$8 sps:$4 sm:$0xff]   ;;  %v6750_v24 = vld [vmem:[%s7865_s23 + $0x50] sm:$0xff]  }
 0xd6d   : > { %6279 = vmatmul.mubr.msk.f32.vlgmr.msra.gmra.mrb[38].mxu1 %vm1059_vm0, %v2965_v42  ;;  %v6752_v42 = vld [vmem:[%s7865_s23 + $0x58] sm:$0xff]  }
 0xd6e   : > { %6282 = vmatpush3.bf16.msra.mxu1 %v6714_v41  ;;  %6297 = vmatprep.mubr.msk.bf16.mxu1 %vm6967_vm7, %v6964_v25  ;;  %v6751_v41 = vld [vmem:[%s7865_s23 + $0x10] sm:$0xff]  }
 0xd6f   : > { %6283 = vmatprep.subr.bf16.mxu1 %v6964_v25 }
 0xd72   : > { %6284 = vmatpush3.bf16.msra.mxu1 %v6715_v45  ;;  %v6753_v45 = vld [vmem:[%s7865_s23 + $0x18] sm:$0xff]  }
 0xd73   : > { %6285 = vmatprep.subr.bf16.mxu1 %v6964_v25 }
 0xd76   : > { %6286 = vmatpush3.bf16.msra.mxu1 %v6716_v29  ;;  %v6754_v29 = vld [vmem:[%s7865_s23 + $0x60] sm:$0xff]  }
 0xd77   : > { %6287 = vmatprep.subr.bf16.mxu1 %v6964_v25 }
 0xd7a   : > { %6288 = vmatpush3.bf16.msra.mxu1 %v6717_v46  ;;  %v6755_v46 = vld [vmem:[%s7865_s23 + $0x20] sm:$0xff]  }
 0xd7b   : > { %6289 = vmatprep.subr.bf16.mxu1 %v6964_v25 }
 0xd7e   : > { %6290 = vmatpush3.bf16.msra.mxu1 %v6718_v26  ;;  %v6756_v26 = vld [vmem:[%s7865_s23 + $0x68] sm:$0xff]  }
 0xd7f   : > { %6291 = vmatprep.subr.bf16.mxu1 %v6964_v25 }
 0xd82   : > { %6292 = vmatpush3.bf16.msra.mxu1 %v6719_v27 }
 0xd83   : > { %6293 = vmatprep.subr.bf16.mxu1 %v6964_v25 }
 0xd86   : > { %6294 = vmatpush3.bf16.msra.mxu1 %v6720_v47 }
 0xd87   : > { %6295 = vmatprep.subr.bf16.mxu1 %v6964_v25 }
 0xd8a   : > { %6296 = vmatpush3.bf16.msra.mxu1 %v6721_v48 }
 0xd8b   : > { %5905 = vmatprep.subr.bf16.mxu1 %v6746_v19 }
 0xe40   : > { %v6280_v50 = vpop.f32.mrb[38].mxu1 }
 0xe41   : > { %v6599_v52 = vadd.f32 %v6280_v50, %v7452_v23  ;;  %v3040_v54 = vpop.f32.mrb[39].mxu1 }
 0xe42   : > { %v6600_v55 = vadd.f32 %v3040_v54, %v7454_v30  ;;  %v6727_v30 = vld [vmem:[%s7864_s18 + $0x14] ss:$8 sps:$4 sm:$0xff]  }
 0xe43   : > { %3318 = vmatprep.subr.bf16.mxu0 %v6727_v30  ;;  %v6759_v30 = vld [vmem:[%s7865_s23 + $0x30] sm:$0xff]  }
 0xe44   : > { %v3051_v56 = vpack.c.bf16 %v6599_v52, %v6600_v55  ;;  %3319 = vmatpush1.bf16.msra.mxu0 %v6725_v8  ;;  %v6760_v8 = vld [vmem:[%s7865_s23 + $0x78] sm:$0xff]  }
 0xe45   : > { %3320 = vmatprep.subr.bf16.mxu0 %v6730_v15 }
 0xe46   : > { %6298 = vmatmul.mubr.bf16.vlgmr.msra.gmra.mrb[40].mxu1 %v3051_v56  ;;  %v5546_v56 = vld [vmem:[%s7866_s22] ss:$0 sm:$0xff] }
 0xe47   : > { %5906 = vmatpush3.bf16.msra.mxu1 %v6747_v38 }
 0xe48   : > { %3321 = vmatpush1.bf16.msra.mxu0 %v6728_v17  ;;  %5907 = vmatprep.subr.bf16.mxu1 %v6748_v21 }
 0xe49   : > { %3322 = vmatprep.subr.bf16.mxu0 %v6733_v18 }
 0xe4b   : > { %5908 = vmatpush3.bf16.msra.mxu1 %v6749_v39 }
 0xe4c   : > { %3323 = vmatpush1.bf16.msra.mxu0 %v6731_v20  ;;  %5909 = vmatprep.subr.bf16.mxu1 %v6750_v24 }
 0xe4d   : > { %3324 = vmatprep.subr.bf16.mxu0 %v6736_v22 }
 0xe4f   : > { %5910 = vmatpush3.bf16.msra.mxu1 %v6751_v41 }
 0xe50   : > { %3325 = vmatpush1.bf16.msra.mxu0 %v6734_v61  ;;  %5911 = vmatprep.subr.bf16.mxu1 %v6752_v42 }
 0xe51   : > { %3326 = vmatprep.subr.bf16.mxu0 %v6739_v31 }
 0xe53   : > { %5912 = vmatpush3.bf16.msra.mxu1 %v6753_v45 }
 0xe54   : > { %3327 = vmatpush1.bf16.msra.mxu0 %v6737_v32  ;;  %5913 = vmatprep.subr.bf16.mxu1 %v6754_v29 }
 0xe55   : > { %3328 = vmatprep.subr.bf16.mxu0 %v6742_v33 }
 0xe57   : > { %5914 = vmatpush3.bf16.msra.mxu1 %v6755_v46  ;;  %v6762_v46 = vld [vmem:[%s7046_s12 + $0xc0] ss:$12 sps:$4 sm:$0xff]  }
 0xe58   : > { %3329 = vmatpush1.bf16.msra.mxu0 %v6740_v6  ;;  %5915 = vmatprep.subr.bf16.mxu1 %v6756_v26  ;;  %v6764_v26 = vld [vmem:[%s7046_s12 + $0xc4] ss:$12 sps:$4 sm:$0xff]  }
 0xe59   : > { %3330 = vmatprep.subr.bf16.mxu0 %v6745_v35 }
 0xe5b   : > { %5916 = vmatpush3.bf16.msra.mxu1 %v6757_v5  ;;  %v6777_v5 = vld [vmem:[%s7046_s12 + $0x110] ss:$12 sps:$4 sm:$0xff]  }
 0xe5c   : > { %3331 = vmatpush1.bf16.msra.mxu0 %v6743_v37  ;;  %5917 = vmatprep.subr.bf16.mxu1 %v6758_v7  ;;  %v5564_v37 = vld [vmem:[%s7869_s20] ss:$0 sm:$0xff]  ;;  %v6780_v7 = vld [vmem:[%s7046_s12 + $0x124] ss:$12 sps:$4 sm:$0xff]  }
 0xe5d   : > { %3763 = vmatprep.subr.bf16.mxu0 %v6764_v26 }
 0xe5f   : > { %5918 = vmatpush3.bf16.msra.mxu1 %v6759_v30  ;;  %v6778_v30 = vld [vmem:[%s7046_s12 + $0x120] ss:$12 sps:$4 sm:$0xff]  }
 0xe60   : > { %5919 = vmatprep.subr.bf16.mxu1 %v6760_v8  ;;  %v6781_v8 = vld [vmem:[%s7046_s12 + $0x128] ss:$12 sps:$4 sm:$0xff]  }
 0xf19   : > { %v3157_v58 = vpop.f32.mrb[40].mxu1 }
 0xf1a   : > { %v3158_v62 = vadd.f32 %v5537_v57, %v3157_v58  ;;  %v6299_v63 = vpop.f32.mrb[41].mxu1 }
 0xf1b   : > { %v3160_v0 = vpop.f32.mrb[42].mxu1 }
 0xf1c   : > { %v3161_v1 = vadd.f32 %v5537_v57, %v3160_v0  ;;  %v6300_v2 = vpop.f32.mrb[43].mxu1  ;;  %v3164_v4 = vadd.f32 %v3158_v62, %v7352_v49  ;;  %v5547_v0 = vld [vmem:[%s7867_s26] ss:$0 sm:$0xff] }
 0xf1e   : > { %3166 = vadd.xlane.f32.xlu1 %v3164_v4  ;;  %v3165_v23 = vadd.f32 %v3161_v1, %v7354_v43 }
 0xf20   : > { %3168 = vadd.xlane.f32.xlu0 %v3165_v23 }
 0xfab   : > { %v3167_v9 = vpop.xlane.xlu1 %3166 }
 0xfac   : > { %v3171_v10 = vmul.f32 0.0078125, %v3167_v9  ;;  %v6761_v9 = vld [vmem:[%s7865_s23 + $0x38] sm:$0xff]  }
 0xfad   : > { %v3169_v11 = vpop.xlane.xlu0 %3168  ;;  %5920 = vmatpush3.bf16.msra.mxu1 %v6761_v9  ;;  %v6784_v9 = vld [vmem:[%s7046_s12 + $0x13c] ss:$12 sps:$4 sm:$0xff]  }
 0xfae   : > { %v7506_v49 = vsub.f32 %v3164_v4, %v3171_v10  ;;  %v3172_v43 = vmul.f32 0.0078125, %v3169_v11  ;;  %6301 = vmatprep.subr.bf16.mxu1 %v6964_v25  ;;  %v3224_v10 = vld [vmem:[%s7868_s0] sm:$0x3] }
 0xfaf   : > { %v3229_v11 = vrot.slane %v3224_v10, %v7347_v40 }
 0xfb0   : > { %v7508_v12 = vsub.f32 %v3165_v23, %v3172_v43  ;;  %v3175_v13 = vmul.f32 %v7506_v49, %v7506_v49 }
 0xfb2   : > { %3177 = vadd.xlane.f32.xlu1 %v3175_v13  ;;  %v3176_v14 = vmul.f32 %v7508_v12, %v7508_v12 }
 0xfb4   : > { %3179 = vadd.xlane.f32.xlu0 %v3176_v14 }
0x103f   : > { %v3178_v27 = vpop.xlane.xlu1 %3177 }
0x1040   : > { %v3181_v47 = vmul.f32 0.0078125, %v3178_v27  ;;  %v6765_v27 = vld [vmem:[%s7046_s12 + $0xc8] ss:$12 sps:$4 sm:$0xff]  }
0x1041   : > { %v3180_v48 = vpop.xlane.xlu0 %3179 }
0x1042   : > { %v3183_v50 = vadd.f32 1e-05, %v3181_v47  ;;  %v3182_v52 = vmul.f32 0.0078125, %v3180_v48  ;;  %v6768_v47 = vld [vmem:[%s7046_s12 + $0xdc] ss:$12 sps:$4 sm:$0xff]  }
0x1043   : > { %v6769_v48 = vld [vmem:[%s7046_s12 + $0xe0] ss:$12 sps:$4 sm:$0xff]  }
0x1044   : > { %6874 = vrsqrt.f32 %v3183_v50  ;;  %v3184_v54 = vadd.f32 1e-05, %v3182_v52  ;;  %v6766_v50 = vld [vmem:[%s7046_s12 + $0xd8] ss:$12 sps:$4 sm:$0xff]  }
0x1046   : > { %6876 = vrsqrt.f32 %v3184_v54 }
0x104e   : > { %v6875_v55 = vpop.eup %6874 }
0x104f   : > { %v3187_v57 = vmul.f32 %v6875_v55, %v7506_v49  ;;  %v3233_v49 = vrot.slane %v3224_v10, %v7363_v53  ;;  %v6782_v10 = vld [vmem:[%s7046_s12 + $0x138] ss:$12 sps:$4 sm:$0xff]  }
0x1050   : > { %v6877_v58 = vpop.eup %6876 }
0x1051   : > { %v3188_v62 = vmul.f32 %v6877_v58, %v7508_v12  ;;  %v3196_v63 = vmul.f32 %v5546_v56, %v3187_v57 }
0x1053   : > { %v3197_v1 = vmul.f32 %v5546_v56, %v3188_v62  ;;  %v3205_v2 = vadd.f32 %v5547_v0, %v3196_v63 }
0x1055   : > { %v3206_v4 = vadd.f32 %v5547_v0, %v3197_v1  ;;  %v6772_v0 = vld [vmem:[%s7046_s12 + $0xf4] ss:$12 sps:$4 sm:$0xff]   ;;  %v6770_v1 = vld [vmem:[%s7046_s12 + $0xf0] ss:$12 sps:$4 sm:$0xff]  }
0x1057   : > { %v3207_v23 = vpack.c.bf16 %v3206_v4, %v3205_v2 }
0x1059   : > { %3349 = vmatmul.mubr.bf16.vlgmr.msra.gmra.mrb[48].mxu0 %v3207_v23  ;;  %v6774_v23 = vld [vmem:[%s7046_s12 + $0x108] ss:$12 sps:$4 sm:$0xff]  }
0x105a   : > { %3795 = vmatprep.mubr.bf16.mxu0 %v6963_v28  ;;  %3764 = vmatpush1.bf16.msra.mxu0 %v6762_v46 }
0x105b   : > { %3765 = vmatprep.subr.bf16.mxu0 %v6768_v47 }
0x105e   : > { %3766 = vmatpush1.bf16.msra.mxu0 %v6766_v50 }
0x105f   : > { %3767 = vmatprep.subr.bf16.mxu0 %v6772_v0 }
0x1062   : > { %3768 = vmatpush1.bf16.msra.mxu0 %v6770_v1 }
0x112c   : > { %v3350_v43 = vpop.f32.mrb[48].mxu0 }
0x112d   : > { %v3351_v12 = vadd.f32 %v3350_v43, %v3229_v11  ;;  %v3352_v13 = vpop.f32.mrb[49].mxu0  ;;  %v6786_v43 = vld [vmem:[%s7046_s12 + $0x150] ss:$12 sps:$4 sm:$0xff]  }
0x112e   : > { %v3353_v14 = vadd.f32 %v3352_v13, %v3233_v49  ;;  %v3354_v15 = vpop.f32.mrb[50].mxu0  ;;  %v6792_v13 = vld [vmem:[%s7046_s12 + $0x16c] ss:$12 sps:$4 sm:$0xff]  }
0x112f   : > { %v3355_v17 = vadd.f32 %v3354_v15, %v3229_v11  ;;  %v3356_v18 = vpop.f32.mrb[51].mxu0  ;;  %v3359_v22 = vmax.f32 %v3351_v12, 0.0  ;;  %v6785_v11 = vld [vmem:[%s7046_s12 + $0x140] ss:$12 sps:$4 sm:$0xff]   ;;  %v6789_v12 = vld [vmem:[%s7046_s12 + $0x158] ss:$12 sps:$4 sm:$0xff]  }
0x1130   : > { %v3357_v20 = vadd.f32 %v3356_v18, %v3233_v49  ;;  %v3360_v31 = vmax.f32 %v3353_v14, 0.0  ;;  %v6788_v49 = vld [vmem:[%s7046_s12 + $0x154] ss:$12 sps:$4 sm:$0xff]   ;;  %v6793_v15 = vld [vmem:[%s7046_s12 + $0x170] ss:$12 sps:$4 sm:$0xff]  }
0x1131   : > { %v3361_v61 = vmax.f32 %v3355_v17, 0.0  ;;  %v6790_v14 = vld [vmem:[%s7046_s12 + $0x168] ss:$12 sps:$4 sm:$0xff]  }
0x1132   : > { %v3362_v32 = vmax.f32 %v3357_v20, 0.0 }
0x1133   : > { %v3363_v33 = vpack.c.bf16 %v3361_v61, %v3359_v22 }
0x1134   : > { %v3364_v6 = vpack.c.bf16 %v3362_v32, %v3360_v31 }
0x1136   : > { %3532 = vmatprep.mubr.bf16.mxu1 %v3364_v6 }
0x1137   : > { %3533 = vmatmul.mubr.bf16.vlgmr.msra.gmra.mrb[44].mxu1 %v3363_v33  ;;  %v5581_v33 = vld [vmem:[%s7870_s2] ss:$0 sm:$0xff] }
0x1138   : > { %6317 = vmatprep.mubr.msk.bf16.mxu1 %vm6967_vm7, %v6964_v25  ;;  %6302 = vmatpush3.bf16.msra.mxu1 %v6765_v27 }
0x1139   : > { %6303 = vmatprep.subr.bf16.mxu1 %v6964_v25 }
0x113c   : > { %6304 = vmatpush3.bf16.msra.mxu1 %v6769_v48 }
0x113d   : > { %6305 = vmatprep.subr.bf16.mxu1 %v6964_v25 }
0x120a   : > { %v5921_v35 = vpop.f32.mrb[44].mxu1 }
0x120b   : > { %v5922_v19 = vpop.f32.mrb[45].mxu1 }
0x120c   : > { %v5923_v38 = vadd.f32 %v5922_v19, %v5921_v35  ;;  %v5924_v21 = vpop.f32.mrb[46].mxu1 }
0x120d   : > { %v5925_v39 = vpop.f32.mrb[47].mxu1 }
0x120e   : > { %v3535_v24 = vadd.f32 %v5923_v38, %v5564_v37  ;;  %v5926_v41 = vadd.f32 %v5925_v39, %v5924_v21  ;;  %v5582_v38 = vld [vmem:[%s7871_s10] ss:$0 sm:$0xff] }
0x1210   : > { %v3538_v42 = vadd.f32 %v5926_v41, %v5564_v37  ;;  %v3541_v45 = vadd.f32 %v3535_v24, %v3205_v2  ;;  %v6773_v2 = vld [vmem:[%s7046_s12 + $0xf8] ss:$12 sps:$4 sm:$0xff]  }
0x1211   : > { %6306 = vmatpush3.bf16.msra.mxu1 %v6773_v2 }
0x1212   : > { %3543 = vadd.xlane.f32.xlu1 %v3541_v45  ;;  %v3542_v29 = vadd.f32 %v3538_v42, %v3206_v4  ;;  %v6776_v4 = vld [vmem:[%s7046_s12 + $0x10c] ss:$12 sps:$4 sm:$0xff]   ;;  %6307 = vmatprep.subr.bf16.mxu1 %v6964_v25  ;;  %v5615_v42 = vld [vmem:[%s7860_s7 + $0x3] sm:$0x7] }
0x1213   : > { %3769 = vmatprep.subr.bf16.mxu0 %v6776_v4  ;;  %v3627_v27 = vrot.slane %v5615_v42, %v7363_v53 }
0x1214   : > { %3545 = vadd.xlane.f32.xlu0 %v3542_v29  ;;  %3770 = vmatpush1.bf16.msra.mxu0 %v6774_v23 }
0x1215   : > { %6308 = vmatpush3.bf16.msra.mxu1 %v6777_v5  ;;  %3771 = vmatprep.subr.bf16.mxu0 %v6780_v7 }
0x1216   : > { %6309 = vmatprep.subr.bf16.mxu1 %v6964_v25 }
0x1218   : > { %3772 = vmatpush1.bf16.msra.mxu0 %v6778_v30 }
0x1219   : > { %6310 = vmatpush3.bf16.msra.mxu1 %v6781_v8  ;;  %3773 = vmatprep.subr.bf16.mxu0 %v6784_v9 }
0x121a   : > { %6311 = vmatprep.subr.bf16.mxu1 %v6964_v25 }
0x121c   : > { %3774 = vmatpush1.bf16.msra.mxu0 %v6782_v10 }
0x121d   : > { %6312 = vmatpush3.bf16.msra.mxu1 %v6785_v11  ;;  %3775 = vmatprep.subr.bf16.mxu0 %v6788_v49 }
0x121e   : > { %6313 = vmatprep.subr.bf16.mxu1 %v6964_v25 }
0x1220   : > { %3776 = vmatpush1.bf16.msra.mxu0 %v6786_v43 }
0x1221   : > { %6314 = vmatpush3.bf16.msra.mxu1 %v6789_v12  ;;  %3777 = vmatprep.subr.bf16.mxu0 %v6792_v13 }
0x1222   : > { %6315 = vmatprep.subr.bf16.mxu1 %v6964_v25 }
0x1224   : > { %3778 = vmatpush1.bf16.msra.mxu0 %v6790_v14 }
0x1225   : > { %6316 = vmatpush3.bf16.msra.mxu1 %v6793_v15 }
0x129f   : > { %v3544_v52 = vpop.xlane.xlu1 %3543 }
0x12a0   : > { %v3547_v54 = vmul.f32 0.0078125, %v3544_v52 }
0x12a1   : > { %v3546_v55 = vpop.xlane.xlu0 %3545 }
0x12a2   : > { %v3549_v56 = vsub.f32 %v3541_v45, %v3547_v54  ;;  %v3548_v57 = vmul.f32 0.0078125, %v3546_v55  ;;  %v3623_v45 = vrot.slane %v5615_v42, %v7347_v40 }
0x12a4   : > { %v3550_v58 = vsub.f32 %v3542_v29, %v3548_v57  ;;  %v3551_v62 = vmul.f32 %v3549_v56, %v3549_v56  ;;  %v3631_v29 = vrot.slane %v5615_v42, %v2080_v51 }
0x12a6   : > { %3553 = vadd.xlane.f32.xlu1 %v3551_v62  ;;  %v3552_v63 = vmul.f32 %v3550_v58, %v3550_v58 }
0x12a8   : > { %3555 = vadd.xlane.f32.xlu0 %v3552_v63 }
0x1333   : > { %v3554_v17 = vpop.xlane.xlu1 %3553 }
0x1334   : > { %v3557_v18 = vmul.f32 0.0078125, %v3554_v17 }
0x1335   : > { %v3556_v20 = vpop.xlane.xlu0 %3555 }
0x1336   : > { %v3559_v22 = vadd.f32 1e-05, %v3557_v18  ;;  %v3558_v61 = vmul.f32 0.0078125, %v3556_v20 }
0x1338   : > { %6878 = vrsqrt.f32 %v3559_v22  ;;  %v3560_v31 = vadd.f32 1e-05, %v3558_v61 }
0x133a   : > { %6880 = vrsqrt.f32 %v3560_v31 }
0x1342   : > { %v6879_v32 = vpop.eup %6878 }
0x1343   : > { %v3563_v6 = vmul.f32 %v6879_v32, %v3549_v56 }
0x1344   : > { %v6881_v35 = vpop.eup %6880 }
0x1345   : > { %v3564_v37 = vmul.f32 %v6881_v35, %v3550_v58  ;;  %v3572_v19 = vmul.f32 %v5581_v33, %v3563_v6 }
0x1347   : > { %v3573_v21 = vmul.f32 %v5581_v33, %v3564_v37  ;;  %v7587_v39 = vadd.f32 %v5582_v38, %v3572_v19 }
0x1349   : > { %v7589_v24 = vadd.f32 %v5582_v38, %v3573_v21 }
0x134b   : > { %v3583_v41 = vpack.c.bf16 %v7589_v24, %v7587_v39 }
0x134d   : > { %3796 = vmatmul.mubr.bf16.vlgmr.msra.gmra.mrb[52].mxu0 %v3583_v41  ;;  %6318 = vmatmul.mubr.bf16.vlgmr.msra.gmra.mrb[48].mxu1 %v3583_v41 }
0x1420   : > { %v3797_v46 = vpop.f32.mrb[52].mxu0  ;;  %v3840_v26 = vpop.f32.mrb[48].mxu1 }
0x1421   : > { %v7598_v47 = vadd.f32 %v3797_v46, %v3623_v45  ;;  %v3841_v48 = vadd.f32 %v3840_v26, %v3631_v29  ;;  %v3799_v50 = vpop.f32.mrb[53].mxu0  ;;  %v6319_v52 = vpop.f32.mrb[49].mxu1 }
0x1422   : > { %v3801_v54 = vpop.f32.mrb[54].mxu0  ;;  %v3843_v55 = vpop.f32.mrb[50].mxu1  ;;  %v3800_v63 = vadd.f32 %v3799_v50, %v3627_v27 }
0x1423   : > { %v3844_v56 = vadd.f32 %v3843_v55, %v3631_v29  ;;  %v3803_v57 = vpop.f32.mrb[55].mxu0  ;;  %v6320_v58 = vpop.f32.mrb[51].mxu1  ;;  %v3847_v62 = vmul.f32 %v7373_v59, %v7598_v47  ;;  %v4407_v51 = vmul.f32 %v7397_v44, %v7598_v47  ;;  %v4055_v1 = vmul.f32 %v7376_v60, %v3841_v48 }
0x1424   : > { %v3804_v0 = vadd.f32 %v3803_v57, %v3627_v27  ;;  %v3950_v23 = vmul.f32 %v7373_v59, %v3841_v48  ;;  %v4322_v30 = vmul.f32 %v7381_v3, %v3841_v48  ;;  %v4510_v10 = vmul.f32 %v7397_v44, %v3841_v48 }
0x1425   : > { %6325 = vmatprep.mubr.f32.mxu0 %v3847_v62  ;;  %6367 = vmatprep.mubr.f32.mxu1 %v4407_v51  ;;  %v4056_v2 = vmul.f32 %v7376_v60, %v3844_v56  ;;  %v3951_v5 = vmul.f32 %v7373_v59, %v3844_v56  ;;  %v4323_v8 = vmul.f32 %v7381_v3, %v3844_v56 }
0x1426   : > { %v7606_v4 = vpack.c.bf16 %v3804_v0, %v3800_v63  ;;  %v4511_v11 = vmul.f32 %v7397_v44, %v3844_v56  ;;  %v7622_v43 = vadd.f32 %v3801_v54, %v3623_v45  ;;  %v3952_v15 = vmul.f32 %v7376_v60, %v7598_v47 }
0x1427   : > { %v6527_v7 = vpack.c.bf16 %v4056_v2, %v4055_v1  ;;  %v7614_v9 = vpack.c.bf16 %v3951_v5, %v3950_v23  ;;  %v7620_v49 = vpack.c.bf16 %v4323_v8, %v4322_v30 }
0x1428   : > { %6520 = vmatprep.subr.bf16.mxu0 %v7606_v4  ;;  %6544 = vmatprep.subr.bf16.mxu1 %v7606_v4  ;;  %v7625_v12 = vpack.c.bf16 %v4511_v11, %v4510_v10  ;;  %v3848_v13 = vmul.f32 %v7373_v59, %v7622_v43  ;;  %v4408_v14 = vmul.f32 %v7397_v44, %v7622_v43 }
0x1429   : > { %6522 = vmatpush3.bf16.xpose.msra.mxu0 %v7606_v4  ;;  %6546 = vmatpush3.bf16.xpose.msra.mxu1 %v7606_v4  ;;  %v3953_v17 = vmul.f32 %v7376_v60, %v7622_v43 }
0x142a   : > { %6524 = vmatprep.subr.bf16.mxu0 %v7606_v4  ;;  %6377 = vmatprep.subr.bf16.mxu1 %v6964_v25 }
0x1430   : > { %6326 = vmatmul.mubr.f32.vlgmr.msra.gmra.mrb[56].mxu0 %v3848_v13  ;;  %6368 = vmatmul.mubr.f32.vlgmr.msra.gmra.mrb[52].mxu1 %v4408_v14 }
0x1431   : > { %6526 = vmatpush3.bf16.xpose.msra.mxu0 %v7606_v4  ;;  %6332 = vmatprep.mubr.f32.mxu0 %v3952_v15 }
0x1432   : > { %6528 = vmatprep.subr.bf16.mxu0 %v6527_v7  ;;  %6393 = vmatprep.mubr.msk.bf16.mxu1 %vm6967_vm7, %v6964_v25 }
0x1438   : > { %6333 = vmatmul.mubr.f32.vlgmr.msra.gmra.mrb[58].mxu0 %v3953_v17 }
0x1439   : > { %6530 = vmatpush3.bf16.msra.mxu0 %v6527_v7 }
0x143a   : > { %6532 = vmatprep.subr.bf16.mxu0 %v7614_v9 }
0x1503   : > { %v6327_v59 = vpop.f32.mrb[56].mxu0  ;;  %v7640_v44 = vpop.f32.mrb[52].mxu1 }
0x1504   : > { %v3915_v18 = vpop.f32.mrb[57].mxu0  ;;  %v7642_v20 = vpop.f32.mrb[53].mxu1  ;;  %v3925_v61 = vmul.f32 0.17677669, %v6327_v59 }
0x1505   : > { %v3924_v33 = vmul.f32 0.17677669, %v3915_v18  ;;  %v4219_v18 = vmul.f32 %v7381_v3, %v7598_v47 }
0x1506   : > { %v3927_v19 = vadd.f32 %v7422_v34, %v3925_v61  ;;  %v4485_v61 = vmul.f32 0.17677669, %v7640_v44 }
0x1507   : > { %v3926_v21 = vadd.f32 %v7422_v34, %v3924_v33 }
0x1508   : > { %v3931_v41 = vsel %vm1059_vm0, %v3927_v19, -inf }
0x1509   : > { %v3928_v42 = vsel %vm1059_vm0, %v3926_v21, -inf }
0x150b   : > { %v6334_v22 = vpop.f32.mrb[58].mxu0 }
0x150c   : > { %v4030_v31 = vmul.f32 0.17677669, %v6334_v22  ;;  %v4020_v32 = vpop.f32.mrb[59].mxu0 }
0x150d   : > { %v4029_v6 = vmul.f32 0.17677669, %v4020_v32  ;;  %v4484_v32 = vmul.f32 0.17677669, %v7642_v20 }
0x150e   : > { %v4032_v35 = vadd.f32 %v7422_v34, %v4030_v31 }
0x150f   : > { %v4031_v60 = vadd.f32 %v7422_v34, %v4029_v6  ;;  %v6922_v6 = vld [vmem:[%s7419_s11] ss:$0 sm:$0xff]  ;;  %s7872_s11 = sld [smem:[#allocation16_spill]] }
0x1510   : > { %v4036_v37 = vsel %vm1059_vm0, %v4032_v35, -inf }
0x1511   : > { %4037 = vmax.xlane.f32.xlu0 %v4036_v37  ;;  %v4033_v38 = vsel %vm1059_vm0, %v4031_v60, -inf  ;;  %v4487_v37 = vadd.f32 %v6922_v6, %v4485_v61 }
0x1512   : > { %4034 = vmax.xlane.f32.xlu1 %v4033_v38 }
0x1515   : > { %3932 = vmax.xlane.f32.xlu0 %v3931_v41 }
0x1516   : > { %3929 = vmax.xlane.f32.xlu1 %v3928_v42 }
0x159e   : > { %v4038_v45 = vpop.xlane.xlu0 %4037 }
0x159f   : > { %v4040_v29 = vsub.f32 %v4032_v35, %v4038_v45  ;;  %v4035_v46 = vpop.xlane.xlu1 %4034 }
0x15a0   : > { %v4039_v26 = vsub.f32 %v4031_v60, %v4035_v46 }
0x15a1   : > { %v4043_v27 = vmul.f32 1.442695, %v4040_v29 }
0x15a2   : > { %v4041_v48 = vmul.f32 1.442695, %v4039_v26  ;;  %v3933_v50 = vpop.xlane.xlu0 %3932 }
0x15a3   : > { %6882 = vpow2.f32 %v4043_v27  ;;  %v3935_v52 = vsub.f32 %v3927_v19, %v3933_v50  ;;  %v3930_v54 = vpop.xlane.xlu1 %3929 }
0x15a4   : > { %6884 = vpow2.f32 %v4041_v48  ;;  %v3934_v55 = vsub.f32 %v3926_v21, %v3930_v54 }
0x15a5   : > { %v3938_v34 = vmul.f32 1.442695, %v3935_v52 }
0x15a6   : > { %v3936_v56 = vmul.f32 1.442695, %v3934_v55 }
0x15a7   : > { %6886 = vpow2.f32 %v3938_v34 }
0x15a8   : > { %6888 = vpow2.f32 %v3936_v56 }
0x15ad   : > { %v6883_v57 = vpop.eup %6882 }
0x15ae   : > { %v6885_v58 = vpop.eup %6884  ;;  %v4048_v62 = vsel %vm1059_vm0, %v6883_v57, 0.0 }
0x15af   : > { %4049 = vadd.xlane.f32.xlu0 %v4048_v62  ;;  %v4045_v51 = vsel %vm1059_vm0, %v6885_v58, 0.0  ;;  %v6794_v62 = vld [vmem:[%s7862_s15 + $0x40] sm:$0xff]  }
0x15b0   : > { %4046 = vadd.xlane.f32.xlu1 %v4045_v51  ;;  %6378 = vmatpush3.bf16.msra.mxu1 %v6794_v62  ;;  %v6795_v51 = vld [vmem:[%s7862_s15 + $0x48] sm:$0xff]  }
0x15b1   : > { %v6887_v63 = vpop.eup %6886  ;;  %6379 = vmatprep.subr.bf16.mxu1 %v6964_v25  ;;  %v6829_v62 = vld [vmem:[%s7865_s23 + $0x88] sm:$0xff]  }
0x15b2   : > { %v6889_v0 = vpop.eup %6888  ;;  %v3943_v1 = vsel %vm1059_vm0, %v6887_v63, 0.0 }
0x15b3   : > { %3944 = vadd.xlane.f32.xlu0 %v3943_v1  ;;  %v3940_v2 = vsel %vm1059_vm0, %v6889_v0, 0.0  ;;  %v6798_v1 = vld [vmem:[%s7862_s15 + $0x60] sm:$0xff]  }
0x15b4   : > { %3941 = vadd.xlane.f32.xlu1 %v3940_v2  ;;  %6380 = vmatpush3.bf16.msra.mxu1 %v6795_v51  ;;  %v6799_v2 = vld [vmem:[%s7862_s15 + $0x68] sm:$0xff]   ;;  %v6830_v51 = vld [vmem:[%s7865_s23 + $0xd0] sm:$0xff]  }
0x15b5   : > { %6381 = vmatprep.subr.bf16.mxu1 %v6964_v25 }
0x163c   : > { %v4050_v23 = vpop.xlane.xlu0 %4049 }
0x163d   : > { %6890 = vrcp.f32 %v4050_v23  ;;  %v4047_v5 = vpop.xlane.xlu1 %4046  ;;  %v6800_v23 = vld [vmem:[%s7862_s15 + $0x70] sm:$0xff]  }
0x163e   : > { %6892 = vrcp.f32 %v4047_v5 }
0x1640   : > { %v3945_v30 = vpop.xlane.xlu0 %3944 }
0x1641   : > { %v3942_v7 = vpop.xlane.xlu1 %3941 }
0x1642   : > { %6894 = vrcp.f32 %v3942_v7 }
0x1643   : > { %6896 = vrcp.f32 %v3945_v30 }
0x1647   : > { %v6891_v8 = vpop.eup %6890 }
0x1648   : > { %v6893_v10 = vpop.eup %6892  ;;  %v4054_v13 = vmul.f32 %v6891_v8, %v6883_v57 }
0x1649   : > { %v4053_v11 = vmul.f32 %v6893_v10, %v6885_v58 }
0x164b   : > { %6339 = vmatprep.mubr.msk.f32.mxu0 %vm1059_vm0, %v4053_v11 }
0x164c   : > { %v6895_v14 = vpop.eup %6894  ;;  %6340 = vmatmul.mubr.msk.f32.vlgmr.msra.gmra.mrb[60].mxu0 %vm1059_vm0, %v4054_v13 }
0x164d   : > { %6534 = vmatpush3.bf16.msra.mxu0 %v7614_v9  ;;  %v3948_v15 = vmul.f32 %v6895_v14, %v6889_v0  ;;  %v6897_v17 = vpop.eup %6896  ;;  %v4220_v9 = vmul.f32 %v7381_v3, %v7622_v43  ;;  %v4491_v43 = vsel %vm1059_vm0, %v4487_v37, -inf  ;;  %v6797_v0 = vld [vmem:[%s7862_s15 + $0x58] sm:$0xff]  }
0x164e   : > { %6536 = vmatprep.subr.bf16.mxu0 %v7606_v4  ;;  %v3949_v59 = vmul.f32 %v6897_v17, %v6887_v63  ;;  %v6796_v63 = vld [vmem:[%s7862_s15 + $0x50] sm:$0xff]  }
0x164f   : > { %6346 = vmatprep.mubr.msk.f32.mxu0 %vm1059_vm0, %v3948_v15  ;;  %6382 = vmatpush3.bf16.msra.mxu1 %v6796_v63  ;;  %v6831_v63 = vld [vmem:[%s7865_s23 + $0x90] sm:$0xff]  }
0x1650   : > { %6383 = vmatprep.subr.bf16.mxu1 %v6964_v25 }
0x1653   : > { %6384 = vmatpush3.bf16.msra.mxu1 %v6797_v0  ;;  %v6832_v0 = vld [vmem:[%s7865_s23 + $0xd8] sm:$0xff]  }
0x1654   : > { %6347 = vmatmul.mubr.msk.f32.vlgmr.msra.gmra.mrb[60].mxu0 %vm1059_vm0, %v3949_v59  ;;  %6385 = vmatprep.subr.bf16.mxu1 %v6964_v25 }
0x1655   : > { %6353 = vmatprep.mubr.f32.mxu0 %v4219_v18 }
0x1656   : > { %6538 = vmatpush3.bf16.xpose.msra.mxu0 %v7606_v4 }
0x1657   : > { %6540 = vmatprep.subr.bf16.mxu0 %v7620_v49  ;;  %6386 = vmatpush3.bf16.msra.mxu1 %v6798_v1  ;;  %v6833_v1 = vld [vmem:[%s7865_s23 + $0x98] sm:$0xff]  }
0x1658   : > { %6387 = vmatprep.subr.bf16.mxu1 %v6964_v25 }
0x165b   : > { %6388 = vmatpush3.bf16.msra.mxu1 %v6799_v2  ;;  %v6834_v2 = vld [vmem:[%s7865_s23 + $0xe0] sm:$0xff]  }
0x165c   : > { %6389 = vmatprep.subr.bf16.mxu1 %v6964_v25 }
0x165d   : > { %6354 = vmatmul.mubr.f32.vlgmr.msra.gmra.mrb[62].mxu0 %v4220_v9  ;;  %v6801_v9 = vld [vmem:[%s7862_s15 + $0x78] sm:$0xff]  }
0x165e   : > { %6542 = vmatpush3.bf16.msra.mxu0 %v7620_v49  ;;  %v4486_v49 = vadd.f32 %v6922_v6, %v4484_v32 }
0x165f   : > { %6548 = vmatprep.subr.bf16.mxu0 %v7625_v12  ;;  %6390 = vmatpush3.bf16.msra.mxu1 %v6800_v23  ;;  %v6835_v23 = vld [vmem:[%s7865_s23 + $0xa0] sm:$0xff]  }
0x1660   : > { %v4488_v44 = vsel %vm1059_vm0, %v4486_v49, -inf  ;;  %6391 = vmatprep.subr.bf16.mxu1 %v6964_v25 }
0x1663   : > { %6392 = vmatpush3.bf16.msra.mxu1 %v6801_v9 }
0x1730   : > { %v6355_v22 = vpop.f32.mrb[62].mxu0 }
0x1731   : > { %v4297_v31 = vmul.f32 0.17677669, %v6355_v22  ;;  %v4287_v47 = vpop.f32.mrb[63].mxu0 }
0x1732   : > { %v4296_v33 = vmul.f32 0.17677669, %v4287_v47  ;;  %v5665_v47 = vld [vmem:[%s7863_s16 + $0x1] ss:$0 sm:$0xff] }
0x1733   : > { %v4299_v4 = vadd.f32 %v6922_v6, %v4297_v31 }
0x1734   : > { %v4298_v35 = vadd.f32 %v6922_v6, %v4296_v33 }
0x1735   : > { %v4303_v60 = vsel %vm1059_vm0, %v4299_v4, -inf }
0x1736   : > { %4304 = vmax.xlane.f32.xlu0 %v4303_v60  ;;  %v4300_v3 = vsel %vm1059_vm0, %v4298_v35, -inf }
0x1737   : > { %4301 = vmax.xlane.f32.xlu1 %v4300_v3  ;;  %v6804_v3 = vld [vmem:[%s7864_s18 + $0x84] ss:$8 sps:$4 sm:$0xff]  }
0x173a   : > { %4492 = vmax.xlane.f32.xlu0 %v4491_v43  ;;  %v6805_v43 = vld [vmem:[%s7864_s18 + $0x90] ss:$8 sps:$4 sm:$0xff]  }
0x173b   : > { %4489 = vmax.xlane.f32.xlu1 %v4488_v44 }
0x17c3   : > { %v4305_v19 = vpop.xlane.xlu0 %4304 }
0x17c4   : > { %v4307_v20 = vsub.f32 %v4299_v4, %v4305_v19  ;;  %v4302_v38 = vpop.xlane.xlu1 %4301 }
0x17c5   : > { %v4306_v21 = vsub.f32 %v4298_v35, %v4302_v38 }
0x17c6   : > { %v4310_v41 = vmul.f32 1.442695, %v4307_v20 }
0x17c7   : > { %v4308_v42 = vmul.f32 1.442695, %v4306_v21  ;;  %v4493_v45 = vpop.xlane.xlu0 %4492 }
0x17c8   : > { %6898 = vpow2.f32 %v4310_v41  ;;  %v4495_v29 = vsub.f32 %v4487_v37, %v4493_v45  ;;  %v4490_v46 = vpop.xlane.xlu1 %4489  ;;  %v6802_v37 = vld [vmem:[%s7864_s18 + $0x80] ss:$8 sps:$4 sm:$0xff]  }
0x17c9   : > { %6900 = vpow2.f32 %v4308_v42  ;;  %v4494_v26 = vsub.f32 %v4486_v49, %v4490_v46  ;;  %v6807_v49 = vld [vmem:[%s7864_s18 + $0x94] ss:$8 sps:$4 sm:$0xff]   ;;  %v6810_v42 = vld [vmem:[%s7864_s18 + $0xa4] ss:$8 sps:$4 sm:$0xff]   ;;  %v6808_v45 = vld [vmem:[%s7864_s18 + $0xa0] ss:$8 sps:$4 sm:$0xff]  }
0x17ca   : > { %v4498_v27 = vmul.f32 1.442695, %v4495_v29  ;;  %v6813_v29 = vld [vmem:[%s7864_s18 + $0xb4] ss:$8 sps:$4 sm:$0xff]   ;;  %v6811_v46 = vld [vmem:[%s7864_s18 + $0xb0] ss:$8 sps:$4 sm:$0xff]  }
0x17cb   : > { %v4496_v48 = vmul.f32 1.442695, %v4494_v26  ;;  %v6816_v26 = vld [vmem:[%s7864_s18 + $0xc4] ss:$8 sps:$4 sm:$0xff]  }
0x17cc   : > { %6902 = vpow2.f32 %v4498_v27  ;;  %v6814_v27 = vld [vmem:[%s7864_s18 + $0xc0] ss:$8 sps:$4 sm:$0xff]  }
0x17cd   : > { %6904 = vpow2.f32 %v4496_v48  ;;  %v6819_v48 = vld [vmem:[%s7864_s18 + $0xd4] ss:$8 sps:$4 sm:$0xff]  }
0x17d2   : > { %v6899_v50 = vpop.eup %6898 }
0x17d3   : > { %v6901_v52 = vpop.eup %6900  ;;  %v4315_v54 = vsel %vm1059_vm0, %v6899_v50, 0.0 }
0x17d4   : > { %4316 = vadd.xlane.f32.xlu0 %v4315_v54  ;;  %v4312_v55 = vsel %vm1059_vm0, %v6901_v52, 0.0  ;;  %v6820_v54 = vld [vmem:[%s7864_s18 + $0xe0] ss:$8 sps:$4 sm:$0xff]  }
0x17d5   : > { %4313 = vadd.xlane.f32.xlu1 %v4312_v55  ;;  %v6825_v55 = vld [vmem:[%s7864_s18 + $0xf4] ss:$8 sps:$4 sm:$0xff]  }
0x17d6   : > { %v6903_v34 = vpop.eup %6902 }
0x17d7   : > { %v6905_v56 = vpop.eup %6904  ;;  %v4503_v57 = vsel %vm1059_vm0, %v6903_v34, 0.0 }
0x17d8   : > { %4504 = vadd.xlane.f32.xlu0 %v4503_v57  ;;  %v4500_v58 = vsel %vm1059_vm0, %v6905_v56, 0.0  ;;  %v6827_v57 = vld [vmem:[%s7865_s23 + $0x80] sm:$0xff]  }
0x17d9   : > { %4501 = vadd.xlane.f32.xlu1 %v4500_v58  ;;  %v6828_v58 = vld [vmem:[%s7865_s23 + $0xc8] sm:$0xff]  }
0x1861   : > { %v4317_v5 = vpop.xlane.xlu0 %4316 }
0x1862   : > { %6906 = vrcp.f32 %v4317_v5  ;;  %v4314_v7 = vpop.xlane.xlu1 %4313  ;;  %v6836_v5 = vld [vmem:[%s7865_s23 + $0xe8] sm:$0xff]  }
0x1863   : > { %6908 = vrcp.f32 %v4314_v7 }
0x1865   : > { %v4505_v8 = vpop.xlane.xlu0 %4504 }
0x1866   : > { %v4502_v30 = vpop.xlane.xlu1 %4501 }
0x1867   : > { %6910 = vrcp.f32 %v4502_v30 }
0x1868   : > { %6912 = vrcp.f32 %v4505_v8 }
0x186c   : > { %v6907_v10 = vpop.eup %6906 }
0x186d   : > { %v6909_v11 = vpop.eup %6908  ;;  %v4321_v14 = vmul.f32 %v6907_v10, %v6899_v50  ;;  %v6817_v50 = vld [vmem:[%s7864_s18 + $0xd0] ss:$8 sps:$4 sm:$0xff]  }
0x186e   : > { %v4320_v13 = vmul.f32 %v6909_v11, %v6901_v52  ;;  %v6822_v52 = vld [vmem:[%s7864_s18 + $0xe4] ss:$8 sps:$4 sm:$0xff]  }
0x1870   : > { %6360 = vmatprep.mubr.msk.f32.mxu0 %vm1059_vm0, %v4320_v13 }
0x1871   : > { %v6911_v15 = vpop.eup %6910  ;;  %6361 = vmatmul.mubr.msk.f32.vlgmr.msra.gmra.mrb[60].mxu0 %vm1059_vm0, %v4321_v14 }
0x1872   : > { %6550 = vmatpush3.bf16.msra.mxu0 %v7625_v12  ;;  %v4508_v17 = vmul.f32 %v6911_v15, %v6905_v56  ;;  %v6913_v59 = vpop.eup %6912  ;;  %v6826_v56 = vld [vmem:[%s7865_s23 + $0xc0] sm:$0xff]  }
0x1873   : > { %v4509_v18 = vmul.f32 %v6913_v59, %v6903_v34  ;;  %4865 = vmatprep.subr.bf16.mxu0 %v6804_v3  ;;  %v6823_v34 = vld [vmem:[%s7864_s18 + $0xf0] ss:$8 sps:$4 sm:$0xff]   ;;  %5977 = vmatprep.subr.bf16.mxu1 %v6826_v56  ;;  %v5675_v15 = vld [vmem:[%s7866_s22 + $0x1] ss:$0 sm:$0xff] }
0x1874   : > { %6374 = vmatprep.mubr.msk.f32.mxu0 %vm1059_vm0, %v4508_v17 }
0x1879   : > { %6375 = vmatmul.mubr.msk.f32.vlgmr.msra.gmra.mrb[60].mxu0 %vm1059_vm0, %v4509_v18 }
0x187a   : > { %4897 = vmatprep.mubr.bf16.mxu0 %v6963_v28  ;;  %4866 = vmatpush1.bf16.msra.mxu0 %v6802_v37 }
0x187b   : > { %4867 = vmatprep.subr.bf16.mxu0 %v6807_v49 }
0x187e   : > { %4868 = vmatpush1.bf16.msra.mxu0 %v6805_v43 }
0x187f   : > { %4869 = vmatprep.subr.bf16.mxu0 %v6810_v42 }
0x1882   : > { %4870 = vmatpush1.bf16.msra.mxu0 %v6808_v45 }
0x1883   : > { %4871 = vmatprep.subr.bf16.mxu0 %v6813_v29 }
0x1886   : > { %4872 = vmatpush1.bf16.msra.mxu0 %v6811_v46 }
0x1887   : > { %4873 = vmatprep.subr.bf16.mxu0 %v6816_v26 }
0x188a   : > { %4874 = vmatpush1.bf16.msra.mxu0 %v6814_v27 }
0x188b   : > { %4875 = vmatprep.subr.bf16.mxu0 %v6819_v48 }
0x188e   : > { %4876 = vmatpush1.bf16.msra.mxu0 %v6817_v50 }
0x188f   : > { %4877 = vmatprep.subr.bf16.mxu0 %v6822_v52 }
0x1892   : > { %4878 = vmatpush1.bf16.msra.mxu0 %v6820_v54 }
0x1893   : > { %4879 = vmatprep.subr.bf16.mxu0 %v6825_v55 }
0x1896   : > { %4880 = vmatpush1.bf16.msra.mxu0 %v6823_v34 }
0x1897   : > { %6551 = vmatprep.subr.bf16.mxu0 %v6965_v16 }
0x194c   : > { %v6376_v22 = vpop.f32.mrb[60].mxu0 }
0x194d   : > { %v4584_v61 = vpop.f32.mrb[61].mxu0 }
0x194e   : > { %v4595_v31 = vpack.c.bf16 %v6376_v22, %v4584_v61  ;;  %v5677_v22 = vld [vmem:[%s7867_s26 + $0x1] ss:$0 sm:$0xff] }
0x1950   : > { %6394 = vmatmul.mubr.bf16.vlgmr.msra.gmra.mrb[56].mxu1 %v4595_v31 }
0x1951   : > { %5978 = vmatpush3.bf16.msra.mxu1 %v6827_v57 }
0x1952   : > { %5979 = vmatprep.subr.bf16.mxu1 %v6828_v58 }
0x1955   : > { %5980 = vmatpush3.bf16.msra.mxu1 %v6829_v62 }
0x1956   : > { %5981 = vmatprep.subr.bf16.mxu1 %v6830_v51 }
0x1959   : > { %5982 = vmatpush3.bf16.msra.mxu1 %v6831_v63 }
0x195a   : > { %5983 = vmatprep.subr.bf16.mxu1 %v6832_v0 }
0x195d   : > { %5984 = vmatpush3.bf16.msra.mxu1 %v6833_v1 }
0x195e   : > { %5985 = vmatprep.subr.bf16.mxu1 %v6834_v2  ;;  %v5155_v2 = vld [vmem:[%s7872_s11] sm:$0xff] }
0x1961   : > { %5986 = vmatpush3.bf16.msra.mxu1 %v6835_v23  ;;  %v5156_v23 = vld [vmem:[%s7872_s11 + $0x8] sm:$0xff] }
0x1962   : > { %5987 = vmatprep.subr.bf16.mxu1 %v6836_v5  ;;  %v6552_v5 = vpack.c.bf16 %v5156_v23, %v5155_v2 }
0x1a23   : > { %v4703_v12 = vpop.f32.mrb[56].mxu1 }
0x1a24   : > { %v4704_v32 = vadd.f32 %v5665_v47, %v4703_v12  ;;  %v6395_v33 = vpop.f32.mrb[57].mxu1 }
0x1a25   : > { %v4706_v6 = vpop.f32.mrb[58].mxu1  ;;  %v6838_v33 = vld [vmem:[%s7865_s23 + $0xf0] sm:$0xff]  }
0x1a26   : > { %v4707_v4 = vadd.f32 %v5665_v47, %v4706_v6  ;;  %v6396_v35 = vpop.f32.mrb[59].mxu1  ;;  %v4710_v60 = vadd.f32 %v4704_v32, %v7587_v39  ;;  %v6837_v32 = vld [vmem:[%s7865_s23 + $0xa8] sm:$0xff]   ;;  %v6839_v6 = vld [vmem:[%s7865_s23 + $0xb0] sm:$0xff]  }
0x1a27   : > { %5988 = vmatpush3.bf16.msra.mxu1 %v6837_v32  ;;  %v6841_v35 = vld [vmem:[%s7865_s23 + $0xb8] sm:$0xff]  }
0x1a28   : > { %4712 = vadd.xlane.f32.xlu1 %v4710_v60  ;;  %v4711_v28 = vadd.f32 %v4707_v4, %v7589_v24  ;;  %5989 = vmatprep.subr.bf16.mxu1 %v6838_v33  ;;  %v6840_v4 = vld [vmem:[%s7865_s23 + $0xf8] sm:$0xff]   ;;  %v5169_v33 = vld [vmem:[%s7872_s11 + $0x70] sm:$0xff] }
0x1a2a   : > { %4714 = vadd.xlane.f32.xlu0 %v4711_v28 }
0x1a2b   : > { %5990 = vmatpush3.bf16.msra.mxu1 %v6839_v6  ;;  %v5170_v6 = vld [vmem:[%s7872_s11 + $0x78] sm:$0xff] }
0x1a2c   : > { %5991 = vmatprep.subr.bf16.mxu1 %v6840_v4  ;;  %v6573_v4 = vpack.c.bf16 %v5170_v6, %v5169_v33 }
0x1a2f   : > { %5992 = vmatpush3.bf16.msra.mxu1 %v6841_v35 }
0x1a30   : > { %6575 = vmatprep.subr.bf16.mxu1 %v6965_v16 }
0x1ab5   : > { %v4713_v44 = vpop.xlane.xlu1 %4712 }
0x1ab6   : > { %v4716_v19 = vmul.f32 0.0078125, %v4713_v44 }
0x1ab7   : > { %v4715_v20 = vpop.xlane.xlu0 %4714 }
0x1ab8   : > { %v7709_v39 = vsub.f32 %v4710_v60, %v4716_v19  ;;  %v4717_v24 = vmul.f32 0.0078125, %v4715_v20  ;;  %v5694_v60 = vld [vmem:[%s7868_s0 + $0x2] sm:$0x3]  ;;  %s7873_s0 = sld [smem:[#allocation18_spill]] }
0x1ab9   : > { %v4782_v37 = vrot.slane %v5694_v60, %v7363_v53  ;;  %v5744_v53 = vld [vmem:[%s7869_s20 + $0x1] ss:$0 sm:$0xff] }
0x1aba   : > { %v7711_v38 = vsub.f32 %v4711_v28, %v4717_v24  ;;  %v4720_v21 = vmul.f32 %v7709_v39, %v7709_v39  ;;  %v4778_v28 = vrot.slane %v5694_v60, %v7347_v40 }
0x1abc   : > { %4722 = vadd.xlane.f32.xlu1 %v4720_v21  ;;  %v4721_v41 = vmul.f32 %v7711_v38, %v7711_v38 }
0x1abe   : > { %4724 = vadd.xlane.f32.xlu0 %v4721_v41  ;;  %v5243_v35 = vld [vmem:[%s7873_s0] sm:$0xff]  ;;  %v5244_v60 = vld [vmem:[%s7873_s0 + $0x8] sm:$0xff] }
0x1b49   : > { %v4723_v7 = vpop.xlane.xlu1 %4722 }
0x1b4a   : > { %v4726_v30 = vmul.f32 0.0078125, %v4723_v7  ;;  %v5157_v7 = vld [vmem:[%s7872_s11 + $0x10] sm:$0xff] }
0x1b4b   : > { %v4725_v8 = vpop.xlane.xlu0 %4724 }
0x1b4c   : > { %v4728_v10 = vadd.f32 1e-05, %v4726_v30  ;;  %v4727_v11 = vmul.f32 0.0078125, %v4725_v8  ;;  %v5158_v30 = vld [vmem:[%s7872_s11 + $0x18] sm:$0xff] }
0x1b4d   : > { %v6555_v8 = vpack.c.bf16 %v5158_v30, %v5157_v7 }
0x1b4e   : > { %6914 = vrsqrt.f32 %v4728_v10  ;;  %v4729_v13 = vadd.f32 1e-05, %v4727_v11  ;;  %v5159_v10 = vld [vmem:[%s7872_s11 + $0x20] sm:$0xff]  ;;  %v5160_v11 = vld [vmem:[%s7872_s11 + $0x28] sm:$0xff] }
0x1b50   : > { %6916 = vrsqrt.f32 %v4729_v13  ;;  %v6558_v13 = vpack.c.bf16 %v5160_v11, %v5159_v10 }
0x1b58   : > { %v6915_v14 = vpop.eup %6914 }
0x1b59   : > { %v4732_v17 = vmul.f32 %v6915_v14, %v7709_v39  ;;  %v5161_v14 = vld [vmem:[%s7872_s11 + $0x30] sm:$0xff] }
0x1b5a   : > { %v6917_v59 = vpop.eup %6916 }
0x1b5b   : > { %v4733_v18 = vmul.f32 %v6917_v59, %v7711_v38  ;;  %v4742_v9 = vmul.f32 %v5675_v15, %v4732_v17  ;;  %v5163_v59 = vld [vmem:[%s7872_s11 + $0x40] sm:$0xff] }
0x1b5d   : > { %v4743_v61 = vmul.f32 %v5675_v15, %v4733_v18  ;;  %v4752_v31 = vadd.f32 %v5677_v22, %v4742_v9  ;;  %v5162_v15 = vld [vmem:[%s7872_s11 + $0x38] sm:$0xff]  ;;  %v5164_v18 = vld [vmem:[%s7872_s11 + $0x48] sm:$0xff] }
0x1b5e   : > { %v6561_v17 = vpack.c.bf16 %v5162_v15, %v5161_v14  ;;  %v6564_v9 = vpack.c.bf16 %v5164_v18, %v5163_v59  ;;  %v5257_v14 = vld [vmem:[%s7873_s0 + $0x70] sm:$0xff]  ;;  %v5258_v15 = vld [vmem:[%s7873_s0 + $0x78] sm:$0xff] }
0x1b5f   : > { %v4753_v47 = vadd.f32 %v5677_v22, %v4743_v61  ;;  %v5165_v22 = vld [vmem:[%s7872_s11 + $0x50] sm:$0xff]  ;;  %v5166_v61 = vld [vmem:[%s7872_s11 + $0x58] sm:$0xff] }
0x1b61   : > { %v4754_v12 = vpack.c.bf16 %v4753_v47, %v4752_v31 }
0x1b63   : > { %4898 = vmatmul.mubr.bf16.vlgmr.msra.gmra.mrb[64].mxu0 %v4754_v12  ;;  %v5168_v12 = vld [vmem:[%s7872_s11 + $0x68] sm:$0xff] }
0x1b64   : > { %6429 = vmatprep.mubr.msk.f32.mxu0 %vm6967_vm7, %v6964_v25  ;;  %6553 = vmatpush3.bf16.msra.mxu0 %v6552_v5 }
0x1b65   : > { %6554 = vmatprep.subr.bf16.mxu0 %v6965_v16 }
0x1b68   : > { %6556 = vmatpush3.bf16.msra.mxu0 %v6555_v8 }
0x1b69   : > { %6557 = vmatprep.subr.bf16.mxu0 %v6965_v16 }
0x1b6c   : > { %6559 = vmatpush3.bf16.msra.mxu0 %v6558_v13 }
0x1b6d   : > { %6560 = vmatprep.subr.bf16.mxu0 %v6965_v16 }
0x1b70   : > { %6562 = vmatpush3.bf16.msra.mxu0 %v6561_v17  ;;  %v6597_v17 = vpack.c.bf16 %v5258_v15, %v5257_v14 }
0x1b71   : > { %6563 = vmatprep.subr.bf16.mxu0 %v6965_v16 }
0x1b74   : > { %6565 = vmatpush3.bf16.msra.mxu0 %v6564_v9 }
0x1b75   : > { %6566 = vmatprep.subr.bf16.mxu0 %v6965_v16 }
0x1c36   : > { %v4899_v3 = vpop.f32.mrb[64].mxu0 }
0x1c37   : > { %v4900_v49 = vadd.f32 %v4899_v3, %v4778_v28  ;;  %v4901_v43 = vpop.f32.mrb[65].mxu0  ;;  %v5246_v3 = vld [vmem:[%s7873_s0 + $0x18] sm:$0xff] }
0x1c38   : > { %v4902_v44 = vadd.f32 %v4901_v43, %v4782_v37  ;;  %v4903_v19 = vpop.f32.mrb[66].mxu0  ;;  %v5247_v43 = vld [vmem:[%s7873_s0 + $0x20] sm:$0xff] }
0x1c39   : > { %v4904_v20 = vadd.f32 %v4903_v19, %v4778_v28  ;;  %v4905_v39 = vpop.f32.mrb[67].mxu0  ;;  %v4908_v38 = vmax.f32 %v4900_v49, 0.0  ;;  %v5245_v28 = vld [vmem:[%s7873_s0 + $0x10] sm:$0xff] }
0x1c3a   : > { %v4906_v24 = vadd.f32 %v4905_v39, %v4782_v37  ;;  %v4909_v41 = vmax.f32 %v4902_v44, 0.0  ;;  %v6576_v37 = vpack.c.bf16 %v5244_v60, %v5243_v35  ;;  %v6579_v49 = vpack.c.bf16 %v5246_v3, %v5245_v28  ;;  %v5248_v44 = vld [vmem:[%s7873_s0 + $0x28] sm:$0xff]  ;;  %v5250_v39 = vld [vmem:[%s7873_s0 + $0x38] sm:$0xff]  ;;  %v5337_v35 = vld [vmem:[#allocation2] sm:$0x1] }
0x1c3b   : > { %v4910_v21 = vmax.f32 %v4904_v20, 0.0  ;;  %v6582_v19 = vpack.c.bf16 %v5248_v44, %v5247_v43  ;;  %v5249_v20 = vld [vmem:[%s7873_s0 + $0x30] sm:$0xff] }
0x1c3c   : > { %v4911_v42 = vmax.f32 %v4906_v24, 0.0  ;;  %v6585_v24 = vpack.c.bf16 %v5250_v39, %v5249_v20 }
0x1c3d   : > { %v4912_v45 = vpack.c.bf16 %v4910_v21, %v4908_v38  ;;  %v5251_v38 = vld [vmem:[%s7873_s0 + $0x40] sm:$0xff]  ;;  %v5252_v21 = vld [vmem:[%s7873_s0 + $0x48] sm:$0xff] }
0x1c3e   : > { %v4913_v29 = vpack.c.bf16 %v4911_v42, %v4909_v41  ;;  %v6588_v41 = vpack.c.bf16 %v5252_v21, %v5251_v38  ;;  %v5253_v42 = vld [vmem:[%s7873_s0 + $0x50] sm:$0xff] }
0x1c40   : > { %5083 = vmatprep.mubr.bf16.mxu1 %v4913_v29 }
0x1c41   : > { %5084 = vmatmul.mubr.bf16.vlgmr.msra.gmra.mrb[60].mxu1 %v4912_v45  ;;  %v5254_v45 = vld [vmem:[%s7873_s0 + $0x58] sm:$0xff] }
0x1c42   : > { %6464 = vmatprep.mubr.msk.f32.mxu1 %vm6967_vm7, %v6964_v25  ;;  %6577 = vmatpush3.bf16.msra.mxu1 %v6576_v37  ;;  %v6591_v29 = vpack.c.bf16 %v5254_v45, %v5253_v42 }
0x1c43   : > { %6578 = vmatprep.subr.bf16.mxu1 %v6965_v16 }
0x1c46   : > { %6580 = vmatpush3.bf16.msra.mxu1 %v6579_v49 }
0x1c47   : > { %6581 = vmatprep.subr.bf16.mxu1 %v6965_v16 }
0x1c4a   : > { %6583 = vmatpush3.bf16.msra.mxu1 %v6582_v19 }
0x1c4b   : > { %6584 = vmatprep.subr.bf16.mxu1 %v6965_v16 }
0x1c4e   : > { %6586 = vmatpush3.bf16.msra.mxu1 %v6585_v24 }
0x1c4f   : > { %6587 = vmatprep.subr.bf16.mxu1 %v6965_v16 }
0x1c52   : > { %6589 = vmatpush3.bf16.msra.mxu1 %v6588_v41 }
0x1c53   : > { %6590 = vmatprep.subr.bf16.mxu1 %v6965_v16 }
0x1c56   : > { %6592 = vmatpush3.bf16.msra.mxu1 %v6591_v29 }
0x1c57   : > { %6593 = vmatprep.subr.bf16.mxu1 %v6965_v16 }
0x1d14   : > { %v5993_v40 = vpop.f32.mrb[60].mxu1 }
0x1d15   : > { %v5994_v46 = vpop.f32.mrb[61].mxu1 }
0x1d16   : > { %v5995_v26 = vadd.f32 %v5994_v46, %v5993_v40  ;;  %v5996_v27 = vpop.f32.mrb[62].mxu1  ;;  %v5255_v40 = vld [vmem:[%s7873_s0 + $0x60] sm:$0xff] }
0x1d17   : > { %v5997_v48 = vpop.f32.mrb[63].mxu1 }
0x1d18   : > { %v5086_v50 = vadd.f32 %v5995_v26, %v5744_v53  ;;  %v5998_v52 = vadd.f32 %v5997_v48, %v5996_v27 }
0x1d1a   : > { %v5089_v54 = vadd.f32 %v5998_v52, %v5744_v53  ;;  %v5092_v55 = vadd.f32 %v5086_v50, %v4752_v31  ;;  %v6567_v31 = vpack.c.bf16 %v5166_v61, %v5165_v22  ;;  %v5256_v53 = vld [vmem:[%s7873_s0 + $0x68] sm:$0xff]  ;;  %v5259_v61 = vld [vmem:[%s7121_s4] sm:$0x1] }
0x1d1b   : > { %v6594_v46 = vpack.c.bf16 %v5256_v53, %v5255_v40 }
0x1d1c   : > { %5094 = vadd.xlane.f32.xlu0 %v5092_v55  ;;  %v5093_v34 = vadd.f32 %v5089_v54, %v4753_v47  ;;  %v5167_v47 = vld [vmem:[%s7872_s11 + $0x60] sm:$0xff]  ;;  %6568 = vmatpush3.bf16.msra.mxu0 %v6567_v31 }
0x1d1d   : > { %v6570_v32 = vpack.c.bf16 %v5168_v12, %v5167_v47  ;;  %6569 = vmatprep.subr.bf16.mxu0 %v6965_v16  ;;  %6595 = vmatpush3.bf16.msra.mxu1 %v6594_v46 }
0x1d1e   : > { %5096 = vadd.xlane.f32.xlu1 %v5093_v34  ;;  %6596 = vmatprep.subr.bf16.mxu1 %v6965_v16 }
0x1d20   : > { %6571 = vmatpush3.bf16.msra.mxu0 %v6570_v32  ;;  %v5331_v32 = vld [vmem:[%s7126_s6] sm:$0x1] }
0x1d21   : > { %6572 = vmatprep.subr.bf16.mxu0 %v6965_v16  ;;  %6598 = vmatpush3.bf16.msra.mxu1 %v6597_v17 }
0x1d24   : > { %6574 = vmatpush3.bf16.msra.mxu0 %v6573_v4 }
0x1da9   : > { %v5095_v56 = vpop.xlane.xlu0 %5094 }
0x1daa   : > { %v5098_v57 = vmul.f32 0.0078125, %v5095_v56 }
0x1dab   : > { %v5097_v58 = vpop.xlane.xlu1 %5096 }
0x1dac   : > { %v7759_v62 = vsub.f32 %v5092_v55, %v5098_v57  ;;  %v5099_v51 = vmul.f32 0.0078125, %v5097_v58  ;;  %v5138_v55 = vadd.s32 8, %v7343_v36  ;;  %v5762_v58 = vld [vmem:[%s7870_s2 + $0x1] ss:$0 sm:$0xff] }
0x1dae   : > { %v7761_v63 = vsub.f32 %v5093_v34, %v5099_v51  ;;  %v5102_v0 = vmul.f32 %v7759_v62, %v7759_v62  ;;  %vm5140_vm0 = vcmp.lt.s32.totalorder %v5138_v55, 9 }
0x1daf   : > { %v5765_v2 = vsel %vm5140_vm0, 1.0, %v6964_v25  ;;  %v5171_v25 = vld [vmem:[%s7874_s3] sm:$0x1]  ;;  %s1012_s3 = scalar_lea.vmem %s7134_s27, %s7876_s1 }
0x1db0   : > { %5104 = vadd.xlane.f32.xlu0 %v5102_v0  ;;  %v5103_v1 = vmul.f32 %v7761_v63, %v7761_v63 }
0x1db2   : > { %5106 = vadd.xlane.f32.xlu1 %v5103_v1  ;;  %v5764_v1 = vld [vmem:[%s7871_s10 + $0x1] ss:$0 sm:$0xff] }
0x1e3d   : > { %v5105_v26 = vpop.xlane.xlu0 %5104 }
0x1e3e   : > { %v5108_v27 = vmul.f32 0.0078125, %v5105_v26 }
0x1e3f   : > { %v5107_v48 = vpop.xlane.xlu1 %5106 }
0x1e40   : > { %v5110_v50 = vadd.f32 1e-05, %v5108_v27  ;;  %v5109_v52 = vmul.f32 0.0078125, %v5107_v48 }
0x1e42   : > { %6918 = vrsqrt.f32 %v5110_v50  ;;  %v5111_v54 = vadd.f32 1e-05, %v5109_v52 }
0x1e44   : > { %6920 = vrsqrt.f32 %v5111_v54 }
0x1e4c   : > { %v6919_v34 = vpop.eup %6918 }
0x1e4d   : > { %v5114_v56 = vmul.f32 %v6919_v34, %v7759_v62 }
0x1e4e   : > { %v6921_v57 = vpop.eup %6920 }
0x1e4f   : > { %v5115_v51 = vmul.f32 %v6921_v57, %v7761_v63  ;;  %v5124_v16 = vmul.f32 %v5762_v58, %v5114_v56 }
0x1e51   : > { %v5125_v0 = vmul.f32 %v5762_v58, %v5115_v51  ;;  %v5134_v5 = vadd.f32 %v5764_v1, %v5124_v16 }
0x1e53   : > { %v5135_v23 = vadd.f32 %v5764_v1, %v5125_v0 }
0x1e55   : > { %v5146_v7 = vmul.f32 %v5765_v2, %v5135_v23 }
0x1e57   : > { %v5147_v36 = vadd.f32 %v5146_v7, %v5134_v5 }
0x1e59   : > { %v5148_v30 = vrot.slane %v5147_v36, 4 }
0x1e5b   : > { %v5149_v8 = vadd.f32 %v5148_v30, %v5147_v36 }
0x1e5d   : > { %v5150_v62 = vrot.slane %v5149_v8, 2 }
0x1e5f   : > { %v5151_v10 = vadd.f32 %v5150_v62, %v5149_v8 }
0x1e61   : > { %v5152_v11 = vrot.slane %v5151_v10, 1 }
0x1e63   : > { %v5153_v63 = vadd.f32 %v5152_v11, %v5151_v10 }
0x1e65   : > { %v5154_v13 = vmul.f32 0.11111111, %v5153_v63 }
0x1e67   : > { %6430 = vmatmul.mubr.f32.vlgmr.msra.gmra.mrb[68].mxu0 %v5154_v13 }
0x1f3a   : > { %v5238_v59 = vpop.f32.mrb[68].mxu0 }
0x1f3b   : > { %v5239_v18 = vadd.f32 %v5238_v59, %v5171_v25  ;;  %v6431_v9 = vpop.f32.mrb[69].mxu0 }
0x1f3d   : > { %v5242_v22 = vmax.f32 %v5239_v18, 0.0 }
0x1f3f   : > { %6465 = vmatmul.mubr.f32.vlgmr.msra.gmra.mrb[54].mxu1 %v5242_v22 }
0x2012   : > { %v5326_v31 = vpop.f32.mrb[54].mxu1 }
0x2013   : > { %v5327_v47 = vadd.f32 %v5326_v31, %v5259_v61  ;;  %v6466_v12 = vpop.f32.mrb[55].mxu1 }
0x2015   : > { %v5330_v33 = vmax.f32 %v5327_v47, 0.0 }
0x2017   : > { %v5332_v6 = vmul.f32 %v5331_v32, %v5330_v33 }
0x2019   : > { %v5334_v4 = vsel %vm5333_vm2, %v5332_v6, 0.0 }
0x201a   : > { %5335 = vadd.xlane.f32.xlu1 %v5334_v4 }
0x20a7   : > { %v5336_v60 = vpop.xlane.xlu1 %5335 }
0x20a8   : > { %v5338_v28 = vadd.f32 %v5337_v35, %v5336_v60 }
0x20aa   : > { %v5339_v37 = vmax.f32 %v5338_v28, 0.0 }
0x20ac   : > { %5341 = vst.msk [vmem:[%s1012_s3] sm:$0x1] %vm5340_vm3, %v5339_v37 }
0x20ad PF: > { %s77_s28 = sadd.s32 1, %s6929_s28  }
0x20ae   : > { %p74_p4 = scmp.ge.s32.totalorder %s77_s28, 4  }
0x20b0   :  { %76 = sbr.rel (!%p74_p4) target bundleno = 58 (0x3a), region = 228 }

</bundles_post_ra>
